<compile_context>
chip_gen: v7x
topology: tpu7x:2x2x1
jax: 0.10.0
libtpu: 0.0.40
codegen_flags: <defaults>
</compile_context>

<pallas_src>
import functools

import numpy as np
import jax
import jax.numpy as jnp
from jax.experimental import pallas as pl
from jax.experimental.pallas import tpu as pltpu


# 3x3 conv tap offsets (dh, dw); tap index t = (dh + 1) * 3 + (dw + 1).
_TAPS = tuple((dh, dw) for dh in (-1, 0, 1) for dw in (-1, 0, 1))


# ----------------------------------------------------------------------------
# The single fused forward kernel
# ----------------------------------------------------------------------------
def _fused_forward_kernel(x_ref, masks_ref,
                          stem_w_ref, stem_b_ref,
                          rb1_w_ref, rb1_b_ref,
                          rb2_w_ref, rb2_b_ref,
                          pool_t_ref,
                          *rest, n_dec, roll_amts):
    # rest = [fc_w, fc_b, p1w, p1b, p2w, p2b, q1w, q1b, q2w, q2b,
    #         dec0_w, dec0_b, ..., e_out, z_out, p_out, rec_out]
    n_head = 10 + 2 * n_dec
    wref = rest[:n_head]
    e_ref, z_ref, p_ref, rec_ref = rest[n_head:]

    n = x_ref.shape[1]                                 # 2B * H * W (lane axis)

    def conv3x3(x, w9_ref, b_ref):
        # x: (Cin, N) f32 ; w9_ref: (9, Cout, Cin) bf16 -> (Cout, N) f32.
        # In-kernel 9-tap conv: roll the lane-flattened map per tap, zero the
        # taps that fall outside the per-image border (mask), and accumulate
        # small MXU matmuls in f32.  No im2col, no HBM traffic.
        cout = w9_ref.shape[1]
        acc = jnp.zeros((cout, n), jnp.float32)
        for t, amt in enumerate(roll_amts):
            if amt == 0:                               # centre tap: no shift/mask
                xs = x
            else:
                xs = pltpu.roll(x, amt, 1) * masks_ref[t:t + 1, :]
            acc = acc + jnp.dot(w9_ref[t], xs.astype(jnp.bfloat16),
                                preferred_element_type=jnp.float32)
        return acc + b_ref[...]                        # (Cout, 1) lane broadcast

    # --- encoder conv chain: all intermediates stay in VMEM/vregs ----------
    x = x_ref[...]
    h = jnp.maximum(conv3x3(x, stem_w_ref, stem_b_ref), 0.0)      # stem
    r = jnp.maximum(conv3x3(h, rb1_w_ref, rb1_b_ref), 0.0)        # rb conv1
    f = jnp.maximum(conv3x3(r, rb2_w_ref, rb2_b_ref) + h, 0.0)    # rb conv2 + res

    # --- global average pool as an MXU matmul, batch-major result ----------
    # pool_t: (2B, N) block-averaging matrix; contraction over the shared last
    # axis (q.k^T pattern) yields pooled as (2B, Cout) with no transpose.
    pooled = jax.lax.dot_general(
        pool_t_ref[...], f,
        dimension_numbers=(((1,), (1,)), ((), ())),
        preferred_element_type=jnp.float32)

    def lin(v, w_r, b_r, act):
        y = jnp.dot(v, w_r[...], preferred_element_type=jnp.float32) + b_r[...]
        if act == "relu":
            return jnp.maximum(y, 0.0)
        if act == "sigmoid":
            return jax.nn.sigmoid(y)
        return y

    # --- encoder FC, SimSiam projector/predictor, image decoder ------------
    e = lin(pooled, wref[0], wref[1], "none")          # (2B, latent)
    e_ref[...] = e

    hz = lin(e, wref[2], wref[3], "relu")              # projector
    z = lin(hz, wref[4], wref[5], "none")
    z_ref[...] = z

    hp = lin(z, wref[6], wref[7], "relu")              # predictor
    p = lin(hp, wref[8], wref[9], "none")
    p_ref[...] = p

    d = e                                              # image decoder MLP
    for li in range(n_dec):
        act = "sigmoid" if li == n_dec - 1 else "relu"
        d = lin(d, wref[10 + 2 * li], wref[11 + 2 * li], act)
    rec_ref[...] = d                                   # (2B, C*H*W) lane-dense
    # TODO(synk): at realistic image/batch sizes (e.g. 3x224x224) lane-tile the
    # final decoder matmul over its output columns and grid the conv/pool stage
    # over N = 2B*H*W with an accumulated pooled output so the working set
    # stays inside v7x's 64 MiB VMEM; unnecessary at these demo shapes.


# ----------------------------------------------------------------------------
# Host-side constants for the in-kernel conv and pooling
# ----------------------------------------------------------------------------
def _conv_tap_constants(b2, h, w):
    """Border masks (9, N) f32 and pltpu.roll amounts per 3x3 tap for the
    b-major lane-flattened layout n = b*H*W + h*W + w."""
    n = b2 * h * w
    idx = np.arange(n)
    hh = (idx // w) % h
    ww = idx % w
    masks, amts = [], []
    for dh, dw in _TAPS:
        valid = ((hh + dh >= 0) & (hh + dh < h) &
                 (ww + dw >= 0) & (ww + dw < w))
        masks.append(valid.astype(np.float32))
        # want xs[i] = x[i + dh*W + dw]; jnp.roll(x, k)[i] = x[i - k]  => k = -s
        amts.append(int((-(dh * w + dw)) % n))
    return np.stack(masks, axis=0), tuple(amts)


def _pool_matrix_t(b2, hw):
    """(2B, 2B*H*W) averaging matrix matching the b-major flattened layout."""
    return np.repeat(np.eye(b2, dtype=np.float32), hw, axis=1) / float(hw)


# ----------------------------------------------------------------------------
# Parameter init (deterministic, synthetic)
# ----------------------------------------------------------------------------
def _init_dense(key, fan_in, fan_out):
    kw, kb = jax.random.split(key)
    w = jax.random.normal(kw, (fan_in, fan_out), jnp.float32) * (2.0 / fan_in) ** 0.5
    b = jax.random.normal(kb, (fan_out,), jnp.float32) * 0.01
    return w, b


def _init_conv(key, cin, cout):
    kw, kb = jax.random.split(key)
    fan_in = cin * 9
    w = jax.random.normal(kw, (9, cout, cin), jnp.float32) * (2.0 / fan_in) ** 0.5
    b = jax.random.normal(kb, (cout,), jnp.float32) * 0.01
    return w, b


def init_params(key, *, channels, height, width, latent_dim, dec_hidden_dims,
                proj_hidden_dim, proj_out_dim, pred_hidden_dim, pred_out_dim,
                enc_width=16):
    keys = jax.random.split(key, 16)
    p = {}
    # Encoder: simplified ResNet-style stem + one residual block + GAP + FC.
    # TODO(synk): full ResNet50Encoder (50-layer bottleneck backbone) replaced
    # by a compact residual stand-in with the same (B, latent_dim) interface.
    p["enc_stem_w"], p["enc_stem_b"] = _init_conv(keys[0], channels, enc_width)
    p["enc_rb1_w"], p["enc_rb1_b"] = _init_conv(keys[1], enc_width, enc_width)
    p["enc_rb2_w"], p["enc_rb2_b"] = _init_conv(keys[2], enc_width, enc_width)
    p["enc_fc_w"], p["enc_fc_b"] = _init_dense(keys[3], enc_width, latent_dim)
    # SimSiam projector / predictor.
    # TODO(synk): BatchNorm1d layers of the reference SimSiam omitted.
    p["proj1_w"], p["proj1_b"] = _init_dense(keys[4], latent_dim, proj_hidden_dim)
    p["proj2_w"], p["proj2_b"] = _init_dense(keys[5], proj_hidden_dim, proj_out_dim)
    p["pred1_w"], p["pred1_b"] = _init_dense(keys[6], proj_out_dim, pred_hidden_dim)
    p["pred2_w"], p["pred2_b"] = _init_dense(keys[7], pred_hidden_dim, pred_out_dim)
    # Image decoder MLP: latent -> hidden_dims... -> C*H*W with sigmoid.
    dec_dims = [latent_dim] + list(dec_hidden_dims) + [channels * height * width]
    p["dec"] = [_init_dense(keys[8 + i], din, dout)
                for i, (din, dout) in enumerate(zip(dec_dims[:-1], dec_dims[1:]))]
    return p


# ----------------------------------------------------------------------------
# Forward wrapper: one pallas_call for the whole model
# ----------------------------------------------------------------------------
def resnet_sim_ae_forward(params, x_s, x_t, *, channels, height, width):
    bsz = x_s.shape[0]
    b2 = 2 * bsz
    n = b2 * height * width            # lane axis of every conv stage (1024 here)

    # Both views share every weight: push them through together so weights are
    # DMA'd once and M doubles in every matmul.
    x = jnp.concatenate([x_s, x_t], axis=0)                       # (2B, C, H, W)
    x_cn = jnp.transpose(x, (1, 0, 2, 3)).reshape(channels, n)    # channel-major

    masks, roll_amts = _conv_tap_constants(b2, height, width)     # host constants
    pool_t = _pool_matrix_t(b2, height * width)

    ew = params["enc_stem_w"].shape[1]
    latent = params["enc_fc_w"].shape[1]
    proj_out = params["proj2_w"].shape[1]
    pred_out = params["pred2_w"].shape[1]
    dec = params["dec"]
    n_dec = len(dec)
    out_dim = dec[-1][0].shape[1]

    # Conv weights pre-cast to bf16 in the wrapper (accumulation stays f32).
    conv_args = (
        params["enc_stem_w"].astype(jnp.bfloat16), params["enc_stem_b"].reshape(ew, 1),
        params["enc_rb1_w"].astype(jnp.bfloat16), params["enc_rb1_b"].reshape(ew, 1),
        params["enc_rb2_w"].astype(jnp.bfloat16), params["enc_rb2_b"].reshape(ew, 1),
    )
    head_args = [params["enc_fc_w"], params["enc_fc_b"].reshape(1, -1),
                 params["proj1_w"], params["proj1_b"].reshape(1, -1),
                 params["proj2_w"], params["proj2_b"].reshape(1, -1),
                 params["pred1_w"], params["pred1_b"].reshape(1, -1),
                 params["pred2_w"], params["pred2_b"].reshape(1, -1)]
    for w, b in dec:
        head_args += [w, b.reshape(1, -1)]

    kern = functools.partial(_fused_forward_kernel, n_dec=n_dec,
                             roll_amts=roll_amts)
    out_shapes = (jax.ShapeDtypeStruct((b2, latent), jnp.float32),
                  jax.ShapeDtypeStruct((b2, proj_out), jnp.float32),
                  jax.ShapeDtypeStruct((b2, pred_out), jnp.float32),
                  jax.ShapeDtypeStruct((b2, out_dim), jnp.float32))

    # One launch, no grid: every operand is a single whole-array VMEM block.
    e, z, pred, rec = pl.pallas_call(kern, out_shape=out_shapes)(
        x_cn, masks, *conv_args, pool_t, *head_args)

    rec = rec.reshape(b2, channels, height, width)
    e_s, e_t = e[:bsz], e[bsz:]
    z_s, z_t = z[:bsz], z[bsz:]
    p_s, p_t = pred[:bsz], pred[bsz:]
    return e_s, e_t, z_s, p_s, z_t, p_t, rec[:bsz], rec[bsz:]


# ----------------------------------------------------------------------------
if __name__ == "__main__":
    batch = 2
    channels = 3
    height = width = 16
    dec_latent_dim = 64
    dec_hidden_dims = [48, 96]
    proj_hidden_dim = 32
    proj_out_dim = 32
    pred_hidden_dim = 16
    pred_out_dim = 32

    key = jax.random.PRNGKey(0)
    k_params, k_xs, k_xt = jax.random.split(key, 3)

    params = init_params(
        k_params,
        channels=channels, height=height, width=width,
        latent_dim=dec_latent_dim, dec_hidden_dims=dec_hidden_dims,
        proj_hidden_dim=proj_hidden_dim, proj_out_dim=proj_out_dim,
        pred_hidden_dim=pred_hidden_dim, pred_out_dim=pred_out_dim,
    )

    x_s = jax.random.normal(k_xs, (batch, channels, height, width), jnp.float32)
    x_t = jax.random.normal(k_xt, (batch, channels, height, width), jnp.float32)

    fwd = jax.jit(functools.partial(
        resnet_sim_ae_forward, channels=channels, height=height, width=width))
    outs = jax.block_until_ready(fwd(params, x_s, x_t))

    e_s, e_t, z_s, p_s, z_t, p_t, xs_rec, xt_rec = outs
    assert e_s.shape == (batch, dec_latent_dim)
    assert e_t.shape == (batch, dec_latent_dim)
    assert z_s.shape == (batch, proj_out_dim)
    assert z_t.shape == (batch, proj_out_dim)
    assert p_s.shape == (batch, pred_out_dim)
    assert p_t.shape == (batch, pred_out_dim)
    assert xs_rec.shape == (batch, channels, height, width)
    assert xt_rec.shape == (batch, channels, height, width)
    assert bool(jnp.all(jnp.isfinite(xs_rec)))
    assert bool(jnp.all(jnp.isfinite(xt_rec)))
    assert bool(jnp.all(jnp.isfinite(p_s))) and bool(jnp.all(jnp.isfinite(p_t)))
    print("KERNEL_OK")
</pallas_src>

<mosaic_0001>
module attributes {stable_mosaic.version = 11 : i64} {
  func.func @_fused_forward_kernel(%arg0: memref<3x1024xf32, #tpu.memory_space<vmem>>, %arg1: memref<9x1024xf32, #tpu.memory_space<vmem>>, %arg2: memref<9x16x3xbf16, #tpu.memory_space<vmem>>, %arg3: memref<16x1xf32, #tpu.memory_space<vmem>>, %arg4: memref<9x16x16xbf16, #tpu.memory_space<vmem>>, %arg5: memref<16x1xf32, #tpu.memory_space<vmem>>, %arg6: memref<9x16x16xbf16, #tpu.memory_space<vmem>>, %arg7: memref<16x1xf32, #tpu.memory_space<vmem>>, %arg8: memref<4x1024xf32, #tpu.memory_space<vmem>>, %arg9: memref<16x64xf32, #tpu.memory_space<vmem>>, %arg10: memref<1x64xf32, #tpu.memory_space<vmem>>, %arg11: memref<64x32xf32, #tpu.memory_space<vmem>>, %arg12: memref<1x32xf32, #tpu.memory_space<vmem>>, %arg13: memref<32x32xf32, #tpu.memory_space<vmem>>, %arg14: memref<1x32xf32, #tpu.memory_space<vmem>>, %arg15: memref<32x16xf32, #tpu.memory_space<vmem>>, %arg16: memref<1x16xf32, #tpu.memory_space<vmem>>, %arg17: memref<16x32xf32, #tpu.memory_space<vmem>>, %arg18: memref<1x32xf32, #tpu.memory_space<vmem>>, %arg19: memref<64x48xf32, #tpu.memory_space<vmem>>, %arg20: memref<1x48xf32, #tpu.memory_space<vmem>>, %arg21: memref<48x96xf32, #tpu.memory_space<vmem>>, %arg22: memref<1x96xf32, #tpu.memory_space<vmem>>, %arg23: memref<96x768xf32, #tpu.memory_space<vmem>>, %arg24: memref<1x768xf32, #tpu.memory_space<vmem>>, %arg25: memref<4x64xf32, #tpu.memory_space<vmem>>, %arg26: memref<4x32xf32, #tpu.memory_space<vmem>>, %arg27: memref<4x32xf32, #tpu.memory_space<vmem>>, %arg28: memref<4x768xf32, #tpu.memory_space<vmem>>) attributes {dimension_semantics = [], scalar_prefetch = 0 : i64, scratch_operands = 0 : i64, tpu.core_type = #tpu.core_type<tc>} {
    %c0 = arith.constant 0 : index
    %c0_0 = arith.constant 0 : index
    %0 = vector.load %arg0[%c0, %c0_0] : memref<3x1024xf32, #tpu.memory_space<vmem>>, vector<3x1024xf32>
    %cst = arith.constant 0.000000e+00 : f32
    %1 = vector.broadcast %cst : f32 to vector<16x1024xf32>
    %c17_i32 = arith.constant 17 : i32
    %2 = tpu.dynamic_rotate %0 by %c17_i32 dim 1 : vector<3x1024xf32>, i32 -> vector<3x1024xf32>
    %c0_1 = arith.constant 0 : index
    %c0_2 = arith.constant 0 : index
    %3 = vector.load %arg1[%c0_1, %c0_2] : memref<9x1024xf32, #tpu.memory_space<vmem>>, vector<1x1024xf32>
    %4 = vector.broadcast %3 : vector<1x1024xf32> to vector<3x1024xf32>
    %5 = arith.mulf %2, %4 : vector<3x1024xf32>
    %c0_3 = arith.constant 0 : index
    %c0_4 = arith.constant 0 : index
    %c0_5 = arith.constant 0 : index
    %6 = vector.load %arg2[%c0_3, %c0_4, %c0_5] : memref<9x16x3xbf16, #tpu.memory_space<vmem>>, vector<1x16x3xbf16>
    %7 = vector.shape_cast %6 : vector<1x16x3xbf16> to vector<16x3xbf16>
    %8 = arith.truncf %5 : vector<3x1024xf32> to vector<3x1024xbf16>
    %cst_6 = arith.constant dense<0.000000e+00> : vector<16x1024xf32>
    %9 = tpu.matmul %7, %8, %cst_6 {dimension_numbers = #tpu.dot_dimension_numbers<[1], [0], [0], [1], [0, 0, 1, 1], [], []>} : vector<16x3xbf16>, vector<3x1024xbf16>, vector<16x1024xf32> -> vector<16x1024xf32>
    %10 = arith.addf %1, %9 : vector<16x1024xf32>
    %c16_i32 = arith.constant 16 : i32
    %11 = tpu.dynamic_rotate %0 by %c16_i32 dim 1 : vector<3x1024xf32>, i32 -> vector<3x1024xf32>
    %c1 = arith.constant 1 : index
    %c0_7 = arith.constant 0 : index
    %12 = vector.load %arg1[%c1, %c0_7] : memref<9x1024xf32, #tpu.memory_space<vmem>>, vector<1x1024xf32>
    %13 = vector.broadcast %12 : vector<1x1024xf32> to vector<3x1024xf32>
    %14 = arith.mulf %11, %13 : vector<3x1024xf32>
    %c1_8 = arith.constant 1 : index
    %c0_9 = arith.constant 0 : index
    %c0_10 = arith.constant 0 : index
    %15 = vector.load %arg2[%c1_8, %c0_9, %c0_10] : memref<9x16x3xbf16, #tpu.memory_space<vmem>>, vector<1x16x3xbf16>
    %16 = vector.shape_cast %15 : vector<1x16x3xbf16> to vector<16x3xbf16>
    %17 = arith.truncf %14 : vector<3x1024xf32> to vector<3x1024xbf16>
    %cst_11 = arith.constant dense<0.000000e+00> : vector<16x1024xf32>
    %18 = tpu.matmul %16, %17, %cst_11 {dimension_numbers = #tpu.dot_dimension_numbers<[1], [0], [0], [1], [0, 0, 1, 1], [], []>} : vector<16x3xbf16>, vector<3x1024xbf16>, vector<16x1024xf32> -> vector<16x1024xf32>
    %19 = arith.addf %10, %18 : vector<16x1024xf32>
    %c15_i32 = arith.constant 15 : i32
    %20 = tpu.dynamic_rotate %0 by %c15_i32 dim 1 : vector<3x1024xf32>, i32 -> vector<3x1024xf32>
    %c2 = arith.constant 2 : index
    %c0_12 = arith.constant 0 : index
    %21 = vector.load %arg1[%c2, %c0_12] : memref<9x1024xf32, #tpu.memory_space<vmem>>, vector<1x1024xf32>
    %22 = vector.broadcast %21 : vector<1x1024xf32> to vector<3x1024xf32>
    %23 = arith.mulf %20, %22 : vector<3x1024xf32>
    %c2_13 = arith.constant 2 : index
    %c0_14 = arith.constant 0 : index
    %c0_15 = arith.constant 0 : index
    %24 = vector.load %arg2[%c2_13, %c0_14, %c0_15] : memref<9x16x3xbf16, #tpu.memory_space<vmem>>, vector<1x16x3xbf16>
    %25 = vector.shape_cast %24 : vector<1x16x3xbf16> to vector<16x3xbf16>
    %26 = arith.truncf %23 : vector<3x1024xf32> to vector<3x1024xbf16>
    %cst_16 = arith.constant dense<0.000000e+00> : vector<16x1024xf32>
    %27 = tpu.matmul %25, %26, %cst_16 {dimension_numbers = #tpu.dot_dimension_numbers<[1], [0], [0], [1], [0, 0, 1, 1], [], []>} : vector<16x3xbf16>, vector<3x1024xbf16>, vector<16x1024xf32> -> vector<16x1024xf32>
    %28 = arith.addf %19, %27 : vector<16x1024xf32>
    %c1_i32 = arith.constant 1 : i32
    %29 = tpu.dynamic_rotate %0 by %c1_i32 dim 1 : vector<3x1024xf32>, i32 -> vector<3x1024xf32>
    %c3 = arith.constant 3 : index
    %c0_17 = arith.constant 0 : index
    %30 = vector.load %arg1[%c3, %c0_17] : memref<9x1024xf32, #tpu.memory_space<vmem>>, vector<1x1024xf32>
    %31 = vector.broadcast %30 : vector<1x1024xf32> to vector<3x1024xf32>
    %32 = arith.mulf %29, %31 : vector<3x1024xf32>
    %c3_18 = arith.constant 3 : index
    %c0_19 = arith.constant 0 : index
    %c0_20 = arith.constant 0 : index
    %33 = vector.load %arg2[%c3_18, %c0_19, %c0_20] : memref<9x16x3xbf16, #tpu.memory_space<vmem>>, vector<1x16x3xbf16>
    %34 = vector.shape_cast %33 : vector<1x16x3xbf16> to vector<16x3xbf16>
    %35 = arith.truncf %32 : vector<3x1024xf32> to vector<3x1024xbf16>
    %cst_21 = arith.constant dense<0.000000e+00> : vector<16x1024xf32>
    %36 = tpu.matmul %34, %35, %cst_21 {dimension_numbers = #tpu.dot_dimension_numbers<[1], [0], [0], [1], [0, 0, 1, 1], [], []>} : vector<16x3xbf16>, vector<3x1024xbf16>, vector<16x1024xf32> -> vector<16x1024xf32>
    %37 = arith.addf %28, %36 : vector<16x1024xf32>
    %c4 = arith.constant 4 : index
    %c0_22 = arith.constant 0 : index
    %c0_23 = arith.constant 0 : index
    %38 = vector.load %arg2[%c4, %c0_22, %c0_23] : memref<9x16x3xbf16, #tpu.memory_space<vmem>>, vector<1x16x3xbf16>
    %39 = vector.shape_cast %38 : vector<1x16x3xbf16> to vector<16x3xbf16>
    %40 = arith.truncf %0 : vector<3x1024xf32> to vector<3x1024xbf16>
    %cst_24 = arith.constant dense<0.000000e+00> : vector<16x1024xf32>
    %41 = tpu.matmul %39, %40, %cst_24 {dimension_numbers = #tpu.dot_dimension_numbers<[1], [0], [0], [1], [0, 0, 1, 1], [], []>} : vector<16x3xbf16>, vector<3x1024xbf16>, vector<16x1024xf32> -> vector<16x1024xf32>
    %42 = arith.addf %37, %41 : vector<16x1024xf32>
    %c1023_i32 = arith.constant 1023 : i32
    %43 = tpu.dynamic_rotate %0 by %c1023_i32 dim 1 : vector<3x1024xf32>, i32 -> vector<3x1024xf32>
    %c5 = arith.constant 5 : index
    %c0_25 = arith.constant 0 : index
    %44 = vector.load %arg1[%c5, %c0_25] : memref<9x1024xf32, #tpu.memory_space<vmem>>, vector<1x1024xf32>
    %45 = vector.broadcast %44 : vector<1x1024xf32> to vector<3x1024xf32>
    %46 = arith.mulf %43, %45 : vector<3x1024xf32>
    %c5_26 = arith.constant 5 : index
    %c0_27 = arith.constant 0 : index
    %c0_28 = arith.constant 0 : index
    %47 = vector.load %arg2[%c5_26, %c0_27, %c0_28] : memref<9x16x3xbf16, #tpu.memory_space<vmem>>, vector<1x16x3xbf16>
    %48 = vector.shape_cast %47 : vector<1x16x3xbf16> to vector<16x3xbf16>
    %49 = arith.truncf %46 : vector<3x1024xf32> to vector<3x1024xbf16>
    %cst_29 = arith.constant dense<0.000000e+00> : vector<16x1024xf32>
    %50 = tpu.matmul %48, %49, %cst_29 {dimension_numbers = #tpu.dot_dimension_numbers<[1], [0], [0], [1], [0, 0, 1, 1], [], []>} : vector<16x3xbf16>, vector<3x1024xbf16>, vector<16x1024xf32> -> vector<16x1024xf32>
    %51 = arith.addf %42, %50 : vector<16x1024xf32>
    %c1009_i32 = arith.constant 1009 : i32
    %52 = tpu.dynamic_rotate %0 by %c1009_i32 dim 1 : vector<3x1024xf32>, i32 -> vector<3x1024xf32>
    %c6 = arith.constant 6 : index
    %c0_30 = arith.constant 0 : index
    %53 = vector.load %arg1[%c6, %c0_30] : memref<9x1024xf32, #tpu.memory_space<vmem>>, vector<1x1024xf32>
    %54 = vector.broadcast %53 : vector<1x1024xf32> to vector<3x1024xf32>
    %55 = arith.mulf %52, %54 : vector<3x1024xf32>
    %c6_31 = arith.constant 6 : index
    %c0_32 = arith.constant 0 : index
    %c0_33 = arith.constant 0 : index
    %56 = vector.load %arg2[%c6_31, %c0_32, %c0_33] : memref<9x16x3xbf16, #tpu.memory_space<vmem>>, vector<1x16x3xbf16>
    %57 = vector.shape_cast %56 : vector<1x16x3xbf16> to vector<16x3xbf16>
    %58 = arith.truncf %55 : vector<3x1024xf32> to vector<3x1024xbf16>
    %cst_34 = arith.constant dense<0.000000e+00> : vector<16x1024xf32>
    %59 = tpu.matmul %57, %58, %cst_34 {dimension_numbers = #tpu.dot_dimension_numbers<[1], [0], [0], [1], [0, 0, 1, 1], [], []>} : vector<16x3xbf16>, vector<3x1024xbf16>, vector<16x1024xf32> -> vector<16x1024xf32>
    %60 = arith.addf %51, %59 : vector<16x1024xf32>
    %c1008_i32 = arith.constant 1008 : i32
    %61 = tpu.dynamic_rotate %0 by %c1008_i32 dim 1 : vector<3x1024xf32>, i32 -> vector<3x1024xf32>
    %c7 = arith.constant 7 : index
    %c0_35 = arith.constant 0 : index
    %62 = vector.load %arg1[%c7, %c0_35] : memref<9x1024xf32, #tpu.memory_space<vmem>>, vector<1x1024xf32>
    %63 = vector.broadcast %62 : vector<1x1024xf32> to vector<3x1024xf32>
    %64 = arith.mulf %61, %63 : vector<3x1024xf32>
    %c7_36 = arith.constant 7 : index
    %c0_37 = arith.constant 0 : index
    %c0_38 = arith.constant 0 : index
    %65 = vector.load %arg2[%c7_36, %c0_37, %c0_38] : memref<9x16x3xbf16, #tpu.memory_space<vmem>>, vector<1x16x3xbf16>
    %66 = vector.shape_cast %65 : vector<1x16x3xbf16> to vector<16x3xbf16>
    %67 = arith.truncf %64 : vector<3x1024xf32> to vector<3x1024xbf16>
    %cst_39 = arith.constant dense<0.000000e+00> : vector<16x1024xf32>
    %68 = tpu.matmul %66, %67, %cst_39 {dimension_numbers = #tpu.dot_dimension_numbers<[1], [0], [0], [1], [0, 0, 1, 1], [], []>} : vector<16x3xbf16>, vector<3x1024xbf16>, vector<16x1024xf32> -> vector<16x1024xf32>
    %69 = arith.addf %60, %68 : vector<16x1024xf32>
    %c1007_i32 = arith.constant 1007 : i32
    %70 = tpu.dynamic_rotate %0 by %c1007_i32 dim 1 : vector<3x1024xf32>, i32 -> vector<3x1024xf32>
    %c8 = arith.constant 8 : index
    %c0_40 = arith.constant 0 : index
    %71 = vector.load %arg1[%c8, %c0_40] : memref<9x1024xf32, #tpu.memory_space<vmem>>, vector<1x1024xf32>
    %72 = vector.broadcast %71 : vector<1x1024xf32> to vector<3x1024xf32>
    %73 = arith.mulf %70, %72 : vector<3x1024xf32>
    %c8_41 = arith.constant 8 : index
    %c0_42 = arith.constant 0 : index
    %c0_43 = arith.constant 0 : index
    %74 = vector.load %arg2[%c8_41, %c0_42, %c0_43] : memref<9x16x3xbf16, #tpu.memory_space<vmem>>, vector<1x16x3xbf16>
    %75 = vector.shape_cast %74 : vector<1x16x3xbf16> to vector<16x3xbf16>
    %76 = arith.truncf %73 : vector<3x1024xf32> to vector<3x1024xbf16>
    %cst_44 = arith.constant dense<0.000000e+00> : vector<16x1024xf32>
    %77 = tpu.matmul %75, %76, %cst_44 {dimension_numbers = #tpu.dot_dimension_numbers<[1], [0], [0], [1], [0, 0, 1, 1], [], []>} : vector<16x3xbf16>, vector<3x1024xbf16>, vector<16x1024xf32> -> vector<16x1024xf32>
    %78 = arith.addf %69, %77 : vector<16x1024xf32>
    %c0_45 = arith.constant 0 : index
    %c0_46 = arith.constant 0 : index
    %79 = vector.load %arg3[%c0_45, %c0_46] : memref<16x1xf32, #tpu.memory_space<vmem>>, vector<16x1xf32>
    %80 = vector.broadcast %79 : vector<16x1xf32> to vector<16x1024xf32>
    %81 = arith.addf %78, %80 : vector<16x1024xf32>
    %cst_47 = arith.constant 0.000000e+00 : f32
    %82 = vector.broadcast %cst_47 : f32 to vector<16x1024xf32>
    %83 = arith.maximumf %81, %82 : vector<16x1024xf32>
    %cst_48 = arith.constant 0.000000e+00 : f32
    %84 = vector.broadcast %cst_48 : f32 to vector<16x1024xf32>
    %c17_i32_49 = arith.constant 17 : i32
    %85 = tpu.dynamic_rotate %83 by %c17_i32_49 dim 1 : vector<16x1024xf32>, i32 -> vector<16x1024xf32>
    %c0_50 = arith.constant 0 : index
    %c0_51 = arith.constant 0 : index
    %86 = vector.load %arg1[%c0_50, %c0_51] : memref<9x1024xf32, #tpu.memory_space<vmem>>, vector<1x1024xf32>
    %87 = vector.broadcast %86 : vector<1x1024xf32> to vector<16x1024xf32>
    %88 = arith.mulf %85, %87 : vector<16x1024xf32>
    %c0_52 = arith.constant 0 : index
    %c0_53 = arith.constant 0 : index
    %c0_54 = arith.constant 0 : index
    %89 = vector.load %arg4[%c0_52, %c0_53, %c0_54] : memref<9x16x16xbf16, #tpu.memory_space<vmem>>, vector<1x16x16xbf16>
    %90 = vector.shape_cast %89 : vector<1x16x16xbf16> to vector<16x16xbf16>
    %91 = arith.truncf %88 : vector<16x1024xf32> to vector<16x1024xbf16>
    %cst_55 = arith.constant dense<0.000000e+00> : vector<16x1024xf32>
    %92 = tpu.matmul %90, %91, %cst_55 {dimension_numbers = #tpu.dot_dimension_numbers<[1], [0], [0], [1], [0, 0, 1, 1], [], []>} : vector<16x16xbf16>, vector<16x1024xbf16>, vector<16x1024xf32> -> vector<16x1024xf32>
    %93 = arith.addf %84, %92 : vector<16x1024xf32>
    %c16_i32_56 = arith.constant 16 : i32
    %94 = tpu.dynamic_rotate %83 by %c16_i32_56 dim 1 : vector<16x1024xf32>, i32 -> vector<16x1024xf32>
    %c1_57 = arith.constant 1 : index
    %c0_58 = arith.constant 0 : index
    %95 = vector.load %arg1[%c1_57, %c0_58] : memref<9x1024xf32, #tpu.memory_space<vmem>>, vector<1x1024xf32>
    %96 = vector.broadcast %95 : vector<1x1024xf32> to vector<16x1024xf32>
    %97 = arith.mulf %94, %96 : vector<16x1024xf32>
    %c1_59 = arith.constant 1 : index
    %c0_60 = arith.constant 0 : index
    %c0_61 = arith.constant 0 : index
    %98 = vector.load %arg4[%c1_59, %c0_60, %c0_61] : memref<9x16x16xbf16, #tpu.memory_space<vmem>>, vector<1x16x16xbf16>
    %99 = vector.shape_cast %98 : vector<1x16x16xbf16> to vector<16x16xbf16>
    %100 = arith.truncf %97 : vector<16x1024xf32> to vector<16x1024xbf16>
    %cst_62 = arith.constant dense<0.000000e+00> : vector<16x1024xf32>
    %101 = tpu.matmul %99, %100, %cst_62 {dimension_numbers = #tpu.dot_dimension_numbers<[1], [0], [0], [1], [0, 0, 1, 1], [], []>} : vector<16x16xbf16>, vector<16x1024xbf16>, vector<16x1024xf32> -> vector<16x1024xf32>
    %102 = arith.addf %93, %101 : vector<16x1024xf32>
    %c15_i32_63 = arith.constant 15 : i32
    %103 = tpu.dynamic_rotate %83 by %c15_i32_63 dim 1 : vector<16x1024xf32>, i32 -> vector<16x1024xf32>
    %c2_64 = arith.constant 2 : index
    %c0_65 = arith.constant 0 : index
    %104 = vector.load %arg1[%c2_64, %c0_65] : memref<9x1024xf32, #tpu.memory_space<vmem>>, vector<1x1024xf32>
    %105 = vector.broadcast %104 : vector<1x1024xf32> to vector<16x1024xf32>
    %106 = arith.mulf %103, %105 : vector<16x1024xf32>
    %c2_66 = arith.constant 2 : index
    %c0_67 = arith.constant 0 : index
    %c0_68 = arith.constant 0 : index
    %107 = vector.load %arg4[%c2_66, %c0_67, %c0_68] : memref<9x16x16xbf16, #tpu.memory_space<vmem>>, vector<1x16x16xbf16>
    %108 = vector.shape_cast %107 : vector<1x16x16xbf16> to vector<16x16xbf16>
    %109 = arith.truncf %106 : vector<16x1024xf32> to vector<16x1024xbf16>
    %cst_69 = arith.constant dense<0.000000e+00> : vector<16x1024xf32>
    %110 = tpu.matmul %108, %109, %cst_69 {dimension_numbers = #tpu.dot_dimension_numbers<[1], [0], [0], [1], [0, 0, 1, 1], [], []>} : vector<16x16xbf16>, vector<16x1024xbf16>, vector<16x1024xf32> -> vector<16x1024xf32>
    %111 = arith.addf %102, %110 : vector<16x1024xf32>
    %c1_i32_70 = arith.constant 1 : i32
    %112 = tpu.dynamic_rotate %83 by %c1_i32_70 dim 1 : vector<16x1024xf32>, i32 -> vector<16x1024xf32>
    %c3_71 = arith.constant 3 : index
    %c0_72 = arith.constant 0 : index
    %113 = vector.load %arg1[%c3_71, %c0_72] : memref<9x1024xf32, #tpu.memory_space<vmem>>, vector<1x1024xf32>
    %114 = vector.broadcast %113 : vector<1x1024xf32> to vector<16x1024xf32>
    %115 = arith.mulf %112, %114 : vector<16x1024xf32>
    %c3_73 = arith.constant 3 : index
    %c0_74 = arith.constant 0 : index
    %c0_75 = arith.constant 0 : index
    %116 = vector.load %arg4[%c3_73, %c0_74, %c0_75] : memref<9x16x16xbf16, #tpu.memory_space<vmem>>, vector<1x16x16xbf16>
    %117 = vector.shape_cast %116 : vector<1x16x16xbf16> to vector<16x16xbf16>
    %118 = arith.truncf %115 : vector<16x1024xf32> to vector<16x1024xbf16>
    %cst_76 = arith.constant dense<0.000000e+00> : vector<16x1024xf32>
    %119 = tpu.matmul %117, %118, %cst_76 {dimension_numbers = #tpu.dot_dimension_numbers<[1], [0], [0], [1], [0, 0, 1, 1], [], []>} : vector<16x16xbf16>, vector<16x1024xbf16>, vector<16x1024xf32> -> vector<16x1024xf32>
    %120 = arith.addf %111, %119 : vector<16x1024xf32>
    %c4_77 = arith.constant 4 : index
    %c0_78 = arith.constant 0 : index
    %c0_79 = arith.constant 0 : index
    %121 = vector.load %arg4[%c4_77, %c0_78, %c0_79] : memref<9x16x16xbf16, #tpu.memory_space<vmem>>, vector<1x16x16xbf16>
    %122 = vector.shape_cast %121 : vector<1x16x16xbf16> to vector<16x16xbf16>
    %123 = arith.truncf %83 : vector<16x1024xf32> to vector<16x1024xbf16>
    %cst_80 = arith.constant dense<0.000000e+00> : vector<16x1024xf32>
    %124 = tpu.matmul %122, %123, %cst_80 {dimension_numbers = #tpu.dot_dimension_numbers<[1], [0], [0], [1], [0, 0, 1, 1], [], []>} : vector<16x16xbf16>, vector<16x1024xbf16>, vector<16x1024xf32> -> vector<16x1024xf32>
    %125 = arith.addf %120, %124 : vector<16x1024xf32>
    %c1023_i32_81 = arith.constant 1023 : i32
    %126 = tpu.dynamic_rotate %83 by %c1023_i32_81 dim 1 : vector<16x1024xf32>, i32 -> vector<16x1024xf32>
    %c5_82 = arith.constant 5 : index
    %c0_83 = arith.constant 0 : index
    %127 = vector.load %arg1[%c5_82, %c0_83] : memref<9x1024xf32, #tpu.memory_space<vmem>>, vector<1x1024xf32>
    %128 = vector.broadcast %127 : vector<1x1024xf32> to vector<16x1024xf32>
    %129 = arith.mulf %126, %128 : vector<16x1024xf32>
    %c5_84 = arith.constant 5 : index
    %c0_85 = arith.constant 0 : index
    %c0_86 = arith.constant 0 : index
    %130 = vector.load %arg4[%c5_84, %c0_85, %c0_86] : memref<9x16x16xbf16, #tpu.memory_space<vmem>>, vector<1x16x16xbf16>
    %131 = vector.shape_cast %130 : vector<1x16x16xbf16> to vector<16x16xbf16>
    %132 = arith.truncf %129 : vector<16x1024xf32> to vector<16x1024xbf16>
    %cst_87 = arith.constant dense<0.000000e+00> : vector<16x1024xf32>
    %133 = tpu.matmul %131, %132, %cst_87 {dimension_numbers = #tpu.dot_dimension_numbers<[1], [0], [0], [1], [0, 0, 1, 1], [], []>} : vector<16x16xbf16>, vector<16x1024xbf16>, vector<16x1024xf32> -> vector<16x1024xf32>
    %134 = arith.addf %125, %133 : vector<16x1024xf32>
    %c1009_i32_88 = arith.constant 1009 : i32
    %135 = tpu.dynamic_rotate %83 by %c1009_i32_88 dim 1 : vector<16x1024xf32>, i32 -> vector<16x1024xf32>
    %c6_89 = arith.constant 6 : index
    %c0_90 = arith.constant 0 : index
    %136 = vector.load %arg1[%c6_89, %c0_90] : memref<9x1024xf32, #tpu.memory_space<vmem>>, vector<1x1024xf32>
    %137 = vector.broadcast %136 : vector<1x1024xf32> to vector<16x1024xf32>
    %138 = arith.mulf %135, %137 : vector<16x1024xf32>
    %c6_91 = arith.constant 6 : index
    %c0_92 = arith.constant 0 : index
    %c0_93 = arith.constant 0 : index
    %139 = vector.load %arg4[%c6_91, %c0_92, %c0_93] : memref<9x16x16xbf16, #tpu.memory_space<vmem>>, vector<1x16x16xbf16>
    %140 = vector.shape_cast %139 : vector<1x16x16xbf16> to vector<16x16xbf16>
    %141 = arith.truncf %138 : vector<16x1024xf32> to vector<16x1024xbf16>
    %cst_94 = arith.constant dense<0.000000e+00> : vector<16x1024xf32>
    %142 = tpu.matmul %140, %141, %cst_94 {dimension_numbers = #tpu.dot_dimension_numbers<[1], [0], [0], [1], [0, 0, 1, 1], [], []>} : vector<16x16xbf16>, vector<16x1024xbf16>, vector<16x1024xf32> -> vector<16x1024xf32>
    %143 = arith.addf %134, %142 : vector<16x1024xf32>
    %c1008_i32_95 = arith.constant 1008 : i32
    %144 = tpu.dynamic_rotate %83 by %c1008_i32_95 dim 1 : vector<16x1024xf32>, i32 -> vector<16x1024xf32>
    %c7_96 = arith.constant 7 : index
    %c0_97 = arith.constant 0 : index
    %145 = vector.load %arg1[%c7_96, %c0_97] : memref<9x1024xf32, #tpu.memory_space<vmem>>, vector<1x1024xf32>
    %146 = vector.broadcast %145 : vector<1x1024xf32> to vector<16x1024xf32>
    %147 = arith.mulf %144, %146 : vector<16x1024xf32>
    %c7_98 = arith.constant 7 : index
    %c0_99 = arith.constant 0 : index
    %c0_100 = arith.constant 0 : index
    %148 = vector.load %arg4[%c7_98, %c0_99, %c0_100] : memref<9x16x16xbf16, #tpu.memory_space<vmem>>, vector<1x16x16xbf16>
    %149 = vector.shape_cast %148 : vector<1x16x16xbf16> to vector<16x16xbf16>
    %150 = arith.truncf %147 : vector<16x1024xf32> to vector<16x1024xbf16>
    %cst_101 = arith.constant dense<0.000000e+00> : vector<16x1024xf32>
    %151 = tpu.matmul %149, %150, %cst_101 {dimension_numbers = #tpu.dot_dimension_numbers<[1], [0], [0], [1], [0, 0, 1, 1], [], []>} : vector<16x16xbf16>, vector<16x1024xbf16>, vector<16x1024xf32> -> vector<16x1024xf32>
    %152 = arith.addf %143, %151 : vector<16x1024xf32>
    %c1007_i32_102 = arith.constant 1007 : i32
    %153 = tpu.dynamic_rotate %83 by %c1007_i32_102 dim 1 : vector<16x1024xf32>, i32 -> vector<16x1024xf32>
    %c8_103 = arith.constant 8 : index
    %c0_104 = arith.constant 0 : index
    %154 = vector.load %arg1[%c8_103, %c0_104] : memref<9x1024xf32, #tpu.memory_space<vmem>>, vector<1x1024xf32>
    %155 = vector.broadcast %154 : vector<1x1024xf32> to vector<16x1024xf32>
    %156 = arith.mulf %153, %155 : vector<16x1024xf32>
    %c8_105 = arith.constant 8 : index
    %c0_106 = arith.constant 0 : index
    %c0_107 = arith.constant 0 : index
    %157 = vector.load %arg4[%c8_105, %c0_106, %c0_107] : memref<9x16x16xbf16, #tpu.memory_space<vmem>>, vector<1x16x16xbf16>
    %158 = vector.shape_cast %157 : vector<1x16x16xbf16> to vector<16x16xbf16>
    %159 = arith.truncf %156 : vector<16x1024xf32> to vector<16x1024xbf16>
    %cst_108 = arith.constant dense<0.000000e+00> : vector<16x1024xf32>
    %160 = tpu.matmul %158, %159, %cst_108 {dimension_numbers = #tpu.dot_dimension_numbers<[1], [0], [0], [1], [0, 0, 1, 1], [], []>} : vector<16x16xbf16>, vector<16x1024xbf16>, vector<16x1024xf32> -> vector<16x1024xf32>
    %161 = arith.addf %152, %160 : vector<16x1024xf32>
    %c0_109 = arith.constant 0 : index
    %c0_110 = arith.constant 0 : index
    %162 = vector.load %arg5[%c0_109, %c0_110] : memref<16x1xf32, #tpu.memory_space<vmem>>, vector<16x1xf32>
    %163 = vector.broadcast %162 : vector<16x1xf32> to vector<16x1024xf32>
    %164 = arith.addf %161, %163 : vector<16x1024xf32>
    %cst_111 = arith.constant 0.000000e+00 : f32
    %165 = vector.broadcast %cst_111 : f32 to vector<16x1024xf32>
    %166 = arith.maximumf %164, %165 : vector<16x1024xf32>
    %cst_112 = arith.constant 0.000000e+00 : f32
    %167 = vector.broadcast %cst_112 : f32 to vector<16x1024xf32>
    %c17_i32_113 = arith.constant 17 : i32
    %168 = tpu.dynamic_rotate %166 by %c17_i32_113 dim 1 : vector<16x1024xf32>, i32 -> vector<16x1024xf32>
    %c0_114 = arith.constant 0 : index
    %c0_115 = arith.constant 0 : index
    %169 = vector.load %arg1[%c0_114, %c0_115] : memref<9x1024xf32, #tpu.memory_space<vmem>>, vector<1x1024xf32>
    %170 = vector.broadcast %169 : vector<1x1024xf32> to vector<16x1024xf32>
    %171 = arith.mulf %168, %170 : vector<16x1024xf32>
    %c0_116 = arith.constant 0 : index
    %c0_117 = arith.constant 0 : index
    %c0_118 = arith.constant 0 : index
    %172 = vector.load %arg6[%c0_116, %c0_117, %c0_118] : memref<9x16x16xbf16, #tpu.memory_space<vmem>>, vector<1x16x16xbf16>
    %173 = vector.shape_cast %172 : vector<1x16x16xbf16> to vector<16x16xbf16>
    %174 = arith.truncf %171 : vector<16x1024xf32> to vector<16x1024xbf16>
    %cst_119 = arith.constant dense<0.000000e+00> : vector<16x1024xf32>
    %175 = tpu.matmul %173, %174, %cst_119 {dimension_numbers = #tpu.dot_dimension_numbers<[1], [0], [0], [1], [0, 0, 1, 1], [], []>} : vector<16x16xbf16>, vector<16x1024xbf16>, vector<16x1024xf32> -> vector<16x1024xf32>
    %176 = arith.addf %167, %175 : vector<16x1024xf32>
    %c16_i32_120 = arith.constant 16 : i32
    %177 = tpu.dynamic_rotate %166 by %c16_i32_120 dim 1 : vector<16x1024xf32>, i32 -> vector<16x1024xf32>
    %c1_121 = arith.constant 1 : index
    %c0_122 = arith.constant 0 : index
    %178 = vector.load %arg1[%c1_121, %c0_122] : memref<9x1024xf32, #tpu.memory_space<vmem>>, vector<1x1024xf32>
    %179 = vector.broadcast %178 : vector<1x1024xf32> to vector<16x1024xf32>
    %180 = arith.mulf %177, %179 : vector<16x1024xf32>
    %c1_123 = arith.constant 1 : index
    %c0_124 = arith.constant 0 : index
    %c0_125 = arith.constant 0 : index
    %181 = vector.load %arg6[%c1_123, %c0_124, %c0_125] : memref<9x16x16xbf16, #tpu.memory_space<vmem>>, vector<1x16x16xbf16>
    %182 = vector.shape_cast %181 : vector<1x16x16xbf16> to vector<16x16xbf16>
    %183 = arith.truncf %180 : vector<16x1024xf32> to vector<16x1024xbf16>
    %cst_126 = arith.constant dense<0.000000e+00> : vector<16x1024xf32>
    %184 = tpu.matmul %182, %183, %cst_126 {dimension_numbers = #tpu.dot_dimension_numbers<[1], [0], [0], [1], [0, 0, 1, 1], [], []>} : vector<16x16xbf16>, vector<16x1024xbf16>, vector<16x1024xf32> -> vector<16x1024xf32>
    %185 = arith.addf %176, %184 : vector<16x1024xf32>
    %c15_i32_127 = arith.constant 15 : i32
    %186 = tpu.dynamic_rotate %166 by %c15_i32_127 dim 1 : vector<16x1024xf32>, i32 -> vector<16x1024xf32>
    %c2_128 = arith.constant 2 : index
    %c0_129 = arith.constant 0 : index
    %187 = vector.load %arg1[%c2_128, %c0_129] : memref<9x1024xf32, #tpu.memory_space<vmem>>, vector<1x1024xf32>
    %188 = vector.broadcast %187 : vector<1x1024xf32> to vector<16x1024xf32>
    %189 = arith.mulf %186, %188 : vector<16x1024xf32>
    %c2_130 = arith.constant 2 : index
    %c0_131 = arith.constant 0 : index
    %c0_132 = arith.constant 0 : index
    %190 = vector.load %arg6[%c2_130, %c0_131, %c0_132] : memref<9x16x16xbf16, #tpu.memory_space<vmem>>, vector<1x16x16xbf16>
    %191 = vector.shape_cast %190 : vector<1x16x16xbf16> to vector<16x16xbf16>
    %192 = arith.truncf %189 : vector<16x1024xf32> to vector<16x1024xbf16>
    %cst_133 = arith.constant dense<0.000000e+00> : vector<16x1024xf32>
    %193 = tpu.matmul %191, %192, %cst_133 {dimension_numbers = #tpu.dot_dimension_numbers<[1], [0], [0], [1], [0, 0, 1, 1], [], []>} : vector<16x16xbf16>, vector<16x1024xbf16>, vector<16x1024xf32> -> vector<16x1024xf32>
    %194 = arith.addf %185, %193 : vector<16x1024xf32>
    %c1_i32_134 = arith.constant 1 : i32
    %195 = tpu.dynamic_rotate %166 by %c1_i32_134 dim 1 : vector<16x1024xf32>, i32 -> vector<16x1024xf32>
    %c3_135 = arith.constant 3 : index
    %c0_136 = arith.constant 0 : index
    %196 = vector.load %arg1[%c3_135, %c0_136] : memref<9x1024xf32, #tpu.memory_space<vmem>>, vector<1x1024xf32>
    %197 = vector.broadcast %196 : vector<1x1024xf32> to vector<16x1024xf32>
    %198 = arith.mulf %195, %197 : vector<16x1024xf32>
    %c3_137 = arith.constant 3 : index
    %c0_138 = arith.constant 0 : index
    %c0_139 = arith.constant 0 : index
    %199 = vector.load %arg6[%c3_137, %c0_138, %c0_139] : memref<9x16x16xbf16, #tpu.memory_space<vmem>>, vector<1x16x16xbf16>
    %200 = vector.shape_cast %199 : vector<1x16x16xbf16> to vector<16x16xbf16>
    %201 = arith.truncf %198 : vector<16x1024xf32> to vector<16x1024xbf16>
    %cst_140 = arith.constant dense<0.000000e+00> : vector<16x1024xf32>
    %202 = tpu.matmul %200, %201, %cst_140 {dimension_numbers = #tpu.dot_dimension_numbers<[1], [0], [0], [1], [0, 0, 1, 1], [], []>} : vector<16x16xbf16>, vector<16x1024xbf16>, vector<16x1024xf32> -> vector<16x1024xf32>
    %203 = arith.addf %194, %202 : vector<16x1024xf32>
    %c4_141 = arith.constant 4 : index
    %c0_142 = arith.constant 0 : index
    %c0_143 = arith.constant 0 : index
    %204 = vector.load %arg6[%c4_141, %c0_142, %c0_143] : memref<9x16x16xbf16, #tpu.memory_space<vmem>>, vector<1x16x16xbf16>
    %205 = vector.shape_cast %204 : vector<1x16x16xbf16> to vector<16x16xbf16>
    %206 = arith.truncf %166 : vector<16x1024xf32> to vector<16x1024xbf16>
    %cst_144 = arith.constant dense<0.000000e+00> : vector<16x1024xf32>
    %207 = tpu.matmul %205, %206, %cst_144 {dimension_numbers = #tpu.dot_dimension_numbers<[1], [0], [0], [1], [0, 0, 1, 1], [], []>} : vector<16x16xbf16>, vector<16x1024xbf16>, vector<16x1024xf32> -> vector<16x1024xf32>
    %208 = arith.addf %203, %207 : vector<16x1024xf32>
    %c1023_i32_145 = arith.constant 1023 : i32
    %209 = tpu.dynamic_rotate %166 by %c1023_i32_145 dim 1 : vector<16x1024xf32>, i32 -> vector<16x1024xf32>
    %c5_146 = arith.constant 5 : index
    %c0_147 = arith.constant 0 : index
    %210 = vector.load %arg1[%c5_146, %c0_147] : memref<9x1024xf32, #tpu.memory_space<vmem>>, vector<1x1024xf32>
    %211 = vector.broadcast %210 : vector<1x1024xf32> to vector<16x1024xf32>
    %212 = arith.mulf %209, %211 : vector<16x1024xf32>
    %c5_148 = arith.constant 5 : index
    %c0_149 = arith.constant 0 : index
    %c0_150 = arith.constant 0 : index
    %213 = vector.load %arg6[%c5_148, %c0_149, %c0_150] : memref<9x16x16xbf16, #tpu.memory_space<vmem>>, vector<1x16x16xbf16>
    %214 = vector.shape_cast %213 : vector<1x16x16xbf16> to vector<16x16xbf16>
    %215 = arith.truncf %212 : vector<16x1024xf32> to vector<16x1024xbf16>
    %cst_151 = arith.constant dense<0.000000e+00> : vector<16x1024xf32>
    %216 = tpu.matmul %214, %215, %cst_151 {dimension_numbers = #tpu.dot_dimension_numbers<[1], [0], [0], [1], [0, 0, 1, 1], [], []>} : vector<16x16xbf16>, vector<16x1024xbf16>, vector<16x1024xf32> -> vector<16x1024xf32>
    %217 = arith.addf %208, %216 : vector<16x1024xf32>
    %c1009_i32_152 = arith.constant 1009 : i32
    %218 = tpu.dynamic_rotate %166 by %c1009_i32_152 dim 1 : vector<16x1024xf32>, i32 -> vector<16x1024xf32>
    %c6_153 = arith.constant 6 : index
    %c0_154 = arith.constant 0 : index
    %219 = vector.load %arg1[%c6_153, %c0_154] : memref<9x1024xf32, #tpu.memory_space<vmem>>, vector<1x1024xf32>
    %220 = vector.broadcast %219 : vector<1x1024xf32> to vector<16x1024xf32>
    %221 = arith.mulf %218, %220 : vector<16x1024xf32>
    %c6_155 = arith.constant 6 : index
    %c0_156 = arith.constant 0 : index
    %c0_157 = arith.constant 0 : index
    %222 = vector.load %arg6[%c6_155, %c0_156, %c0_157] : memref<9x16x16xbf16, #tpu.memory_space<vmem>>, vector<1x16x16xbf16>
    %223 = vector.shape_cast %222 : vector<1x16x16xbf16> to vector<16x16xbf16>
    %224 = arith.truncf %221 : vector<16x1024xf32> to vector<16x1024xbf16>
    %cst_158 = arith.constant dense<0.000000e+00> : vector<16x1024xf32>
    %225 = tpu.matmul %223, %224, %cst_158 {dimension_numbers = #tpu.dot_dimension_numbers<[1], [0], [0], [1], [0, 0, 1, 1], [], []>} : vector<16x16xbf16>, vector<16x1024xbf16>, vector<16x1024xf32> -> vector<16x1024xf32>
    %226 = arith.addf %217, %225 : vector<16x1024xf32>
    %c1008_i32_159 = arith.constant 1008 : i32
    %227 = tpu.dynamic_rotate %166 by %c1008_i32_159 dim 1 : vector<16x1024xf32>, i32 -> vector<16x1024xf32>
    %c7_160 = arith.constant 7 : index
    %c0_161 = arith.constant 0 : index
    %228 = vector.load %arg1[%c7_160, %c0_161] : memref<9x1024xf32, #tpu.memory_space<vmem>>, vector<1x1024xf32>
    %229 = vector.broadcast %228 : vector<1x1024xf32> to vector<16x1024xf32>
    %230 = arith.mulf %227, %229 : vector<16x1024xf32>
    %c7_162 = arith.constant 7 : index
    %c0_163 = arith.constant 0 : index
    %c0_164 = arith.constant 0 : index
    %231 = vector.load %arg6[%c7_162, %c0_163, %c0_164] : memref<9x16x16xbf16, #tpu.memory_space<vmem>>, vector<1x16x16xbf16>
    %232 = vector.shape_cast %231 : vector<1x16x16xbf16> to vector<16x16xbf16>
    %233 = arith.truncf %230 : vector<16x1024xf32> to vector<16x1024xbf16>
    %cst_165 = arith.constant dense<0.000000e+00> : vector<16x1024xf32>
    %234 = tpu.matmul %232, %233, %cst_165 {dimension_numbers = #tpu.dot_dimension_numbers<[1], [0], [0], [1], [0, 0, 1, 1], [], []>} : vector<16x16xbf16>, vector<16x1024xbf16>, vector<16x1024xf32> -> vector<16x1024xf32>
    %235 = arith.addf %226, %234 : vector<16x1024xf32>
    %c1007_i32_166 = arith.constant 1007 : i32
    %236 = tpu.dynamic_rotate %166 by %c1007_i32_166 dim 1 : vector<16x1024xf32>, i32 -> vector<16x1024xf32>
    %c8_167 = arith.constant 8 : index
    %c0_168 = arith.constant 0 : index
    %237 = vector.load %arg1[%c8_167, %c0_168] : memref<9x1024xf32, #tpu.memory_space<vmem>>, vector<1x1024xf32>
    %238 = vector.broadcast %237 : vector<1x1024xf32> to vector<16x1024xf32>
    %239 = arith.mulf %236, %238 : vector<16x1024xf32>
    %c8_169 = arith.constant 8 : index
    %c0_170 = arith.constant 0 : index
    %c0_171 = arith.constant 0 : index
    %240 = vector.load %arg6[%c8_169, %c0_170, %c0_171] : memref<9x16x16xbf16, #tpu.memory_space<vmem>>, vector<1x16x16xbf16>
    %241 = vector.shape_cast %240 : vector<1x16x16xbf16> to vector<16x16xbf16>
    %242 = arith.truncf %239 : vector<16x1024xf32> to vector<16x1024xbf16>
    %cst_172 = arith.constant dense<0.000000e+00> : vector<16x1024xf32>
    %243 = tpu.matmul %241, %242, %cst_172 {dimension_numbers = #tpu.dot_dimension_numbers<[1], [0], [0], [1], [0, 0, 1, 1], [], []>} : vector<16x16xbf16>, vector<16x1024xbf16>, vector<16x1024xf32> -> vector<16x1024xf32>
    %244 = arith.addf %235, %243 : vector<16x1024xf32>
    %c0_173 = arith.constant 0 : index
    %c0_174 = arith.constant 0 : index
    %245 = vector.load %arg7[%c0_173, %c0_174] : memref<16x1xf32, #tpu.memory_space<vmem>>, vector<16x1xf32>
    %246 = vector.broadcast %245 : vector<16x1xf32> to vector<16x1024xf32>
    %247 = arith.addf %244, %246 : vector<16x1024xf32>
    %248 = arith.addf %247, %83 : vector<16x1024xf32>
    %cst_175 = arith.constant 0.000000e+00 : f32
    %249 = vector.broadcast %cst_175 : f32 to vector<16x1024xf32>
    %250 = arith.maximumf %248, %249 : vector<16x1024xf32>
    %c0_176 = arith.constant 0 : index
    %c0_177 = arith.constant 0 : index
    %251 = vector.load %arg8[%c0_176, %c0_177] : memref<4x1024xf32, #tpu.memory_space<vmem>>, vector<4x1024xf32>
    %cst_178 = arith.constant dense<0.000000e+00> : vector<4x16xf32>
    %252 = tpu.matmul %251, %250, %cst_178 {dimension_numbers = #tpu.dot_dimension_numbers<[1], [1], [0], [0], [0, 0, 1, 0], [], []>} : vector<4x1024xf32>, vector<16x1024xf32>, vector<4x16xf32> -> vector<4x16xf32>
    %c0_179 = arith.constant 0 : index
    %c0_180 = arith.constant 0 : index
    %253 = vector.load %arg9[%c0_179, %c0_180] : memref<16x64xf32, #tpu.memory_space<vmem>>, vector<16x64xf32>
    %cst_181 = arith.constant dense<0.000000e+00> : vector<4x64xf32>
    %254 = tpu.matmul %252, %253, %cst_181 {dimension_numbers = #tpu.dot_dimension_numbers<[1], [0], [0], [1], [0, 0, 1, 1], [], []>} : vector<4x16xf32>, vector<16x64xf32>, vector<4x64xf32> -> vector<4x64xf32>
    %c0_182 = arith.constant 0 : index
    %c0_183 = arith.constant 0 : index
    %255 = vector.load %arg10[%c0_182, %c0_183] : memref<1x64xf32, #tpu.memory_space<vmem>>, vector<1x64xf32>
    %256 = vector.broadcast %255 : vector<1x64xf32> to vector<4x64xf32>
    %257 = arith.addf %254, %256 : vector<4x64xf32>
    %c0_184 = arith.constant 0 : index
    %c0_185 = arith.constant 0 : index
    %258 = vector.load %arg25[%c0_184, %c0_185] : memref<4x64xf32, #tpu.memory_space<vmem>>, vector<4x64xf32>
    tpu.vector_store %arg25[%c0_184, %c0_185], %257 {strides = array<i32>} : memref<4x64xf32, #tpu.memory_space<vmem>>, vector<4x64xf32>,
    %c0_186 = arith.constant 0 : index
    %c0_187 = arith.constant 0 : index
    %259 = vector.load %arg11[%c0_186, %c0_187] : memref<64x32xf32, #tpu.memory_space<vmem>>, vector<64x32xf32>
    %cst_188 = arith.constant dense<0.000000e+00> : vector<4x32xf32>
    %260 = tpu.matmul %257, %259, %cst_188 {dimension_numbers = #tpu.dot_dimension_numbers<[1], [0], [0], [1], [0, 0, 1, 1], [], []>} : vector<4x64xf32>, vector<64x32xf32>, vector<4x32xf32> -> vector<4x32xf32>
    %c0_189 = arith.constant 0 : index
    %c0_190 = arith.constant 0 : index
    %261 = vector.load %arg12[%c0_189, %c0_190] : memref<1x32xf32, #tpu.memory_space<vmem>>, vector<1x32xf32>
    %262 = vector.broadcast %261 : vector<1x32xf32> to vector<4x32xf32>
    %263 = arith.addf %260, %262 : vector<4x32xf32>
    %cst_191 = arith.constant 0.000000e+00 : f32
    %264 = vector.broadcast %cst_191 : f32 to vector<4x32xf32>
    %265 = arith.maximumf %263, %264 : vector<4x32xf32>
    %c0_192 = arith.constant 0 : index
    %c0_193 = arith.constant 0 : index
    %266 = vector.load %arg13[%c0_192, %c0_193] : memref<32x32xf32, #tpu.memory_space<vmem>>, vector<32x32xf32>
    %cst_194 = arith.constant dense<0.000000e+00> : vector<4x32xf32>
    %267 = tpu.matmul %265, %266, %cst_194 {dimension_numbers = #tpu.dot_dimension_numbers<[1], [0], [0], [1], [0, 0, 1, 1], [], []>} : vector<4x32xf32>, vector<32x32xf32>, vector<4x32xf32> -> vector<4x32xf32>
    %c0_195 = arith.constant 0 : index
    %c0_196 = arith.constant 0 : index
    %268 = vector.load %arg14[%c0_195, %c0_196] : memref<1x32xf32, #tpu.memory_space<vmem>>, vector<1x32xf32>
    %269 = vector.broadcast %268 : vector<1x32xf32> to vector<4x32xf32>
    %270 = arith.addf %267, %269 : vector<4x32xf32>
    %c0_197 = arith.constant 0 : index
    %c0_198 = arith.constant 0 : index
    %271 = vector.load %arg26[%c0_197, %c0_198] : memref<4x32xf32, #tpu.memory_space<vmem>>, vector<4x32xf32>
    tpu.vector_store %arg26[%c0_197, %c0_198], %270 {strides = array<i32>} : memref<4x32xf32, #tpu.memory_space<vmem>>, vector<4x32xf32>,
    %c0_199 = arith.constant 0 : index
    %c0_200 = arith.constant 0 : index
    %272 = vector.load %arg15[%c0_199, %c0_200] : memref<32x16xf32, #tpu.memory_space<vmem>>, vector<32x16xf32>
    %cst_201 = arith.constant dense<0.000000e+00> : vector<4x16xf32>
    %273 = tpu.matmul %270, %272, %cst_201 {dimension_numbers = #tpu.dot_dimension_numbers<[1], [0], [0], [1], [0, 0, 1, 1], [], []>} : vector<4x32xf32>, vector<32x16xf32>, vector<4x16xf32> -> vector<4x16xf32>
    %c0_202 = arith.constant 0 : index
    %c0_203 = arith.constant 0 : index
    %274 = vector.load %arg16[%c0_202, %c0_203] : memref<1x16xf32, #tpu.memory_space<vmem>>, vector<1x16xf32>
    %275 = vector.broadcast %274 : vector<1x16xf32> to vector<4x16xf32>
    %276 = arith.addf %273, %275 : vector<4x16xf32>
    %cst_204 = arith.constant 0.000000e+00 : f32
    %277 = vector.broadcast %cst_204 : f32 to vector<4x16xf32>
    %278 = arith.maximumf %276, %277 : vector<4x16xf32>
    %c0_205 = arith.constant 0 : index
    %c0_206 = arith.constant 0 : index
    %279 = vector.load %arg17[%c0_205, %c0_206] : memref<16x32xf32, #tpu.memory_space<vmem>>, vector<16x32xf32>
    %cst_207 = arith.constant dense<0.000000e+00> : vector<4x32xf32>
    %280 = tpu.matmul %278, %279, %cst_207 {dimension_numbers = #tpu.dot_dimension_numbers<[1], [0], [0], [1], [0, 0, 1, 1], [], []>} : vector<4x16xf32>, vector<16x32xf32>, vector<4x32xf32> -> vector<4x32xf32>
    %c0_208 = arith.constant 0 : index
    %c0_209 = arith.constant 0 : index
    %281 = vector.load %arg18[%c0_208, %c0_209] : memref<1x32xf32, #tpu.memory_space<vmem>>, vector<1x32xf32>
    %282 = vector.broadcast %281 : vector<1x32xf32> to vector<4x32xf32>
    %283 = arith.addf %280, %282 : vector<4x32xf32>
    %c0_210 = arith.constant 0 : index
    %c0_211 = arith.constant 0 : index
    %284 = vector.load %arg27[%c0_210, %c0_211] : memref<4x32xf32, #tpu.memory_space<vmem>>, vector<4x32xf32>
    tpu.vector_store %arg27[%c0_210, %c0_211], %283 {strides = array<i32>} : memref<4x32xf32, #tpu.memory_space<vmem>>, vector<4x32xf32>,
    %c0_212 = arith.constant 0 : index
    %c0_213 = arith.constant 0 : index
    %285 = vector.load %arg19[%c0_212, %c0_213] : memref<64x48xf32, #tpu.memory_space<vmem>>, vector<64x48xf32>
    %cst_214 = arith.constant dense<0.000000e+00> : vector<4x48xf32>
    %286 = tpu.matmul %257, %285, %cst_214 {dimension_numbers = #tpu.dot_dimension_numbers<[1], [0], [0], [1], [0, 0, 1, 1], [], []>} : vector<4x64xf32>, vector<64x48xf32>, vector<4x48xf32> -> vector<4x48xf32>
    %c0_215 = arith.constant 0 : index
    %c0_216 = arith.constant 0 : index
    %287 = vector.load %arg20[%c0_215, %c0_216] : memref<1x48xf32, #tpu.memory_space<vmem>>, vector<1x48xf32>
    %288 = vector.broadcast %287 : vector<1x48xf32> to vector<4x48xf32>
    %289 = arith.addf %286, %288 : vector<4x48xf32>
    %cst_217 = arith.constant 0.000000e+00 : f32
    %290 = vector.broadcast %cst_217 : f32 to vector<4x48xf32>
    %291 = arith.maximumf %289, %290 : vector<4x48xf32>
    %c0_218 = arith.constant 0 : index
    %c0_219 = arith.constant 0 : index
    %292 = vector.load %arg21[%c0_218, %c0_219] : memref<48x96xf32, #tpu.memory_space<vmem>>, vector<48x96xf32>
    %cst_220 = arith.constant dense<0.000000e+00> : vector<4x96xf32>
    %293 = tpu.matmul %291, %292, %cst_220 {dimension_numbers = #tpu.dot_dimension_numbers<[1], [0], [0], [1], [0, 0, 1, 1], [], []>} : vector<4x48xf32>, vector<48x96xf32>, vector<4x96xf32> -> vector<4x96xf32>
    %c0_221 = arith.constant 0 : index
    %c0_222 = arith.constant 0 : index
    %294 = vector.load %arg22[%c0_221, %c0_222] : memref<1x96xf32, #tpu.memory_space<vmem>>, vector<1x96xf32>
    %295 = vector.broadcast %294 : vector<1x96xf32> to vector<4x96xf32>
    %296 = arith.addf %293, %295 : vector<4x96xf32>
    %cst_223 = arith.constant 0.000000e+00 : f32
    %297 = vector.broadcast %cst_223 : f32 to vector<4x96xf32>
    %298 = arith.maximumf %296, %297 : vector<4x96xf32>
    %c0_224 = arith.constant 0 : index
    %c0_225 = arith.constant 0 : index
    %299 = vector.load %arg23[%c0_224, %c0_225] : memref<96x768xf32, #tpu.memory_space<vmem>>, vector<96x768xf32>
    %cst_226 = arith.constant dense<0.000000e+00> : vector<4x768xf32>
    %300 = tpu.matmul %298, %299, %cst_226 {dimension_numbers = #tpu.dot_dimension_numbers<[1], [0], [0], [1], [0, 0, 1, 1], [], []>} : vector<4x96xf32>, vector<96x768xf32>, vector<4x768xf32> -> vector<4x768xf32>
    %c0_227 = arith.constant 0 : index
    %c0_228 = arith.constant 0 : index
    %301 = vector.load %arg24[%c0_227, %c0_228] : memref<1x768xf32, #tpu.memory_space<vmem>>, vector<1x768xf32>
    %302 = vector.broadcast %301 : vector<1x768xf32> to vector<4x768xf32>
    %303 = arith.addf %300, %302 : vector<4x768xf32>
    %304 = arith.negf %303 : vector<4x768xf32>
    %305 = math.exp %304 : vector<4x768xf32>
    %cst_229 = arith.constant 1.000000e+00 : f32
    %306 = vector.broadcast %cst_229 : f32 to vector<4x768xf32>
    %307 = arith.addf %306, %305 : vector<4x768xf32>
    %308 = arith.divf %306, %307 : vector<4x768xf32>
    %c0_230 = arith.constant 0 : index
    %c0_231 = arith.constant 0 : index
    %309 = vector.load %arg28[%c0_230, %c0_231] : memref<4x768xf32, #tpu.memory_space<vmem>>, vector<4x768xf32>
    tpu.vector_store %arg28[%c0_230, %c0_231], %308 {strides = array<i32>} : memref<4x768xf32, #tpu.memory_space<vmem>>, vector<4x768xf32>,
    return
  }
}

</mosaic_0001>

<bundles_post_ra>
// kernel: resnet_sim_ae_forward.1
= control target key start
LH: loop header
LB: loop body
LE: loop exit
PB: predicated region body
PF: predicated region fallthrough
CT: control target
= control target key end

     0   :  { %v13862_v8 = vmov 0   ;;  %v117_v9 = vlaneseq  ;;  %vm288_vm0 = vcmask 1040384   ;;  %vm289_vm2 = vcmask 1041408   ;;  %s13819_s0 = inlined_call_operand.vmem [shape: f32[3,1024], index: 0, kind: input, shape index: {}]   ;;  %s13820_s2 = inlined_call_operand.vmem [shape: bf16[9,16,3], index: 2, kind: input, shape index: {}]   ;;  %s13821_s1 = inlined_call_operand.vmem [shape: f32[9,1024], index: 1, kind: input, shape index: {}]   ;;  %s13822_s3 = inlined_call_operand.vmem [shape: f32[16,1], index: 3, kind: input, shape index: {}]   ;;  %s13823_s4 = inlined_call_operand.vmem [shape: bf16[9,16,16], index: 4, kind: input, shape index: {}]   ;;  %s13824_s5 = inlined_call_operand.vmem [shape: f32[16,1], index: 5, kind: input, shape index: {}]   ;;  %s13825_s6 = inlined_call_operand.vmem [shape: bf16[9,16,16], index: 6, kind: input, shape index: {}]   ;;  %s13826_s7 = inlined_call_operand.vmem [shape: f32[16,1], index: 7, kind: input, shape index: {}]   ;;  %s13827_s8 = inlined_call_operand.vmem [shape: f32[4,1024], index: 8, kind: input, shape index: {}]   ;;  %s13828_s9 = inlined_call_operand.vmem [shape: f32[16,64], index: 9, kind: input, shape index: {}]   ;;  %s13829_s11 = inlined_call_operand.vmem [shape: f32[64,32], index: 11, kind: input, shape index: {}]   ;;  %s13830_s13 = inlined_call_operand.vmem [shape: f32[32,32], index: 13, kind: input, shape index: {}]   ;;  %s13831_s10 = inlined_call_operand.vmem [shape: f32[1,64], index: 10, kind: input, shape index: {}]   ;;  %s13832_s25 = inlined_call_operand.vmem [shape: f32[4,64], index: 25, kind: output, shape index: {0}]   ;;  %s13833_s15 = inlined_call_operand.vmem [shape: f32[32,16], index: 15, kind: input, shape index: {}]   ;;  %s13834_s12 = inlined_call_operand.vmem [shape: f32[1,32], index: 12, kind: input, shape index: {}]   ;;  %s13835_s14 = inlined_call_operand.vmem [shape: f32[1,32], index: 14, kind: input, shape index: {}]   ;;  %s13836_s26 = inlined_call_operand.vmem [shape: f32[4,32], index: 26, kind: output, shape index: {1}]   ;;  %s13837_s17 = inlined_call_operand.vmem [shape: f32[16,32], index: 17, kind: input, shape index: {}]   ;;  %s13838_s16 = inlined_call_operand.vmem [shape: f32[1,16], index: 16, kind: input, shape index: {}]   ;;  %s13839_s19 = inlined_call_operand.vmem [shape: f32[64,48], index: 19, kind: input, shape index: {}]   ;;  %s13840_s21 = inlined_call_operand.vmem [shape: f32[48,96], index: 21, kind: input, shape index: {}]   ;;  %s13841_s23 = inlined_call_operand.vmem [shape: f32[96,768], index: 23, kind: input, shape index: {}]   ;;  %s13842_s18 = inlined_call_operand.vmem [shape: f32[1,32], index: 18, kind: input, shape index: {}]   ;;  %s13843_s27 = inlined_call_operand.vmem [shape: f32[4,32], index: 27, kind: output, shape index: {2}]   ;;  %s13844_s20 = inlined_call_operand.vmem [shape: f32[1,48], index: 20, kind: input, shape index: {}]   ;;  %s13845_s22 = inlined_call_operand.vmem [shape: f32[1,96], index: 22, kind: input, shape index: {}]   ;;  %s13846_s24 = inlined_call_operand.vmem [shape: f32[1,768], index: 24, kind: input, shape index: {}]   ;;  %s13847_s28 = inlined_call_operand.vmem [shape: f32[4,768], index: 28, kind: output, shape index: {3}]  }
   0x1   :  { %14109 = sst [smem:[#allocation110_spill]] %s13819_s0  ;;  %391 = vmatprep.mubr.bf16.mxu1 %v13862_v8  ;;  %348 = vmatprep.mubr.bf16.mxu0 %v13862_v8  ;;  %s13872_s0 = smov 111   ;;  %v9859_v28 = vmov 65535   ;;  %vm284_vm4 = vcmask 23552   ;;  %vm2975_vm11 = vcmask 130048   ;;  %vm9861_vm12 = vmmov 0  }
   0x2   :  { %14110 = sst [smem:[#allocation111_spill]] %s13820_s2  ;;  %9789 = vset.pattern.permute.xlu0 %v13862_v8  ;;  %9790 = vset.pattern.permute.xlu1 %v13862_v8  ;;  %s9855_s2 = smov 127   ;;  %v133_v10 = vshrl.u32 %v117_v9, 7  ;;  %v10166_v13 = vand.u32 127, %v117_v9  ;;  %v290_v29 = vsel %vm288_vm0, 4294967295, %v9859_v28  ;;  %vm7988_vm13 = vcmask 519168  }
   0x3   :  { %14111 = sst [smem:[#allocation112_spill]] %s13821_s1  ;;  %s9852_s1 = smov 17   ;;  %v10225_v41 = vsel %vm289_vm2, %v290_v29, 0  ;;  %vm8005_vm14 = vcmask 523264   ;;  %vm8091_vm15 = vcmask 261120   ;;  %vm8165_vm0 = vcmask 257024  }
   0x4   :  { %14112 = sst [smem:[#allocation113_spill]] %s13822_s3  ;;  %s14123_s30 = sld [smem:[#allocation112_spill]]  ;;  %v10172_v15 = vsub.s32 3, %v133_v10  ;;  %v10174_v16 = vsub.s32 1, %v133_v10  ;;  %v10176_v17 = vsub.s32 2, %v133_v10  ;;  %v10178_v20 = vsub.s32 7, %v133_v10 }
   0x5   :  { %14113 = sst [smem:[#allocation114_spill]] %s13823_s4  ;;  %s9856_s4 = smov 113   ;;  %vm206_vm1 = vcmp.lt.s32.totalorder %v10166_v13, 16  ;;  %v10194_v24 = vsub.s32 4, %v133_v10  ;;  %v10196_v25 = vsub.s32 0, %v133_v10  ;;  %v10198_v30 = vsub.s32 5, %v133_v10 }
   0x6   :  { %14114 = sst [smem:[#allocation115_spill]] %s13824_s5  ;;  %14124 = vst [vmem:[#allocation2_spill] sm:$0xff] %v10172_v15  ;;  %14125 = vst [vmem:[#allocation3_spill] sm:$0xff] %v10174_v16  ;;  %v10200_v31 = vsub.s32 6, %v133_v10  ;;  %vm119_vm3 = vcmp.lt.s32.totalorder %v10166_v13, 17  ;;  %vm708_vm5 = vcmp.lt.s32.totalorder %v10166_v13, 15 }
   0x7   :  { %14115 = sst [smem:[#allocation116_spill]] %s13825_s6  ;;  %s9850_s6 = smov 16   ;;  %14126 = vst [vmem:[#allocation4_spill] sm:$0xff] %v10176_v17  ;;  %14130 = vst [vmem:[#allocation8_spill] sm:$0xff] %v10194_v24  ;;  %vm1017_vm6 = vcmp.lt.s32.totalorder %v10166_v13, 1  ;;  %vm1557_vm7 = vcmp.lt.s32.totalorder %v10166_v13, 127 }
   0x8   :  { %14116 = sst [smem:[#allocation117_spill]] %s13826_s7  ;;  %s9853_s7 = smov 15   ;;  %14131 = vst [vmem:[#allocation9_spill] sm:$0xff] %v10196_v25  ;;  %14132 = vst [vmem:[#allocation10_spill] sm:$0xff] %v10198_v30  ;;  %vm1866_vm8 = vcmp.lt.s32.totalorder %v10166_v13, 113  ;;  %vm2175_vm9 = vcmp.lt.s32.totalorder %v10166_v13, 112 }
   0x9   :  { %14117 = sst [smem:[#allocation118_spill]] %s13827_s8  ;;  %s9857_s8 = smov 112   ;;  %vm2484_vm10 = vcmp.lt.s32.totalorder %v10166_v13, 111  ;;  %vm8613_vm2 = vcmask 785408  }
   0xa   :  { %14118 = sst [smem:[#allocation119_spill]] %s13828_s9  ;;  %s14122_s9 = sld [smem:[#allocation110_spill]]  ;;  %v8897_v11 = vld [vmem:[%s14123_s30 + $0x1] ss:$8 sm:$0xf] }
   0xb   :  { %14119 = sst [smem:[#allocation120_spill]] %s13829_s11  ;;  %v8898_v12 = vld [vmem:[%s14123_s30 + $0x1] ss:$8 sm:$0xf0]  ;;  %s14144_s3 = sld [smem:[#allocation113_spill]] }
   0xc   :  { %14120 = sst [smem:[#allocation121_spill]] %s13830_s13  ;;  %v218_v14 = vor.u32 %v8898_v12, %v8897_v11  ;;  %v128_v36 = vld [vmem:[%s14123_s30] ss:$8 sm:$0xf]  ;;  %s14135_s13 = sld [smem:[#allocation111_spill]] }
   0xd   :  { %14121 = sst [smem:[#allocation122_spill]] %s13831_s10  ;;  %s9854_s10 = smov 1   ;;  %v129_v37 = vld [vmem:[%s14123_s30] ss:$8 sm:$0xf0] }
   0xe   :  { %v10184_v21 = vrot.slane %v218_v14, %v10172_v15  ;;  %v10187_v22 = vrot.slane %v218_v14, %v10174_v16  ;;  %v10190_v23 = vrot.slane %v218_v14, %v10176_v17  ;;  %v10205_v33 = vrot.slane %v218_v14, %v10178_v20  ;;  %s14217_s5 = sld [smem:[#allocation114_spill]]  ;;  %s14447_s29 = sld [smem:[#allocation120_spill]] }
   0xf   :  { %v10228_v42 = vrot.slane %v218_v14, %v10194_v24  ;;  %v10231_v43 = vrot.slane %v218_v14, %v10196_v25  ;;  %v10233_v49 = vor.u32 %v129_v37, %v128_v36  ;;  %v10240_v52 = vrot.slane %v218_v14, %v10198_v30 }
  0x10   :  { %v10011_v0 = vld [vmem:[%s14122_s9 + $0x8] sm:$0x77]  ;;  %v10016_v1 = vld [vmem:[%s14122_s9] sm:$0x77]  ;;  %v10033_v4 = vld [vmem:[%s14122_s9 + $0x18] sm:$0x77]  ;;  %v10243_v53 = vrot.slane %v218_v14, %v10200_v31 }
  0x11   :  { %194 = vrot.lane.b32.xlu0 %v10011_v0, %s9850_s6  ;;  %190 = vrot.lane.b32.xlu1 %v10016_v1, %s9850_s6  ;;  %v10024_v2 = vcombine.high %v10011_v0, %v10011_v0  ;;  %v10028_v3 = vcombine.high %v10016_v1, %v10016_v1  ;;  %v10041_v5 = vcombine.high %v10033_v4, %v10033_v4  ;;  %v10046_v6 = vld [vmem:[%s14122_s9 + $0x10] sm:$0x77]  ;;  %s14227_s9 = smov 111  }
  0x12   :  { %v10054_v7 = vcombine.high %v10046_v6, %v10046_v6  ;;  %14127 = vst [vmem:[#allocation5_spill] sm:$0xff] %v10184_v21  ;;  %14128 = vst [vmem:[#allocation6_spill] sm:$0xff] %v10187_v22  ;;  %v10258_v62 = vld [vmem:[%s14135_s13 + $0x8] sm:$0xff]   ;;  %v10262_v63 = vrot.slane %v10233_v49, %v10172_v15  ;;  %v10281_v37 = vrot.slane %v10233_v49, %v10174_v16 }
  0x13   :  { %14129 = vst [vmem:[#allocation7_spill] sm:$0xff] %v10190_v23  ;;  %14133 = vst [vmem:[#allocation11_spill] sm:$0xff] %v10205_v33 }
  0x14   :  { %14134 = vst [vmem:[#allocation12_spill] sm:$0xff] %v10231_v43  ;;  %14136 = vst [vmem:[#allocation13_spill] sm:$0xff] %v10281_v37 }
  0x15   :  { %196 = vrot.lane.b32.xlu0 %v10024_v2, %s9850_s6  ;;  %192 = vrot.lane.b32.xlu1 %v10028_v3, %s9850_s6 }
  0x19   :  { %204 = vrot.lane.b32.xlu0 %v10041_v5, %s9850_s6  ;;  %202 = vrot.lane.b32.xlu1 %v10033_v4, %s9850_s6 }
  0x1d   :  { %198 = vrot.lane.b32.xlu0 %v10046_v6, %s9850_s6  ;;  %200 = vrot.lane.b32.xlu1 %v10054_v7, %s9850_s6 }
  0x21   :  { %105 = vrot.lane.b32.xlu0 %v10011_v0, %s9852_s1  ;;  %107 = vrot.lane.b32.xlu1 %v10024_v2, %s9852_s1 }
  0x25   :  { %101 = vrot.lane.b32.xlu0 %v10016_v1, %s9852_s1  ;;  %103 = vrot.lane.b32.xlu1 %v10028_v3, %s9852_s1 }
  0x29   :  { %115 = vrot.lane.b32.xlu0 %v10041_v5, %s9852_s1  ;;  %113 = vrot.lane.b32.xlu1 %v10033_v4, %s9852_s1 }
  0x2d   :  { %109 = vrot.lane.b32.xlu0 %v10046_v6, %s9852_s1  ;;  %111 = vrot.lane.b32.xlu1 %v10054_v7, %s9852_s1 }
  0x31   :  { %696 = vrot.lane.b32.xlu0 %v10011_v0, %s9853_s7  ;;  %698 = vrot.lane.b32.xlu1 %v10024_v2, %s9853_s7 }
  0x35   :  { %692 = vrot.lane.b32.xlu0 %v10016_v1, %s9853_s7  ;;  %694 = vrot.lane.b32.xlu1 %v10028_v3, %s9853_s7 }
  0x39   :  { %706 = vrot.lane.b32.xlu0 %v10041_v5, %s9853_s7  ;;  %704 = vrot.lane.b32.xlu1 %v10033_v4, %s9853_s7 }
  0x3d   :  { %700 = vrot.lane.b32.xlu0 %v10046_v6, %s9853_s7  ;;  %702 = vrot.lane.b32.xlu1 %v10054_v7, %s9853_s7 }
  0x41   :  { %1005 = vrot.lane.b32.xlu0 %v10011_v0, %s9854_s10  ;;  %1007 = vrot.lane.b32.xlu1 %v10024_v2, %s9854_s10 }
  0x45   :  { %1001 = vrot.lane.b32.xlu0 %v10016_v1, %s9854_s10  ;;  %1003 = vrot.lane.b32.xlu1 %v10028_v3, %s9854_s10 }
  0x49   :  { %1015 = vrot.lane.b32.xlu0 %v10041_v5, %s9854_s10  ;;  %1013 = vrot.lane.b32.xlu1 %v10033_v4, %s9854_s10 }
  0x4d   :  { %1009 = vrot.lane.b32.xlu0 %v10046_v6, %s9854_s10  ;;  %1011 = vrot.lane.b32.xlu1 %v10054_v7, %s9854_s10 }
  0x51   :  { %1547 = vrot.lane.b32.xlu0 %v10024_v2, %s9855_s2  ;;  %1549 = vrot.lane.b32.xlu1 %v10046_v6, %s9855_s2 }
  0x55   :  { %1543 = vrot.lane.b32.xlu0 %v10028_v3, %s9855_s2  ;;  %1545 = vrot.lane.b32.xlu1 %v10011_v0, %s9855_s2 }
  0x59   :  { %1541 = vrot.lane.b32.xlu0 %v10016_v1, %s9855_s2  ;;  %1555 = vrot.lane.b32.xlu1 %v10041_v5, %s9855_s2 }
  0x5d   :  { %1551 = vrot.lane.b32.xlu0 %v10054_v7, %s9855_s2  ;;  %1553 = vrot.lane.b32.xlu1 %v10033_v4, %s9855_s2 }
  0x61   :  { %1856 = vrot.lane.b32.xlu0 %v10024_v2, %s9856_s4  ;;  %1858 = vrot.lane.b32.xlu1 %v10046_v6, %s9856_s4 }
  0x65   :  { %1852 = vrot.lane.b32.xlu0 %v10028_v3, %s9856_s4  ;;  %1854 = vrot.lane.b32.xlu1 %v10011_v0, %s9856_s4 }
  0x69   :  { %1850 = vrot.lane.b32.xlu0 %v10016_v1, %s9856_s4  ;;  %1864 = vrot.lane.b32.xlu1 %v10041_v5, %s9856_s4 }
  0x6d   :  { %1860 = vrot.lane.b32.xlu0 %v10054_v7, %s9856_s4  ;;  %1862 = vrot.lane.b32.xlu1 %v10033_v4, %s9856_s4 }
  0x71   :  { %2165 = vrot.lane.b32.xlu0 %v10024_v2, %s9857_s8  ;;  %2167 = vrot.lane.b32.xlu1 %v10046_v6, %s9857_s8 }
  0x75   :  { %2161 = vrot.lane.b32.xlu0 %v10028_v3, %s9857_s8  ;;  %2163 = vrot.lane.b32.xlu1 %v10011_v0, %s9857_s8 }
  0x79   :  { %2159 = vrot.lane.b32.xlu0 %v10016_v1, %s9857_s8  ;;  %2173 = vrot.lane.b32.xlu1 %v10041_v5, %s9857_s8 }
  0x7d   :  { %2169 = vrot.lane.b32.xlu0 %v10054_v7, %s9857_s8  ;;  %2171 = vrot.lane.b32.xlu1 %v10033_v4, %s9857_s8 }
  0x81   :  { %2474 = vrot.lane.b32.xlu0 %v10024_v2, %s13872_s0  ;;  %2476 = vrot.lane.b32.xlu1 %v10046_v6, %s13872_s0 }
  0x83   :  { %v195_v18 = vpop.permute.xlu0 %194  ;;  %v191_v19 = vpop.permute.xlu1 %190 }
  0x85   :  { %2470 = vrot.lane.b32.xlu0 %v10028_v3, %s13872_s0  ;;  %2472 = vrot.lane.b32.xlu1 %v10011_v0, %s13872_s0 }
  0x87   :  { %v197_v26 = vpop.permute.xlu0 %196  ;;  %v193_v27 = vpop.permute.xlu1 %192 }
  0x88   :  { %v212_v32 = vsel %vm206_vm1, %v193_v27, %v195_v18  ;;  %v211_v34 = vsel %vm206_vm1, %v195_v18, %v197_v26  ;;  %v213_v35 = vsel %vm206_vm1, %v191_v19, %v193_v27 }
  0x89   :  { %2468 = vrot.lane.b32.xlu0 %v10016_v1, %s13872_s0  ;;  %v263_v38 = vmul.f32 %v10184_v21, %v211_v34  ;;  %v261_v39 = vmul.f32 %v10187_v22, %v213_v35  ;;  %v262_v40 = vmul.f32 %v10190_v23, %v212_v32  ;;  %2482 = vrot.lane.b32.xlu1 %v10041_v5, %s13872_s0 }
  0x8b   :  { %v205_v44 = vpop.permute.xlu0 %204  ;;  %v203_v45 = vpop.permute.xlu1 %202  ;;  %v274_v46 = vpack.c.bf16 %v263_v38, %v263_v38  ;;  %v272_v47 = vpack.c.bf16 %v261_v39, %v261_v39  ;;  %v273_v48 = vpack.c.bf16 %v262_v40, %v262_v40  ;;  %v10285_v38 = vrot.slane %v10233_v49, %v10176_v17 }
  0x8c   :  { %v214_v50 = vsel %vm206_vm1, %v205_v44, %v191_v19  ;;  %v207_v51 = vsel %vm206_vm1, %v203_v45, %v205_v44 }
  0x8d   :  { %v267_v54 = vmul.f32 %v10205_v33, %v207_v51  ;;  %v302_v55 = vand.u32 %v10225_v41, %v274_v46  ;;  %v296_v56 = vand.u32 %v10225_v41, %v272_v47  ;;  %v299_v57 = vand.u32 %v10225_v41, %v273_v48  ;;  %2478 = vrot.lane.b32.xlu0 %v10054_v7, %s13872_s0 }
  0x8e   :  { %v260_v58 = vmul.f32 %v10231_v43, %v214_v50  ;;  %2480 = vrot.lane.b32.xlu1 %v10033_v4, %s13872_s0  ;;  %14137 = vst [vmem:[#allocation14_spill] sm:$0xff] %v10285_v38  ;;  %s14448_s0 = sld [smem:[#allocation121_spill]] }
  0x8f   :  { %v278_v59 = vpack.c.bf16 %v267_v54, %v267_v54  ;;  %359 = vmatprep.subr.bf16.mxu1 %v302_v55  ;;  %v199_v60 = vpop.permute.xlu0 %198  ;;  %316 = vmatprep.subr.bf16.mxu0 %v296_v56  ;;  %v201_v61 = vpop.permute.xlu1 %200  ;;  %v10300_v54 = vrot.slane %v10233_v49, %v10196_v25  ;;  %v8911_v55 = vld [vmem:[%s14123_s30 + $0x2] ss:$8 sm:$0xf] }
  0x90   :  { %v210_v9 = vsel %vm206_vm1, %v197_v26, %v199_v60  ;;  %v208_v10 = vsel %vm206_vm1, %v201_v61, %v203_v45  ;;  %v209_v11 = vsel %vm206_vm1, %v199_v60, %v201_v61  ;;  %360 = vmatpush1.bf16.msra.mxu1 %v299_v57  ;;  %v271_v12 = vpack.c.bf16 %v260_v58, %v260_v58  ;;  %v8912_v56 = vld [vmem:[%s14123_s30 + $0x2] ss:$8 sm:$0xf0] }
  0x91   :  { %v264_v14 = vmul.f32 %v10228_v42, %v210_v9  ;;  %v265_v18 = vmul.f32 %v10240_v52, %v209_v11  ;;  %v266_v19 = vmul.f32 %v10243_v53, %v208_v10  ;;  %v314_v27 = vand.u32 %v10225_v41, %v278_v59  ;;  %14138 = vst [vmem:[#allocation15_spill] sm:$0xff] %v10300_v54 }
  0x92   :  { %v293_v28 = vand.u32 %v10225_v41, %v271_v12  ;;  %v10312_v59 = vrot.slane %v10233_v49, %v10178_v20  ;;  %v10318_v61 = vrot.slane %v10233_v49, %v10194_v24 }
  0x93   :  { %v275_v29 = vpack.c.bf16 %v264_v14, %v264_v14  ;;  %v276_v26 = vpack.c.bf16 %v265_v18, %v265_v18  ;;  %v277_v32 = vpack.c.bf16 %v266_v19, %v266_v19  ;;  %v106_v34 = vpop.permute.xlu0 %105  ;;  %8903 = vmatmul.mubr.msk.bf16.vlgmr.msra.gmra.mrb[0].mxu1 %vm284_vm4, %v10258_v62  ;;  %v108_v35 = vpop.permute.xlu1 %107  ;;  %445 = vmatprep.subr.bf16.mxu1 %v314_v27 }
  0x94   :  { %317 = vmatpush1.bf16.msra.mxu0 %v293_v28  ;;  %v124_v36 = vsel %vm119_vm3, %v106_v34, %v108_v35  ;;  %477 = vmatprep.mubr.bf16.mxu1 %v13862_v8  ;;  %14139 = vst [vmem:[#allocation16_spill] sm:$0xff] %v10312_v59  ;;  %14140 = vst [vmem:[#allocation17_spill] sm:$0xff] %v10318_v61  ;;  %v10322_v14 = vor.u32 %v8912_v56, %v8911_v55 }
  0x95   :  { %v305_v39 = vand.u32 %v10225_v41, %v275_v29  ;;  %v311_v40 = vand.u32 %v10225_v41, %v277_v32  ;;  %v175_v44 = vmul.f32 %v10262_v63, %v124_v36  ;;  %v308_v45 = vand.u32 %v10225_v41, %v276_v26 }
  0x96   :  { %v10330_v27 = vrot.slane %v10233_v49, %v10198_v30  ;;  %v10334_v28 = vrot.slane %v10233_v49, %v10200_v31  ;;  %v10346_v49 = vld [vmem:[%s14135_s13] sm:$0xff]  }
  0x97   :  { %v185_v46 = vpack.c.bf16 %v175_v44, %v175_v44  ;;  %8902 = vmatmul.mubr.msk.bf16.vlgmr.msra.gmra.mrb[0].mxu0 %vm284_vm4, %v10258_v62  ;;  %v102_v47 = vpop.permute.xlu0 %101  ;;  %402 = vmatprep.subr.bf16.mxu0 %v308_v45  ;;  %v104_v48 = vpop.permute.xlu1 %103  ;;  %v10350_v45 = vrot.slane %v10322_v14, %v10172_v15 }
  0x98   :  { %446 = vmatpush1.bf16.msra.mxu1 %v311_v40  ;;  %v125_v50 = vsel %vm119_vm3, %v104_v48, %v106_v34  ;;  %v126_v51 = vsel %vm119_vm3, %v102_v47, %v104_v48  ;;  %403 = vmatpush1.bf16.msra.mxu0 %v305_v39  ;;  %14141 = vst [vmem:[#allocation18_spill] sm:$0xff] %v10330_v27  ;;  %14142 = vst [vmem:[#allocation19_spill] sm:$0xff] %v10334_v28  ;;  %v2777_v48 = vld [vmem:[%s14144_s3] sm:$0xff] }
  0x99   :  { %v173_v57 = vmul.f32 %v10281_v37, %v126_v51  ;;  %v174_v58 = vmul.f32 %v10285_v38, %v125_v50  ;;  %v506_v60 = vand.u32 %v10225_v41, %v185_v46  ;;  %434 = vmatprep.mubr.bf16.mxu0 %v13862_v8  ;;  %14143 = vst [vmem:[#allocation20_spill] sm:$0xff] %v10350_v45  ;;  %v2778_v50 = vld [vmem:[%s14144_s3 + $0x8] sm:$0xff]  ;;  %s14430_s3 = sld [smem:[#allocation119_spill]] }
  0x9a   :  { %2781 = vperm.xlu0 %9789, %v2777_v48   ;;  %2786 = vperm.xlu1 %9790, %v2778_v50   ;;  %v8921_v48 = vld [vmem:[%s14123_s30 + $0x3] ss:$8 sm:$0xf0] }
  0x9b   :  { %v183_v9 = vpack.c.bf16 %v173_v57, %v173_v57  ;;  %v184_v10 = vpack.c.bf16 %v174_v58, %v174_v58  ;;  %v116_v11 = vpop.permute.xlu0 %115  ;;  %8905 = vmatmul.mubr.msk.bf16.vlgmr.msra.gmra.mrb[4].mxu1 %vm284_vm4, %v10258_v62  ;;  %v114_v12 = vpop.permute.xlu1 %113  ;;  %563 = vmatprep.subr.bf16.mxu1 %v506_v60 }
  0x9c   :  { %v127_v18 = vsel %vm119_vm3, %v116_v11, %v102_v47  ;;  %v120_v19 = vsel %vm119_vm3, %v114_v12, %v116_v11  ;;  %595 = vmatprep.mubr.bf16.mxu1 %v13862_v8 }
  0x9d   :  { %v503_v29 = vand.u32 %v10225_v41, %v184_v10  ;;  %v172_v26 = vmul.f32 %v10300_v54, %v127_v18  ;;  %v179_v32 = vmul.f32 %v10312_v59, %v120_v19  ;;  %v500_v34 = vand.u32 %v10225_v41, %v183_v9 }
  0x9e   :  { %v10377_v18 = vrot.slane %v10322_v14, %v10174_v16  ;;  %v10381_v19 = vrot.slane %v10322_v14, %v10176_v17 }
  0x9f   :  { %v182_v36 = vpack.c.bf16 %v172_v26, %v172_v26  ;;  %v189_v39 = vpack.c.bf16 %v179_v32, %v179_v32  ;;  %8904 = vmatmul.mubr.msk.bf16.vlgmr.msra.gmra.mrb[4].mxu0 %vm284_vm4, %v10258_v62  ;;  %v110_v40 = vpop.permute.xlu0 %109  ;;  %564 = vmatpush1.bf16.msra.mxu1 %v503_v29  ;;  %v112_v44 = vpop.permute.xlu1 %111 }
  0xa0   :  { %v123_v46 = vsel %vm119_vm3, %v108_v35, %v110_v40  ;;  %v121_v62 = vsel %vm119_vm3, %v112_v44, %v114_v12  ;;  %v122_v47 = vsel %vm119_vm3, %v110_v40, %v112_v44  ;;  %520 = vmatprep.subr.bf16.mxu0 %v500_v34  ;;  %552 = vmatprep.mubr.bf16.mxu0 %v13862_v8 }
  0xa1   :  { %v497_v51 = vand.u32 %v10225_v41, %v182_v36  ;;  %v176_v35 = vmul.f32 %v10318_v61, %v123_v46  ;;  %v177_v55 = vmul.f32 %v10330_v27, %v122_v47  ;;  %v178_v56 = vmul.f32 %v10334_v28, %v121_v62  ;;  %14145 = vst [vmem:[#allocation21_spill] sm:$0xff] %v10381_v19  ;;  %v8920_v47 = vld [vmem:[%s14123_s30 + $0x3] ss:$8 sm:$0xf] }
  0xa2   :  { %v518_v57 = vand.u32 %v10225_v41, %v189_v39  ;;  %v10396_v62 = vrot.slane %v10322_v14, %v10196_v25 }
  0xa3   :  { %v186_v58 = vpack.c.bf16 %v176_v35, %v176_v35  ;;  %v187_v60 = vpack.c.bf16 %v177_v55, %v177_v55  ;;  %v188_v9 = vpack.c.bf16 %v178_v56, %v178_v56  ;;  %v697_v10 = vpop.permute.xlu0 %696  ;;  %521 = vmatpush1.bf16.msra.mxu0 %v497_v51  ;;  %8908 = vmatmul.mubr.msk.bf16.vlgmr.msra.gmra.mrb[0].mxu1 %vm284_vm4, %v10346_v49  ;;  %v699_v11 = vpop.permute.xlu1 %698 }
  0xa4   :  { %v713_v12 = vsel %vm708_vm5, %v697_v10, %v699_v11  ;;  %649 = vmatprep.subr.bf16.mxu1 %v518_v57  ;;  %681 = vmatprep.mubr.bf16.mxu1 %v13862_v8  ;;  %14146 = vst [vmem:[#allocation22_spill] sm:$0xff] %v10396_v62  ;;  %v10408_v35 = vrot.slane %v10322_v14, %v10178_v20 }
  0xa5   :  { %v509_v29 = vand.u32 %v10225_v41, %v186_v58  ;;  %v515_v26 = vand.u32 %v10225_v41, %v188_v9  ;;  %v765_v32 = vmul.f32 %v10350_v45, %v713_v12  ;;  %v512_v34 = vand.u32 %v10225_v41, %v187_v60 }
  0xa6   :  { %14147 = vst [vmem:[#allocation23_spill] sm:$0xff] %v10408_v35  ;;  %v10414_v56 = vrot.slane %v10322_v14, %v10194_v24 }
  0xa7   :  { %v776_v36 = vpack.c.bf16 %v765_v32, %v765_v32  ;;  %8907 = vmatmul.mubr.msk.bf16.vlgmr.msra.gmra.mrb[0].mxu0 %vm284_vm4, %v10346_v49  ;;  %v693_v39 = vpop.permute.xlu0 %692  ;;  %606 = vmatprep.subr.bf16.mxu0 %v512_v34  ;;  %v695_v40 = vpop.permute.xlu1 %694  ;;  %v10430_v32 = vrot.slane %v10322_v14, %v10200_v31 }
  0xa8   :  { %650 = vmatpush1.bf16.msra.mxu1 %v515_v26  ;;  %v714_v44 = vsel %vm708_vm5, %v695_v40, %v697_v10  ;;  %v715_v46 = vsel %vm708_vm5, %v693_v39, %v695_v40  ;;  %607 = vmatpush1.bf16.msra.mxu0 %v509_v29  ;;  %14148 = vst [vmem:[#allocation24_spill] sm:$0xff] %v10414_v56 }
  0xa9   :  { %v763_v50 = vmul.f32 %v10377_v18, %v715_v46  ;;  %v764_v51 = vmul.f32 %v10381_v19, %v714_v44  ;;  %v799_v55 = vand.u32 %v776_v36, %v10225_v41  ;;  %638 = vmatprep.mubr.bf16.mxu0 %v13862_v8  ;;  %v10418_v10 = vor.u32 %v8921_v48, %v8920_v47 }
  0xaa   :  { %v10426_v26 = vrot.slane %v10322_v14, %v10198_v30  ;;  %14150 = vst [vmem:[#allocation26_spill] sm:$0xff] %v10430_v32  ;;  %v10442_v14 = vld [vmem:[%s14135_s13 + $0x10] sm:$0xff]  }
  0xab   :  { %v774_v57 = vpack.c.bf16 %v763_v50, %v763_v50  ;;  %v775_v58 = vpack.c.bf16 %v764_v51, %v764_v51  ;;  %v707_v60 = vpop.permute.xlu0 %706  ;;  %8910 = vmatmul.mubr.msk.bf16.vlgmr.msra.gmra.mrb[4].mxu1 %vm284_vm4, %v10346_v49  ;;  %v705_v9 = vpop.permute.xlu1 %704  ;;  %856 = vmatprep.subr.bf16.mxu1 %v799_v55  ;;  %v10446_v50 = vrot.slane %v10418_v10, %v10172_v15 }
  0xac   :  { %v716_v12 = vsel %vm708_vm5, %v707_v60, %v693_v39  ;;  %v709_v29 = vsel %vm708_vm5, %v705_v9, %v707_v60  ;;  %14149 = vst [vmem:[#allocation25_spill] sm:$0xff] %v10426_v26  ;;  %888 = vmatprep.mubr.bf16.mxu1 %v13862_v8 }
  0xad   :  { %v796_v34 = vand.u32 %v775_v58, %v10225_v41  ;;  %v762_v36 = vmul.f32 %v10396_v62, %v716_v12  ;;  %v769_v40 = vmul.f32 %v10408_v35, %v709_v29  ;;  %v793_v39 = vand.u32 %v774_v57, %v10225_v41  ;;  %14151 = vst [vmem:[#allocation27_spill] sm:$0xff] %v10446_v50 }
  0xaf   :  { %v773_v44 = vpack.c.bf16 %v762_v36, %v762_v36  ;;  %v780_v46 = vpack.c.bf16 %v769_v40, %v769_v40  ;;  %8909 = vmatmul.mubr.msk.bf16.vlgmr.msra.gmra.mrb[4].mxu0 %vm284_vm4, %v10346_v49  ;;  %v701_v47 = vpop.permute.xlu0 %700  ;;  %857 = vmatpush1.bf16.msra.mxu1 %v796_v34  ;;  %v703_v48 = vpop.permute.xlu1 %702 }
  0xb0   :  { %v712_v51 = vsel %vm708_vm5, %v699_v11, %v701_v47  ;;  %v710_v49 = vsel %vm708_vm5, %v703_v48, %v705_v9  ;;  %v711_v55 = vsel %vm708_vm5, %v701_v47, %v703_v48  ;;  %813 = vmatprep.subr.bf16.mxu0 %v793_v39  ;;  %845 = vmatprep.mubr.bf16.mxu0 %v13862_v8 }
  0xb1   :  { %v790_v57 = vand.u32 %v773_v44, %v10225_v41  ;;  %v766_v58 = vmul.f32 %v10414_v56, %v712_v51  ;;  %v767_v60 = vmul.f32 %v10426_v26, %v711_v55  ;;  %v768_v12 = vmul.f32 %v10430_v32, %v710_v49 }
  0xb2   :  { %v811_v29 = vand.u32 %v780_v46, %v10225_v41  ;;  %v10467_v44 = vrot.slane %v10418_v10, %v10174_v16  ;;  %v10471_v46 = vrot.slane %v10418_v10, %v10176_v17 }
  0xb3   :  { %v777_v11 = vpack.c.bf16 %v766_v58, %v766_v58  ;;  %v778_v34 = vpack.c.bf16 %v767_v60, %v767_v60  ;;  %v779_v36 = vpack.c.bf16 %v768_v12, %v768_v12  ;;  %v1006_v9 = vpop.permute.xlu0 %1005  ;;  %814 = vmatpush1.bf16.msra.mxu0 %v790_v57  ;;  %8917 = vmatmul.mubr.msk.bf16.vlgmr.msra.gmra.mrb[0].mxu1 %vm284_vm4, %v10442_v14  ;;  %v1008_v40 = vpop.permute.xlu1 %1007 }
  0xb4   :  { %v1022_v39 = vsel %vm1017_vm6, %v1006_v9, %v1008_v40  ;;  %942 = vmatprep.subr.bf16.mxu1 %v811_v29  ;;  %14152 = vst [vmem:[#allocation28_spill] sm:$0xff] %v10467_v44  ;;  %14153 = vst [vmem:[#allocation29_spill] sm:$0xff] %v10471_v46  ;;  %974 = vmatprep.mubr.bf16.mxu1 %v13862_v8  ;;  %v10486_v29 = vrot.slane %v10418_v10, %v10196_v25 }
  0xb5   :  { %v802_v47 = vand.u32 %v777_v11, %v10225_v41  ;;  %v808_v48 = vand.u32 %v779_v36, %v10225_v41  ;;  %v1074_v51 = vmul.f32 %v10446_v50, %v1022_v39  ;;  %v805_v49 = vand.u32 %v778_v34, %v10225_v41 }
  0xb6   :  { %14154 = vst [vmem:[#allocation30_spill] sm:$0xff] %v10486_v29  ;;  %v10492_v36 = vrot.slane %v10418_v10, %v10178_v20 }
  0xb7   :  { %v1085_v55 = vpack.c.bf16 %v1074_v51, %v1074_v51  ;;  %8916 = vmatmul.mubr.msk.bf16.vlgmr.msra.gmra.mrb[0].mxu0 %vm284_vm4, %v10442_v14  ;;  %v1002_v57 = vpop.permute.xlu0 %1001  ;;  %899 = vmatprep.subr.bf16.mxu0 %v805_v49  ;;  %v1004_v58 = vpop.permute.xlu1 %1003  ;;  %v10500_v49 = vrot.slane %v10418_v10, %v10194_v24 }
  0xb8   :  { %943 = vmatpush1.bf16.msra.mxu1 %v808_v48  ;;  %v1023_v60 = vsel %vm1017_vm6, %v1004_v58, %v1006_v9  ;;  %v1024_v12 = vsel %vm1017_vm6, %v1002_v57, %v1004_v58  ;;  %900 = vmatpush1.bf16.msra.mxu0 %v802_v47  ;;  %14155 = vst [vmem:[#allocation31_spill] sm:$0xff] %v10492_v36 }
  0xb9   :  { %v1072_v11 = vmul.f32 %v10467_v44, %v1024_v12  ;;  %v1073_v34 = vmul.f32 %v10471_v46, %v1023_v60  ;;  %v1108_v39 = vand.u32 %v1085_v55, %v10225_v41  ;;  %931 = vmatprep.mubr.bf16.mxu0 %v13862_v8  ;;  %14156 = vst [vmem:[#allocation32_spill] sm:$0xff] %v10500_v49 }
  0xba   :  { %v10508_v60 = vrot.slane %v10418_v10, %v10198_v30  ;;  %v10512_v12 = vrot.slane %v10418_v10, %v10200_v31  ;;  %v1316_v10 = vpack.c.bf16 %v10024_v2, %v10024_v2 }
  0xbb   :  { %v1083_v9 = vpack.c.bf16 %v1072_v11, %v1072_v11  ;;  %v1084_v48 = vpack.c.bf16 %v1073_v34, %v1073_v34  ;;  %v1016_v51 = vpop.permute.xlu0 %1015  ;;  %8919 = vmatmul.mubr.msk.bf16.vlgmr.msra.gmra.mrb[4].mxu1 %vm284_vm4, %v10442_v14  ;;  %v1014_v47 = vpop.permute.xlu1 %1013  ;;  %1165 = vmatprep.subr.bf16.mxu1 %v1108_v39  ;;  %v8936_v11 = vld [vmem:[%s14123_s30 + $0x5] ss:$8 sm:$0xf] }
  0xbc   :  { %v1025_v58 = vsel %vm1017_vm6, %v1016_v51, %v1002_v57  ;;  %v1018_v55 = vsel %vm1017_vm6, %v1014_v47, %v1016_v51  ;;  %14157 = vst [vmem:[#allocation33_spill] sm:$0xff] %v10508_v60  ;;  %14158 = vst [vmem:[#allocation34_spill] sm:$0xff] %v10512_v12  ;;  %1197 = vmatprep.mubr.bf16.mxu1 %v13862_v8  ;;  %v8937_v57 = vld [vmem:[%s14123_s30 + $0x5] ss:$8 sm:$0xf0] }
  0xbd   :  { %v1105_v34 = vand.u32 %v1084_v48, %v10225_v41  ;;  %v1071_v39 = vmul.f32 %v10486_v29, %v1025_v58  ;;  %v1078_v51 = vmul.f32 %v10492_v36, %v1018_v55  ;;  %v1102_v46 = vand.u32 %v1083_v9, %v10225_v41  ;;  %v10532_v48 = vld [vmem:[%s14135_s13 + $0x18] sm:$0xff]  }
  0xbe   :  { %v10534_v58 = vor.u32 %v8937_v57, %v8936_v11 }
  0xbf   :  { %v1082_v8 = vpack.c.bf16 %v1071_v39, %v1071_v39  ;;  %v1089_v32 = vpack.c.bf16 %v1078_v51, %v1078_v51  ;;  %8918 = vmatmul.mubr.msk.bf16.vlgmr.msra.gmra.mrb[4].mxu0 %vm284_vm4, %v10442_v14  ;;  %v1010_v26 = vpop.permute.xlu0 %1009  ;;  %1166 = vmatpush1.bf16.msra.mxu1 %v1105_v34  ;;  %v1012_v56 = vpop.permute.xlu1 %1011  ;;  %v14159_v14 = vmov 0  }
  0xc0   :  { %v1021_v9 = vsel %vm1017_vm6, %v1008_v40, %v1010_v26  ;;  %v1019_v2 = vsel %vm1017_vm6, %v1012_v56, %v1014_v47  ;;  %v1020_v55 = vsel %vm1017_vm6, %v1010_v26, %v1012_v56  ;;  %1122 = vmatprep.subr.bf16.mxu0 %v1102_v46  ;;  %1154 = vmatprep.mubr.bf16.mxu0 %v14159_v14 }
  0xc1   :  { %v1099_v34 = vand.u32 %v1082_v8, %v10225_v41  ;;  %v1075_v39 = vmul.f32 %v10500_v49, %v1021_v9  ;;  %v1076_v51 = vmul.f32 %v10508_v60, %v1020_v55  ;;  %v1077_v11 = vmul.f32 %v10512_v12, %v1019_v2 }
  0xc2   :  { %v1120_v57 = vand.u32 %v1089_v32, %v10225_v41  ;;  %v1314_v40 = vpack.c.bf16 %v10028_v3, %v10028_v3  ;;  %v1339_v32 = vand.u32 %v1316_v10, %v10225_v41  ;;  %v1315_v3 = vpack.c.bf16 %v10011_v0, %v10011_v0 }
  0xc3   :  { %v1086_v47 = vpack.c.bf16 %v1075_v39, %v1075_v39  ;;  %v1087_v56 = vpack.c.bf16 %v1076_v51, %v1076_v51  ;;  %v1088_v26 = vpack.c.bf16 %v1077_v11, %v1077_v11  ;;  %1123 = vmatpush1.bf16.msra.mxu0 %v1099_v34  ;;  %8926 = vmatmul.mubr.msk.bf16.vlgmr.msra.gmra.mrb[0].mxu1 %vm284_vm4, %v10532_v48  ;;  %v1548_v8 = vpop.permute.xlu0 %1547  ;;  %v10553_v46 = vpop.permute.xlu1 %1549 }
  0xc4   :  { %1251 = vmatprep.subr.bf16.mxu1 %v1120_v57  ;;  %1283 = vmatprep.mubr.bf16.mxu1 %v14159_v14  ;;  %v10561_v9 = vrot.slane %v10534_v58, %v10172_v15  ;;  %v1320_v39 = vpack.c.bf16 %v10041_v5, %v10041_v5  ;;  %v1561_v10 = vsel %vm1557_vm7, %v1548_v8, %v10553_v46 }
  0xc5   :  { %v1111_v2 = vand.u32 %v1086_v47, %v10225_v41  ;;  %v1117_v55 = vand.u32 %v1088_v26, %v10225_v41  ;;  %v1114_v34 = vand.u32 %v1087_v56, %v10225_v41  ;;  %v1333_v51 = vand.u32 %v1314_v40, %v10225_v41 }
  0xc6   :  { %14160 = vst [vmem:[#allocation35_spill] sm:$0xff] %v10561_v9  ;;  %v1336_v57 = vand.u32 %v1315_v3, %v10225_v41  ;;  %v1313_v47 = vpack.c.bf16 %v10016_v1, %v10016_v1  ;;  %v10579_v5 = vrot.slane %v10534_v58, %v10174_v16  ;;  %v1614_v40 = vmul.f32 %v10561_v9, %v1561_v10 }
  0xc7   :  { %8925 = vmatmul.mubr.msk.bf16.vlgmr.msra.gmra.mrb[0].mxu0 %vm284_vm4, %v10532_v48  ;;  %1208 = vmatprep.subr.bf16.mxu0 %v1114_v34  ;;  %v1544_v0 = vpop.permute.xlu0 %1543  ;;  %v1546_v11 = vpop.permute.xlu1 %1545  ;;  %v1351_v56 = vand.u32 %v1320_v39, %v10225_v41  ;;  %v1318_v26 = vpack.c.bf16 %v10054_v7, %v10054_v7  ;;  %v10596_v7 = vrot.slane %v10534_v58, %v10176_v17 }
  0xc8   :  { %1252 = vmatpush1.bf16.msra.mxu1 %v1117_v55  ;;  %1209 = vmatpush1.bf16.msra.mxu0 %v1111_v2  ;;  %14161 = vst [vmem:[#allocation36_spill] sm:$0xff] %v10579_v5  ;;  %v1563_v3 = vsel %vm1557_vm7, %v1544_v0, %v1546_v11  ;;  %v1319_v2 = vpack.c.bf16 %v10033_v4, %v10033_v4 }
  0xc9   :  { %1240 = vmatprep.mubr.bf16.mxu0 %v14159_v14  ;;  %1396 = vmatprep.subr.bf16.mxu1 %v1339_v32  ;;  %v1330_v32 = vand.u32 %v1313_v47, %v10225_v41  ;;  %14162 = vst [vmem:[#allocation37_spill] sm:$0xff] %v10596_v7  ;;  %v10600_v34 = vrot.slane %v10534_v58, %v10178_v20  ;;  %v8946_v47 = vld [vmem:[%s14123_s30 + $0x6] ss:$8 sm:$0xf0] }
  0xca   :  { %1353 = vmatprep.subr.bf16.mxu0 %v1333_v51  ;;  %v1625_v39 = vpack.c.bf16 %v1614_v40, %v1614_v40  ;;  %v1562_v10 = vsel %vm1557_vm7, %v1546_v11, %v1548_v8  ;;  %v1612_v4 = vmul.f32 %v10579_v5, %v1563_v3  ;;  %v1345_v51 = vand.u32 %v1318_v26, %v10225_v41  ;;  %v10623_v11 = vld [vmem:[%s14135_s13 + $0x20] sm:$0xff]  }
  0xcb   :  { %8928 = vmatmul.mubr.msk.bf16.vlgmr.msra.gmra.mrb[4].mxu1 %vm284_vm4, %v10532_v48  ;;  %v1542_v1 = vpop.permute.xlu0 %1541  ;;  %v1556_v55 = vpop.permute.xlu1 %1555  ;;  %14163 = vst [vmem:[#allocation38_spill] sm:$0xff] %v10600_v34  ;;  %v10618_v8 = vrot.slane %v10534_v58, %v10196_v25  ;;  %v1317_v26 = vpack.c.bf16 %v10046_v6, %v10046_v6  ;;  %v1613_v5 = vmul.f32 %v10596_v7, %v1562_v10 }
  0xcc   :  { %1397 = vmatpush1.bf16.msra.mxu1 %v1336_v57  ;;  %1428 = vmatprep.mubr.bf16.mxu1 %v14159_v14  ;;  %v8945_v57 = vld [vmem:[%s14123_s30 + $0x6] ss:$8 sm:$0xf]  ;;  %v1565_v9 = vsel %vm1557_vm7, %v1556_v55, %v1542_v1  ;;  %v1564_v60 = vsel %vm1557_vm7, %v1542_v1, %v1544_v0  ;;  %v1623_v49 = vpack.c.bf16 %v1612_v4, %v1612_v4 }
  0xcd   :  { %1482 = vmatprep.subr.bf16.mxu1 %v1351_v56  ;;  %14164 = vst [vmem:[#allocation39_spill] sm:$0xff] %v10618_v8  ;;  %v1348_v56 = vand.u32 %v1319_v2, %v10225_v41  ;;  %v10634_v12 = vor.u32 %v8946_v47, %v8945_v57  ;;  %v1618_v2 = vmul.f32 %v10600_v34, %v1565_v9 }
  0xce   :  { %v1648_v6 = vand.u32 %v1625_v39, %v10225_v41  ;;  %v1342_v57 = vand.u32 %v1317_v26, %v10225_v41  ;;  %v10648_v0 = vrot.slane %v10534_v58, %v10200_v31  ;;  %v1611_v9 = vmul.f32 %v10618_v8, %v1564_v60 }
  0xcf   :  { %8927 = vmatmul.mubr.msk.bf16.vlgmr.msra.gmra.mrb[4].mxu0 %vm284_vm4, %v10532_v48  ;;  %v1552_v40 = vpop.permute.xlu0 %1551  ;;  %v1554_v3 = vpop.permute.xlu1 %1553  ;;  %v10632_v48 = vrot.slane %v10534_v58, %v10198_v30  ;;  %v1624_v39 = vpack.c.bf16 %v1613_v5, %v1613_v5  ;;  %v10656_v4 = vrot.slane %v10634_v12, %v10172_v15  ;;  %v1642_v34 = vand.u32 %v1623_v49, %v10225_v41 }
  0xd0   :  { %1354 = vmatpush1.bf16.msra.mxu0 %v1330_v32  ;;  %1385 = vmatprep.mubr.bf16.mxu0 %v14159_v14  ;;  %v1559_v32 = vsel %vm1557_vm7, %v1552_v40, %v1554_v3  ;;  %14166 = vst [vmem:[#allocation41_spill] sm:$0xff] %v10648_v0  ;;  %v1558_v47 = vsel %vm1557_vm7, %v1554_v3, %v1556_v55 }
  0xd1   :  { %14165 = vst [vmem:[#allocation40_spill] sm:$0xff] %v10632_v48  ;;  %1439 = vmatprep.subr.bf16.mxu0 %v1345_v51  ;;  %14167 = vst [vmem:[#allocation42_spill] sm:$0xff] %v10656_v4  ;;  %v1629_v51 = vpack.c.bf16 %v1618_v2, %v1618_v2  ;;  %v1616_v26 = vmul.f32 %v10632_v48, %v1559_v32  ;;  %v1622_v8 = vpack.c.bf16 %v1611_v9, %v1611_v9 }
  0xd2   :  { %v1645_v2 = vand.u32 %v1624_v39, %v10225_v41  ;;  %v10674_v32 = vrot.slane %v10634_v12, %v10174_v16  ;;  %v10678_v9 = vrot.slane %v10534_v58, %v10194_v24  ;;  %v1560_v39 = vsel %vm1557_vm7, %v10553_v46, %v1552_v40 }
  0xd3   :  { %8933 = vmatmul.mubr.msk.bf16.vlgmr.msra.gmra.mrb[0].mxu1 %vm284_vm4, %v10623_v11  ;;  %v1857_v10 = vpop.permute.xlu0 %1856  ;;  %v10650_v1 = vpop.permute.xlu1 %1858  ;;  %v1627_v55 = vpack.c.bf16 %v1616_v26, %v1616_v26  ;;  %v1660_v3 = vand.u32 %v1629_v51, %v10225_v41  ;;  %v10689_v51 = vrot.slane %v10634_v12, %v10176_v17  ;;  %v1639_v26 = vand.u32 %v1622_v8, %v10225_v41  ;;  %v8954_v8 = vld [vmem:[%s14123_s30 + $0x7] ss:$8 sm:$0xf] }
  0xd4   :  { %1483 = vmatpush1.bf16.msra.mxu1 %v1348_v56  ;;  %1514 = vmatprep.mubr.bf16.mxu1 %v14159_v14  ;;  %v1870_v60 = vsel %vm1866_vm8, %v1857_v10, %v10650_v1  ;;  %14168 = vst [vmem:[#allocation43_spill] sm:$0xff] %v10674_v32  ;;  %14169 = vst [vmem:[#allocation44_spill] sm:$0xff] %v10678_v9 }
  0xd5   :  { %1705 = vmatprep.subr.bf16.mxu1 %v1648_v6  ;;  %v1617_v6 = vmul.f32 %v10648_v0, %v1558_v47  ;;  %v1923_v49 = vmul.f32 %v10656_v4, %v1870_v60  ;;  %14170 = vst [vmem:[#allocation45_spill] sm:$0xff] %v10689_v51  ;;  %v10695_v60 = vrot.slane %v10634_v12, %v10178_v20 }
  0xd6   :  { %v1654_v4 = vand.u32 %v1627_v55, %v10225_v41 }
  0xd7   :  { %8932 = vmatmul.mubr.msk.bf16.vlgmr.msra.gmra.mrb[0].mxu0 %vm284_vm4, %v10623_v11  ;;  %v1853_v5 = vpop.permute.xlu0 %1852  ;;  %v1855_v56 = vpop.permute.xlu1 %1854  ;;  %v1628_v58 = vpack.c.bf16 %v1617_v6, %v1617_v6  ;;  %14171 = vst [vmem:[#allocation46_spill] sm:$0xff] %v10695_v60  ;;  %v1934_v46 = vpack.c.bf16 %v1923_v49, %v1923_v49  ;;  %v1615_v6 = vmul.f32 %v10678_v9, %v1560_v39 }
  0xd8   :  { %1440 = vmatpush1.bf16.msra.mxu0 %v1342_v57  ;;  %1471 = vmatprep.mubr.bf16.mxu0 %v14159_v14  ;;  %v1872_v57 = vsel %vm1866_vm8, %v1853_v5, %v1855_v56  ;;  %v1871_v40 = vsel %vm1866_vm8, %v1855_v56, %v1857_v10  ;;  %v10714_v10 = vrot.slane %v10634_v12, %v10196_v25  ;;  %v10719_v56 = vld [vmem:[%s14135_s13 + $0x28] sm:$0xff]  }
  0xd9   :  { %1662 = vmatprep.subr.bf16.mxu0 %v1642_v34  ;;  %v1921_v48 = vmul.f32 %v10674_v32, %v1872_v57  ;;  %v1657_v39 = vand.u32 %v1628_v58, %v10225_v41  ;;  %v1957_v36 = vand.u32 %v1934_v46, %v10225_v41  ;;  %v1626_v29 = vpack.c.bf16 %v1615_v6, %v1615_v6 }
  0xda   :  { %14172 = vst [vmem:[#allocation47_spill] sm:$0xff] %v10714_v10 }
  0xdb   :  { %8935 = vmatmul.mubr.msk.bf16.vlgmr.msra.gmra.mrb[4].mxu1 %vm284_vm4, %v10623_v11  ;;  %v1851_v34 = vpop.permute.xlu0 %1850  ;;  %v1865_v47 = vpop.permute.xlu1 %1864  ;;  %v1932_v0 = vpack.c.bf16 %v1921_v48, %v1921_v48 }
  0xdc   :  { %1706 = vmatpush1.bf16.msra.mxu1 %v1645_v2  ;;  %1737 = vmatprep.mubr.bf16.mxu1 %v14159_v14  ;;  %v8955_v2 = vld [vmem:[%s14123_s30 + $0x7] ss:$8 sm:$0xf0]  ;;  %v1874_v49 = vsel %vm1866_vm8, %v1865_v47, %v1851_v34  ;;  %v1873_v9 = vsel %vm1866_vm8, %v1851_v34, %v1853_v5 }
  0xdd   :  { %1791 = vmatprep.subr.bf16.mxu1 %v1660_v3  ;;  %v10723_v3 = vrot.slane %v10634_v12, %v10198_v30  ;;  %v10728_v32 = vor.u32 %v8955_v2, %v8954_v8  ;;  %v1927_v7 = vmul.f32 %v10695_v60, %v1874_v49  ;;  %v1951_v6 = vand.u32 %v1932_v0, %v10225_v41 }
  0xde   :  { %v1651_v49 = vand.u32 %v1626_v29, %v10225_v41 }
  0xdf   :  { %8934 = vmatmul.mubr.msk.bf16.vlgmr.msra.gmra.mrb[4].mxu0 %vm284_vm4, %v10623_v11  ;;  %v1861_v55 = vpop.permute.xlu0 %1860  ;;  %14173 = vst [vmem:[#allocation48_spill] sm:$0xff] %v10723_v3  ;;  %v1863_v57 = vpop.permute.xlu1 %1862  ;;  %v1922_v11 = vmul.f32 %v10689_v51, %v1871_v40  ;;  %v10741_v40 = vrot.slane %v10634_v12, %v10200_v31  ;;  %v10749_v34 = vrot.slane %v10728_v32, %v10172_v15 }
  0xe0   :  { %1663 = vmatpush1.bf16.msra.mxu0 %v1639_v26  ;;  %1694 = vmatprep.mubr.bf16.mxu0 %v14159_v14  ;;  %v1868_v58 = vsel %vm1866_vm8, %v1861_v55, %v1863_v57  ;;  %v1938_v46 = vpack.c.bf16 %v1927_v7, %v1927_v7  ;;  %v1867_v8 = vsel %vm1866_vm8, %v1863_v57, %v1865_v47 }
  0xe1   :  { %1748 = vmatprep.subr.bf16.mxu0 %v1654_v4  ;;  %14174 = vst [vmem:[#allocation49_spill] sm:$0xff] %v10741_v40  ;;  %v1920_v4 = vmul.f32 %v10714_v10, %v1873_v9  ;;  %v1933_v5 = vpack.c.bf16 %v1922_v11, %v1922_v11  ;;  %14175 = vst [vmem:[#allocation50_spill] sm:$0xff] %v10749_v34  ;;  %v1925_v2 = vmul.f32 %v10723_v3, %v1868_v58 }
  0xe2   :  { %v1926_v47 = vmul.f32 %v10741_v40, %v1867_v8  ;;  %v1969_v57 = vand.u32 %v1938_v46, %v10225_v41  ;;  %v10768_v58 = vrot.slane %v10728_v32, %v10174_v16  ;;  %v1869_v8 = vsel %vm1866_vm8, %v10650_v1, %v1861_v55 }
  0xe3   :  { %8942 = vmatmul.mubr.msk.bf16.vlgmr.msra.gmra.mrb[0].mxu1 %vm284_vm4, %v10719_v56  ;;  %v2166_v26 = vpop.permute.xlu0 %2165  ;;  %v10743_v48 = vpop.permute.xlu1 %2167  ;;  %v1931_v7 = vpack.c.bf16 %v1920_v4, %v1920_v4  ;;  %v1936_v0 = vpack.c.bf16 %v1925_v2, %v1925_v2  ;;  %v10772_v4 = vrot.slane %v10634_v12, %v10194_v24  ;;  %v10783_v46 = vrot.slane %v10728_v32, %v10176_v17 }
  0xe4   :  { %1792 = vmatpush1.bf16.msra.mxu1 %v1657_v39  ;;  %1823 = vmatprep.mubr.bf16.mxu1 %v14159_v14  ;;  %v2179_v9 = vsel %vm2175_vm9, %v2166_v26, %v10743_v48  ;;  %14176 = vst [vmem:[#allocation51_spill] sm:$0xff] %v10768_v58  ;;  %v1937_v12 = vpack.c.bf16 %v1926_v47, %v1926_v47 }
  0xe5   :  { %2014 = vmatprep.subr.bf16.mxu1 %v1957_v36  ;;  %v1954_v36 = vand.u32 %v1933_v5, %v10225_v41  ;;  %v2232_v29 = vmul.f32 %v10749_v34, %v2179_v9  ;;  %14177 = vst [vmem:[#allocation52_spill] sm:$0xff] %v10772_v4  ;;  %14178 = vst [vmem:[#allocation53_spill] sm:$0xff] %v10783_v46  ;;  %v10789_v9 = vrot.slane %v10728_v32, %v10178_v20 }
  0xe6   :  { %v1963_v34 = vand.u32 %v1936_v0, %v10225_v41  ;;  %v1924_v47 = vmul.f32 %v10772_v4, %v1869_v8  ;;  %v1966_v8 = vand.u32 %v1937_v12, %v10225_v41 }
  0xe7   :  { %8941 = vmatmul.mubr.msk.bf16.vlgmr.msra.gmra.mrb[0].mxu0 %vm284_vm4, %v10719_v56  ;;  %v2162_v39 = vpop.permute.xlu0 %2161  ;;  %v2164_v11 = vpop.permute.xlu1 %2163  ;;  %14179 = vst [vmem:[#allocation54_spill] sm:$0xff] %v10789_v9  ;;  %v2243_v1 = vpack.c.bf16 %v2232_v29, %v2232_v29 }
  0xe8   :  { %1749 = vmatpush1.bf16.msra.mxu0 %v1651_v49  ;;  %1780 = vmatprep.mubr.bf16.mxu0 %v14159_v14  ;;  %v2181_v5 = vsel %vm2175_vm9, %v2162_v39, %v2164_v11  ;;  %v1948_v49 = vand.u32 %v1931_v7, %v10225_v41  ;;  %v2180_v55 = vsel %vm2175_vm9, %v2164_v11, %v2166_v26  ;;  %v8963_v7 = vld [vmem:[%s14123_s30 + $0x40] ss:$8 sm:$0xf] }
  0xe9   :  { %1971 = vmatprep.subr.bf16.mxu0 %v1951_v6  ;;  %v2230_v3 = vmul.f32 %v10768_v58, %v2181_v5  ;;  %v10808_v26 = vrot.slane %v10728_v32, %v10196_v25  ;;  %v10813_v11 = vld [vmem:[%s14135_s13 + $0x30] sm:$0xff]   ;;  %v2266_v10 = vand.u32 %v2243_v1, %v10225_v41  ;;  %v1935_v51 = vpack.c.bf16 %v1924_v47, %v1924_v47 }
  0xeb   :  { %8944 = vmatmul.mubr.msk.bf16.vlgmr.msra.gmra.mrb[4].mxu1 %vm284_vm4, %v10719_v56  ;;  %v2160_v2 = vpop.permute.xlu0 %2159  ;;  %v2174_v6 = vpop.permute.xlu1 %2173  ;;  %14180 = vst [vmem:[#allocation55_spill] sm:$0xff] %v10808_v26  ;;  %v2241_v40 = vpack.c.bf16 %v2230_v3, %v2230_v3 }
  0xec   :  { %2015 = vmatpush1.bf16.msra.mxu1 %v1954_v36  ;;  %2046 = vmatprep.mubr.bf16.mxu1 %v14159_v14  ;;  %v8964_v36 = vld [vmem:[%s14123_s30 + $0x40] ss:$8 sm:$0xf0]  ;;  %v2183_v29 = vsel %vm2175_vm9, %v2174_v6, %v2160_v2  ;;  %v2182_v4 = vsel %vm2175_vm9, %v2160_v2, %v2162_v39 }
  0xed   :  { %2100 = vmatprep.subr.bf16.mxu1 %v1969_v57  ;;  %v10817_v57 = vrot.slane %v10728_v32, %v10198_v30  ;;  %v10822_v58 = vor.u32 %v8964_v36, %v8963_v7  ;;  %v2236_v60 = vmul.f32 %v10789_v9, %v2183_v29  ;;  %v2260_v47 = vand.u32 %v2241_v40, %v10225_v41 }
  0xee   :  { %v1960_v29 = vand.u32 %v1935_v51, %v10225_v41 }
  0xef   :  { %8943 = vmatmul.mubr.msk.bf16.vlgmr.msra.gmra.mrb[4].mxu0 %vm284_vm4, %v10719_v56  ;;  %v2170_v0 = vpop.permute.xlu0 %2169  ;;  %14181 = vst [vmem:[#allocation56_spill] sm:$0xff] %v10817_v57  ;;  %v2172_v5 = vpop.permute.xlu1 %2171  ;;  %v2231_v56 = vmul.f32 %v10783_v46, %v2180_v55  ;;  %v10835_v55 = vrot.slane %v10728_v32, %v10200_v31  ;;  %v10843_v2 = vrot.slane %v10822_v58, %v10172_v15 }
  0xf0   :  { %1972 = vmatpush1.bf16.msra.mxu0 %v1948_v49  ;;  %2003 = vmatprep.mubr.bf16.mxu0 %v14159_v14  ;;  %v2177_v12 = vsel %vm2175_vm9, %v2170_v0, %v2172_v5  ;;  %v2247_v1 = vpack.c.bf16 %v2236_v60, %v2236_v60  ;;  %v2176_v7 = vsel %vm2175_vm9, %v2172_v5, %v2174_v6 }
  0xf1   :  { %2057 = vmatprep.subr.bf16.mxu0 %v1963_v34  ;;  %14182 = vst [vmem:[#allocation57_spill] sm:$0xff] %v10835_v55  ;;  %v2229_v34 = vmul.f32 %v10808_v26, %v2182_v4  ;;  %v2242_v39 = vpack.c.bf16 %v2231_v56, %v2231_v56  ;;  %14183 = vst [vmem:[#allocation58_spill] sm:$0xff] %v10843_v2  ;;  %v2234_v36 = vmul.f32 %v10817_v57, %v2177_v12 }
  0xf2   :  { %v2235_v6 = vmul.f32 %v10835_v55, %v2176_v7  ;;  %v2278_v5 = vand.u32 %v2247_v1, %v10225_v41  ;;  %v10862_v12 = vrot.slane %v10822_v58, %v10174_v16  ;;  %v2178_v7 = vsel %vm2175_vm9, %v10743_v48, %v2170_v0 }
  0xf3   :  { %8951 = vmatmul.mubr.msk.bf16.vlgmr.msra.gmra.mrb[0].mxu1 %vm284_vm4, %v10813_v11  ;;  %v2475_v49 = vpop.permute.xlu0 %2474  ;;  %v10837_v3 = vpop.permute.xlu1 %2476  ;;  %v2240_v60 = vpack.c.bf16 %v2229_v34, %v2229_v34  ;;  %v2245_v40 = vpack.c.bf16 %v2234_v36, %v2234_v36  ;;  %v10866_v34 = vrot.slane %v10728_v32, %v10194_v24  ;;  %v10877_v1 = vrot.slane %v10822_v58, %v10176_v17 }
  0xf4   :  { %2101 = vmatpush1.bf16.msra.mxu1 %v1966_v8  ;;  %2132 = vmatprep.mubr.bf16.mxu1 %v14159_v14  ;;  %v2488_v4 = vsel %vm2484_vm10, %v2475_v49, %v10837_v3  ;;  %14184 = vst [vmem:[#allocation59_spill] sm:$0xff] %v10862_v12  ;;  %v2246_v32 = vpack.c.bf16 %v2235_v6, %v2235_v6 }
  0xf5   :  { %2323 = vmatprep.subr.bf16.mxu1 %v2266_v10  ;;  %v2263_v10 = vand.u32 %v2242_v39, %v10225_v41  ;;  %v2541_v51 = vmul.f32 %v10843_v2, %v2488_v4  ;;  %14185 = vst [vmem:[#allocation60_spill] sm:$0xff] %v10866_v34  ;;  %14186 = vst [vmem:[#allocation61_spill] sm:$0xff] %v10877_v1  ;;  %v10883_v4 = vrot.slane %v10822_v58, %v10178_v20 }
  0xf6   :  { %v2272_v16 = vand.u32 %v2245_v40, %v10225_v41  ;;  %v2233_v17 = vmul.f32 %v10866_v34, %v2178_v7  ;;  %v10896_v20 = vrot.slane %v10822_v58, %v10196_v25  ;;  %v10906_v6 = vrot.slane %v10822_v58, %v10198_v30 }
  0xf7   :  { %8950 = vmatmul.mubr.msk.bf16.vlgmr.msra.gmra.mrb[0].mxu0 %vm284_vm4, %v10813_v11  ;;  %v2471_v8 = vpop.permute.xlu0 %2470  ;;  %v2473_v56 = vpop.permute.xlu1 %2472  ;;  %14187 = vst [vmem:[#allocation62_spill] sm:$0xff] %v10883_v4  ;;  %v2552_v48 = vpack.c.bf16 %v2541_v51, %v2541_v51 }
  0xf8   :  { %2058 = vmatpush1.bf16.msra.mxu0 %v1960_v29  ;;  %2089 = vmatprep.mubr.bf16.mxu0 %v14159_v14  ;;  %v2490_v39 = vsel %vm2484_vm10, %v2471_v8, %v2473_v56  ;;  %v2257_v29 = vand.u32 %v2240_v60, %v10225_v41  ;;  %v2489_v0 = vsel %vm2484_vm10, %v2473_v56, %v2475_v49  ;;  %v9802_v49 = vld [vmem:[%s14135_s13 + $0x38] sm:$0xff]  }
  0xf9   :  { %2280 = vmatprep.subr.bf16.mxu0 %v2260_v47  ;;  %v2539_v15 = vmul.f32 %v10862_v12, %v2490_v39  ;;  %14188 = vst [vmem:[#allocation63_spill] sm:$0xff] %v10896_v20  ;;  %v2275_v56 = vand.u32 %v2246_v32, %v10225_v41  ;;  %14189 = vst [vmem:[#allocation64_spill] sm:$0xff] %v10906_v6  ;;  %v2575_v7 = vand.u32 %v2552_v48, %v10225_v41 }
  0xfb   :  { %8953 = vmatmul.mubr.msk.bf16.vlgmr.msra.gmra.mrb[4].mxu1 %vm284_vm4, %v10813_v11  ;;  %v2469_v36 = vpop.permute.xlu0 %2468  ;;  %v2483_v47 = vpop.permute.xlu1 %2482 }
  0xfc   :  { %2324 = vmatpush1.bf16.msra.mxu1 %v2263_v10  ;;  %2355 = vmatprep.mubr.bf16.mxu1 %v14159_v14  ;;  %v2492_v60 = vsel %vm2484_vm10, %v2483_v47, %v2469_v36  ;;  %v2540_v10 = vmul.f32 %v10877_v1, %v2489_v0  ;;  %v2491_v40 = vsel %vm2484_vm10, %v2469_v36, %v2471_v8 }
  0xfd   :  { %2409 = vmatprep.subr.bf16.mxu1 %v2278_v5  ;;  %v2550_v5 = vpack.c.bf16 %v2539_v15, %v2539_v15  ;;  %v2545_v39 = vmul.f32 %v10883_v4, %v2492_v60  ;;  %v2538_v0 = vmul.f32 %v10896_v20, %v2491_v40  ;;  %v10919_v15 = vrot.slane %v10822_v58, %v10200_v31 }
  0xfe   :  { %v2551_v30 = vpack.c.bf16 %v2540_v10, %v2540_v10 }
  0xff   :  { %8952 = vmatmul.mubr.msk.bf16.vlgmr.msra.gmra.mrb[4].mxu0 %vm284_vm4, %v10813_v11  ;;  %v2479_v51 = vpop.permute.xlu0 %2478  ;;  %14190 = vst [vmem:[#allocation65_spill] sm:$0xff] %v10919_v15  ;;  %v2569_v36 = vand.u32 %v2550_v5, %v10225_v41  ;;  %v2549_v60 = vpack.c.bf16 %v2538_v0, %v2538_v0 }
 0x100   :  { %2281 = vmatpush1.bf16.msra.mxu0 %v2257_v29  ;;  %2312 = vmatprep.mubr.bf16.mxu0 %v14159_v14  ;;  %v2481_v11 = vpop.permute.xlu1 %2480  ;;  %v2244_v29 = vpack.c.bf16 %v2233_v17, %v2233_v17  ;;  %v2487_v40 = vsel %vm2484_vm10, %v10837_v3, %v2479_v51 }
 0x101   :  { %2366 = vmatprep.subr.bf16.mxu0 %v2272_v16  ;;  %v2486_v32 = vsel %vm2484_vm10, %v2479_v51, %v2481_v11  ;;  %v2556_v16 = vpack.c.bf16 %v2545_v39, %v2545_v39  ;;  %v2485_v17 = vsel %vm2484_vm10, %v2481_v11, %v2483_v47  ;;  %v10933_v11 = vrot.slane %v10822_v58, %v10194_v24  ;;  %v9803_v58 = vld [vmem:[%s14135_s13 + $0x40] sm:$0xff]   ;;  %s14241_s13 = sld [smem:[#allocation115_spill]] }
 0x102   :  { %v2543_v8 = vmul.f32 %v10906_v6, %v2486_v32  ;;  %v2269_v48 = vand.u32 %v2244_v29, %v10225_v41  ;;  %v2544_v31 = vmul.f32 %v10919_v15, %v2485_v17 }
 0x103   :  { %8960 = vmatmul.mubr.msk.bf16.vlgmr.msra.gmra.mrb[0].mxu1 %vm284_vm4, %v9802_v49  ;;  %v2587_v47 = vand.u32 %v2556_v16, %v10225_v41  ;;  %14191 = vst [vmem:[#allocation66_spill] sm:$0xff] %v10933_v11 }
 0x104   :  { %2410 = vmatpush1.bf16.msra.mxu1 %v2275_v56  ;;  %2441 = vmatprep.mubr.bf16.mxu1 %v14159_v14  ;;  %v2572_v56 = vand.u32 %v2551_v30, %v10225_v41  ;;  %v2554_v10 = vpack.c.bf16 %v2543_v8, %v2543_v8  ;;  %v2566_v30 = vand.u32 %v2549_v60, %v10225_v41 }
 0x105   :  { %2632 = vmatprep.subr.bf16.mxu1 %v2575_v7  ;;  %v2555_v5 = vpack.c.bf16 %v2544_v31, %v2544_v31  ;;  %v2542_v7 = vmul.f32 %v10933_v11, %v2487_v40 }
 0x106   :  { %v2581_v39 = vand.u32 %v2554_v10, %v10225_v41 }
 0x107   :  { %8959 = vmatmul.mubr.msk.bf16.vlgmr.msra.gmra.mrb[0].mxu0 %vm284_vm4, %v9802_v49  ;;  %v2584_v3 = vand.u32 %v2555_v5, %v10225_v41  ;;  %v2553_v51 = vpack.c.bf16 %v2542_v7, %v2542_v7 }
 0x108   :  { %2367 = vmatpush1.bf16.msra.mxu0 %v2269_v48  ;;  %2398 = vmatprep.mubr.bf16.mxu0 %v14159_v14 }
 0x109   :  { %2589 = vmatprep.subr.bf16.mxu0 %v2569_v36  ;;  %v2578_v29 = vand.u32 %v2553_v51, %v10225_v41 }
 0x10b   :  { %8962 = vmatmul.mubr.msk.bf16.vlgmr.msra.gmra.mrb[4].mxu1 %vm284_vm4, %v9802_v49 }
 0x10c   :  { %2633 = vmatpush1.bf16.msra.mxu1 %v2572_v56  ;;  %2664 = vmatprep.mubr.bf16.mxu1 %v14159_v14 }
 0x10d   :  { %2718 = vmatprep.subr.bf16.mxu1 %v2587_v47 }
 0x10f   :  { %8961 = vmatmul.mubr.msk.bf16.vlgmr.msra.gmra.mrb[4].mxu0 %vm284_vm4, %v9802_v49 }
 0x110   :  { %2590 = vmatpush1.bf16.msra.mxu0 %v2566_v30  ;;  %2621 = vmatprep.mubr.bf16.mxu0 %v14159_v14 }
 0x111   :  { %2675 = vmatprep.subr.bf16.mxu0 %v2581_v39 }
 0x113   :  { %8969 = vmatmul.mubr.msk.bf16.vlgmr.msra.gmra.mrb[0].mxu1 %vm284_vm4, %v9803_v58 }
 0x114   :  { %2719 = vmatpush1.bf16.msra.mxu1 %v2584_v3  ;;  %2750 = vmatprep.mubr.bf16.mxu1 %v14159_v14 }
 0x117   :  { %8968 = vmatmul.mubr.msk.bf16.vlgmr.msra.gmra.mrb[0].mxu0 %vm284_vm4, %v9803_v58 }
 0x118   :  { %2676 = vmatpush1.bf16.msra.mxu0 %v2578_v29  ;;  %2707 = vmatprep.mubr.bf16.mxu0 %v14159_v14 }
 0x119   :  { %v10958_v49 = vpop.permute.xlu0 %2781  ;;  %v10960_v0 = vpop.permute.xlu1 %2786 }
 0x11b   :  { %8971 = vmatmul.mubr.msk.bf16.vlgmr.msra.gmra.mrb[4].mxu1 %vm284_vm4, %v9803_v58 }
 0x11c   :  { %3054 = vmatprep.mubr.bf16.mxu1 %v14159_v14 }
 0x11f   :  { %8970 = vmatmul.mubr.msk.bf16.vlgmr.msra.gmra.mrb[4].mxu0 %vm284_vm4, %v9803_v58 }
 0x120   :  { %3011 = vmatprep.mubr.bf16.mxu0 %v14159_v14 }
 0x1e6   :  { %v2666_v32 = vpop.f32.mrb[0].mxu1 }
 0x1e7   :  { %v2791_v41 = vadd.f32 %v10958_v49, %v2666_v32  ;;  %v2668_v16 = vpop.f32.mrb[1].mxu1 }
 0x1e8   :  { %v2670_v17 = vpop.f32.mrb[2].mxu1 }
 0x1e9   :  { %v10963_v8 = vmax.f32 %v2791_v41, 0.0  ;;  %v2799_v36 = vadd.f32 %v10960_v0, %v2670_v17  ;;  %v2672_v48 = vpop.f32.mrb[3].mxu1 }
 0x1ea   :  { %v2623_v60 = vpop.f32.mrb[0].mxu0 }
 0x1eb   :  { %14192 = vst [vmem:[#allocation67_spill] sm:$0xff] %v10963_v8  ;;  %v10966_v56 = vmax.f32 %v2799_v36, 0.0  ;;  %v2789_v31 = vadd.f32 %v10958_v49, %v2623_v60  ;;  %v2625_v10 = vpop.f32.mrb[1].mxu0  ;;  %2903 = vrot.lane.b32.xlu1 %v10963_v8, %s9850_s6  ;;  %v2792_v36 = vadd.f32 %v10958_v49, %v2668_v16  ;;  %v2800_v60 = vadd.f32 %v10960_v0, %v2672_v48 }
 0x1ec   :  { %v2627_v47 = vpop.f32.mrb[2].mxu0 }
 0x1ed   :  { %14193 = vst [vmem:[#allocation68_spill] sm:$0xff] %v10966_v56  ;;  %v10971_v40 = vmax.f32 %v2789_v31, 0.0  ;;  %v2797_v30 = vadd.f32 %v10960_v0, %v2627_v47  ;;  %v2629_v5 = vpop.f32.mrb[3].mxu0  ;;  %2905 = vrot.lane.b32.xlu0 %v10966_v56, %s9850_s6  ;;  %v11022_v31 = vmax.f32 %v2792_v36, 0.0  ;;  %v2790_v47 = vadd.f32 %v10958_v49, %v2625_v10 }
 0x1ee   :  { %v2752_v39 = vpop.f32.mrb[4].mxu1  ;;  %v2798_v24 = vadd.f32 %v10960_v0, %v2629_v5 }
 0x1ef   :  { %14194 = vst [vmem:[#allocation69_spill] sm:$0xff] %v10971_v40  ;;  %v10976_v7 = vmax.f32 %v2797_v30, 0.0  ;;  %v10978_v58 = vpop.f32.mrb[5].mxu1  ;;  %2895 = vrot.lane.b32.xlu1 %v10971_v40, %s9850_s6  ;;  %14196 = vst [vmem:[#allocation71_spill] sm:$0xff] %v11022_v31  ;;  %v11027_v30 = vmax.f32 %v2800_v60, 0.0  ;;  %v11032_v16 = vmax.f32 %v2790_v47, 0.0 }
 0x1f0   :  { %v2756_v3 = vpop.f32.mrb[6].mxu1  ;;  %v11036_v48 = vmax.f32 %v2798_v24, 0.0  ;;  %v2795_v24 = vadd.f32 %v10958_v49, %v2752_v39 }
 0x1f1   :  { %14195 = vst [vmem:[#allocation70_spill] sm:$0xff] %v10976_v7  ;;  %v10982_v51 = vpop.f32.mrb[7].mxu1  ;;  %2897 = vrot.lane.b32.xlu0 %v10976_v7, %s9850_s6  ;;  %14197 = vst [vmem:[#allocation72_spill] sm:$0xff] %v11027_v30  ;;  %v2803_v10 = vadd.f32 %v10960_v0, %v2756_v3 }
 0x1f2   :  { %v2709_v29 = vpop.f32.mrb[4].mxu0  ;;  %14198 = vst [vmem:[#allocation73_spill] sm:$0xff] %v11032_v16  ;;  %14199 = vst [vmem:[#allocation74_spill] sm:$0xff] %v11036_v48  ;;  %v11074_v5 = vmax.f32 %v2795_v24, 0.0  ;;  %v2804_v24 = vadd.f32 %v10960_v0, %v10982_v51 }
 0x1f3   :  { %v10986_v32 = vpop.f32.mrb[5].mxu0  ;;  %2829 = vrot.lane.b32.xlu1 %v10963_v8, %s9852_s1  ;;  %v2793_v36 = vadd.f32 %v10958_v49, %v2709_v29  ;;  %v11079_v60 = vmax.f32 %v2803_v10, 0.0  ;;  %v2796_v29 = vadd.f32 %v10958_v49, %v10978_v58 }
 0x1f4   :  { %v2713_v41 = vpop.f32.mrb[6].mxu0  ;;  %14200 = vst [vmem:[#allocation75_spill] sm:$0xff] %v11074_v5  ;;  %v2794_v58 = vadd.f32 %v10958_v49, %v10986_v32 }
 0x1f5   :  { %v10990_v17 = vpop.f32.mrb[7].mxu0  ;;  %2831 = vrot.lane.b32.xlu0 %v10966_v56, %s9852_s1  ;;  %14201 = vst [vmem:[#allocation76_spill] sm:$0xff] %v11079_v60  ;;  %v2801_v47 = vadd.f32 %v10960_v0, %v2713_v41  ;;  %v11084_v39 = vmax.f32 %v2793_v36, 0.0  ;;  %v11118_v41 = vmax.f32 %v2796_v29, 0.0  ;;  %v11130_v36 = vmax.f32 %v2804_v24, 0.0 }
 0x1f6   :  { %v11136_v51 = vmax.f32 %v2794_v58, 0.0 }
 0x1f7   :  { %2821 = vrot.lane.b32.xlu1 %v10971_v40, %s9852_s1  ;;  %14202 = vst [vmem:[#allocation77_spill] sm:$0xff] %v11084_v39  ;;  %v11088_v3 = vmax.f32 %v2801_v47, 0.0  ;;  %14204 = vst [vmem:[#allocation79_spill] sm:$0xff] %v11118_v41  ;;  %v2802_v47 = vadd.f32 %v10960_v0, %v10990_v17 }
 0x1f8   :  { %14205 = vst [vmem:[#allocation80_spill] sm:$0xff] %v11130_v36  ;;  %14206 = vst [vmem:[#allocation81_spill] sm:$0xff] %v11136_v51 }
 0x1f9   :  { %2823 = vrot.lane.b32.xlu0 %v10976_v7, %s9852_s1  ;;  %14203 = vst [vmem:[#allocation78_spill] sm:$0xff] %v11088_v3  ;;  %v11142_v49 = vmax.f32 %v2802_v47, 0.0 }
 0x1fb   :  { %3339 = vrot.lane.b32.xlu1 %v10963_v8, %s9853_s7  ;;  %14207 = vst [vmem:[#allocation82_spill] sm:$0xff] %v11142_v49 }
 0x1fd   :  { %3341 = vrot.lane.b32.xlu0 %v10966_v56, %s9853_s7 }
 0x1ff   :  { %3331 = vrot.lane.b32.xlu1 %v10971_v40, %s9853_s7 }
 0x201   :  { %3333 = vrot.lane.b32.xlu0 %v10976_v7, %s9853_s7 }
 0x203   :  { %3610 = vrot.lane.b32.xlu1 %v10963_v8, %s9854_s10 }
 0x205   :  { %3612 = vrot.lane.b32.xlu0 %v10966_v56, %s9854_s10 }
 0x207   :  { %3602 = vrot.lane.b32.xlu1 %v10971_v40, %s9854_s10 }
 0x209   :  { %3604 = vrot.lane.b32.xlu0 %v10976_v7, %s9854_s10 }
 0x20b   :  { %4088 = vrot.lane.b32.xlu1 %v10963_v8, %s9855_s2 }
 0x20d   :  { %4090 = vrot.lane.b32.xlu0 %v10966_v56, %s9855_s2 }
 0x20f   :  { %4080 = vrot.lane.b32.xlu1 %v10971_v40, %s9855_s2 }
 0x211   :  { %4082 = vrot.lane.b32.xlu0 %v10976_v7, %s9855_s2 }
 0x213   :  { %2907 = vrot.lane.b32.xlu1 %v11022_v31, %s9850_s6 }
 0x215   :  { %2909 = vrot.lane.b32.xlu0 %v11027_v30, %s9850_s6 }
 0x217   :  { %2899 = vrot.lane.b32.xlu1 %v11032_v16, %s9850_s6 }
 0x219   :  { %2901 = vrot.lane.b32.xlu0 %v11036_v48, %s9850_s6 }
 0x21b   :  { %2833 = vrot.lane.b32.xlu1 %v11022_v31, %s9852_s1 }
 0x21d   :  { %2835 = vrot.lane.b32.xlu0 %v11027_v30, %s9852_s1 }
 0x21f   :  { %2825 = vrot.lane.b32.xlu1 %v11032_v16, %s9852_s1 }
 0x221   :  { %2827 = vrot.lane.b32.xlu0 %v11036_v48, %s9852_s1 }
 0x223   :  { %3343 = vrot.lane.b32.xlu1 %v11022_v31, %s9853_s7 }
 0x225   :  { %3345 = vrot.lane.b32.xlu0 %v11027_v30, %s9853_s7 }
 0x227   :  { %3335 = vrot.lane.b32.xlu1 %v11032_v16, %s9853_s7 }
 0x229   :  { %3337 = vrot.lane.b32.xlu0 %v11036_v48, %s9853_s7 }
 0x22b   :  { %3614 = vrot.lane.b32.xlu1 %v11022_v31, %s9854_s10 }
 0x22d   :  { %3616 = vrot.lane.b32.xlu0 %v11027_v30, %s9854_s10 }
 0x22f   :  { %3606 = vrot.lane.b32.xlu1 %v11032_v16, %s9854_s10 }
 0x231   :  { %3608 = vrot.lane.b32.xlu0 %v11036_v48, %s9854_s10 }
 0x233   :  { %4092 = vrot.lane.b32.xlu1 %v11022_v31, %s9855_s2 }
 0x235   :  { %4094 = vrot.lane.b32.xlu0 %v11027_v30, %s9855_s2 }
 0x237   :  { %4084 = vrot.lane.b32.xlu1 %v11032_v16, %s9855_s2 }
 0x239   :  { %4086 = vrot.lane.b32.xlu0 %v11036_v48, %s9855_s2 }
 0x23b   :  { %2919 = vrot.lane.b32.xlu1 %v11074_v5, %s9850_s6 }
 0x23d   :  { %2921 = vrot.lane.b32.xlu0 %v11079_v60, %s9850_s6 }
 0x23f   :  { %2911 = vrot.lane.b32.xlu1 %v11084_v39, %s9850_s6 }
 0x241   :  { %2913 = vrot.lane.b32.xlu0 %v11088_v3, %s9850_s6 }
 0x243   :  { %2845 = vrot.lane.b32.xlu1 %v11074_v5, %s9852_s1 }
 0x245   :  { %2847 = vrot.lane.b32.xlu0 %v11079_v60, %s9852_s1 }
 0x247   :  { %2837 = vrot.lane.b32.xlu1 %v11084_v39, %s9852_s1 }
 0x249   :  { %2839 = vrot.lane.b32.xlu0 %v11088_v3, %s9852_s1 }
 0x24b   :  { %3355 = vrot.lane.b32.xlu1 %v11074_v5, %s9853_s7 }
 0x24d   :  { %3357 = vrot.lane.b32.xlu0 %v11079_v60, %s9853_s7 }
 0x24f   :  { %3347 = vrot.lane.b32.xlu1 %v11084_v39, %s9853_s7 }
 0x251   :  { %3349 = vrot.lane.b32.xlu0 %v11088_v3, %s9853_s7 }
 0x253   :  { %3626 = vrot.lane.b32.xlu1 %v11074_v5, %s9854_s10 }
 0x255   :  { %3628 = vrot.lane.b32.xlu0 %v11079_v60, %s9854_s10 }
 0x257   :  { %3618 = vrot.lane.b32.xlu1 %v11084_v39, %s9854_s10 }
 0x259   :  { %3620 = vrot.lane.b32.xlu0 %v11088_v3, %s9854_s10 }
 0x25b   :  { %4096 = vrot.lane.b32.xlu1 %v11084_v39, %s9855_s2 }
 0x25d   :  { %v2904_v10 = vpop.permute.xlu1 %2903  ;;  %4098 = vrot.lane.b32.xlu0 %v11088_v3, %s9855_s2 }
 0x25f   :  { %v2906_v29 = vpop.permute.xlu0 %2905  ;;  %2923 = vrot.lane.b32.xlu1 %v11118_v41, %s9850_s6 }
 0x261   :  { %v11138_v25 = vpop.permute.xlu1 %2895  ;;  %2925 = vrot.lane.b32.xlu0 %v11130_v36, %s9850_s6 }
 0x263   :  { %v11144_v32 = vpop.permute.xlu0 %2897  ;;  %2915 = vrot.lane.b32.xlu1 %v11136_v51, %s9850_s6 }
 0x265   :  { %v11148_v24 = vpop.permute.xlu1 %2829  ;;  %2917 = vrot.lane.b32.xlu0 %v11142_v49, %s9850_s6 }
 0x267   :  { %v11152_v0 = vpop.permute.xlu0 %2831  ;;  %4104 = vrot.lane.b32.xlu1 %v11074_v5, %s9855_s2 }
 0x269   :  { %v11156_v17 = vpop.permute.xlu1 %2821  ;;  %4106 = vrot.lane.b32.xlu0 %v11079_v60, %s9855_s2 }
 0x26b   :  { %v11160_v58 = vpop.permute.xlu0 %2823  ;;  %2849 = vrot.lane.b32.xlu1 %v11118_v41, %s9852_s1 }
 0x26d   :  { %v11164_v47 = vpop.permute.xlu1 %3339  ;;  %4365 = vrot.lane.b32.xlu0 %v11027_v30, %s9856_s4 }
 0x26f   :  { %v11168_v6 = vpop.permute.xlu0 %3341  ;;  %2841 = vrot.lane.b32.xlu1 %v11136_v51, %s9852_s1 }
 0x271   :  { %v11172_v11 = vpop.permute.xlu1 %3331  ;;  %2851 = vrot.lane.b32.xlu0 %v11130_v36, %s9852_s1 }
 0x273   :  { %v11176_v15 = vpop.permute.xlu0 %3333  ;;  %3359 = vrot.lane.b32.xlu1 %v11118_v41, %s9853_s7 }
 0x275   :  { %v11180_v4 = vpop.permute.xlu1 %3610  ;;  %2843 = vrot.lane.b32.xlu0 %v11142_v49, %s9852_s1 }
 0x276   :  { %14208 = vst [vmem:[#allocation83_spill] sm:$0xff] %v11180_v4 }
 0x277   :  { %v11184_v20 = vpop.permute.xlu0 %3612  ;;  %3351 = vrot.lane.b32.xlu1 %v11136_v51, %s9853_s7 }
 0x278   :  { %14209 = vst [vmem:[#allocation84_spill] sm:$0xff] %v11184_v20 }
 0x279   :  { %v11188_v12 = vpop.permute.xlu1 %3602  ;;  %4369 = vrot.lane.b32.xlu0 %v11088_v3, %s9856_s4 }
 0x27a   :  { %14210 = vst [vmem:[#allocation85_spill] sm:$0xff] %v11188_v12 }
 0x27b   :  { %v11192_v57 = vpop.permute.xlu0 %3604  ;;  %3630 = vrot.lane.b32.xlu1 %v11118_v41, %s9854_s10 }
 0x27c   :  { %14211 = vst [vmem:[#allocation86_spill] sm:$0xff] %v11192_v57 }
 0x27d   :  { %v11196_v1 = vpop.permute.xlu1 %4088  ;;  %4361 = vrot.lane.b32.xlu0 %v10966_v56, %s9856_s4 }
 0x27e   :  { %14212 = vst [vmem:[#allocation87_spill] sm:$0xff] %v11196_v1 }
 0x27f   :  { %v11200_v34 = vpop.permute.xlu0 %4090  ;;  %3622 = vrot.lane.b32.xlu1 %v11136_v51, %s9854_s10 }
 0x280   :  { %14213 = vst [vmem:[#allocation88_spill] sm:$0xff] %v11200_v34 }
 0x281   :  { %v11204_v2 = vpop.permute.xlu1 %4080  ;;  %3361 = vrot.lane.b32.xlu0 %v11130_v36, %s9853_s7 }
 0x282   :  { %14214 = vst [vmem:[#allocation89_spill] sm:$0xff] %v11204_v2 }
 0x283   :  { %v11208_v55 = vpop.permute.xlu0 %4082  ;;  %4108 = vrot.lane.b32.xlu1 %v11118_v41, %s9855_s2 }
 0x284   :  { %14215 = vst [vmem:[#allocation90_spill] sm:$0xff] %v11208_v55 }
 0x285   :  { %v11212_v9 = vpop.permute.xlu1 %2907  ;;  %3353 = vrot.lane.b32.xlu0 %v11142_v49, %s9853_s7 }
 0x286   :  { %v2935_v26 = vsel %vm206_vm1, %v2904_v10, %v11212_v9 }
 0x287   :  { %v11219_v46 = vpop.permute.xlu0 %2909  ;;  %4100 = vrot.lane.b32.xlu1 %v11136_v51, %s9855_s2  ;;  %v2946_v55 = vmul.f32 %v2935_v26, %v10184_v21 }
 0x288   :  { %v2936_v2 = vsel %vm206_vm1, %v2906_v29, %v11219_v46 }
 0x289   :  { %v2954_v1 = vmul.f32 %v2936_v2, %v10184_v21  ;;  %v2900_v34 = vpop.permute.xlu1 %2899  ;;  %4357 = vrot.lane.b32.xlu0 %v11036_v48, %s9856_s4 }
 0x28a   :  { %v2937_v44 = vsel %vm206_vm1, %v2900_v34, %v2904_v10  ;;  %v2939_v12 = vsel %vm206_vm1, %v11138_v25, %v2900_v34 }
 0x28b   :  { %v2902_v50 = vpop.permute.xlu0 %2901  ;;  %4363 = vrot.lane.b32.xlu1 %v11022_v31, %s9856_s4  ;;  %v2965_v35 = vpack.c.bf16 %v2954_v1, %v2946_v55  ;;  %v2944_v26 = vmul.f32 %v2939_v12, %v10187_v22  ;;  %v2945_v10 = vmul.f32 %v2937_v44, %v10190_v23 }
 0x28c   :  { %v2938_v2 = vsel %vm206_vm1, %v2902_v50, %v2906_v29  ;;  %v2940_v21 = vsel %vm206_vm1, %v11144_v32, %v2902_v50  ;;  %v11257_v50 = vld [vmem:[%s14217_s5 + $0x8] sm:$0xff]  }
 0x28d   :  { %v2952_v62 = vmul.f32 %v2940_v21, %v10187_v22  ;;  %v2953_v34 = vmul.f32 %v2938_v2, %v10190_v23  ;;  %v11246_v57 = vpop.permute.xlu1 %2833  ;;  %3022 = vmatprep.subr.bf16.mxu1 %v2965_v35  ;;  %4353 = vrot.lane.b32.xlu0 %v10976_v7, %s9856_s4 }
 0x28e   :  { %14216 = vst [vmem:[#allocation91_spill] sm:$0xff] %v11246_v57 }
 0x28f   :  { %v2964_v55 = vpack.c.bf16 %v2953_v34, %v2945_v10  ;;  %v11250_v12 = vpop.permute.xlu0 %2835  ;;  %4367 = vrot.lane.b32.xlu1 %v11084_v39, %s9856_s4  ;;  %v2963_v1 = vpack.c.bf16 %v2952_v62, %v2944_v26 }
 0x291   :  { %v11259_v21 = vpop.permute.xlu1 %2825  ;;  %2979 = vmatprep.subr.bf16.mxu0 %v2963_v1  ;;  %3023 = vmatpush1.bf16.msra.mxu1 %v2964_v55 }
 0x292   :  { %3632 = vrot.lane.b32.xlu0 %v11130_v36, %s9854_s10 }
 0x293   :  { %v11263_v35 = vpop.permute.xlu0 %2827  ;;  %4359 = vrot.lane.b32.xlu1 %v10963_v8, %s9856_s4 }
 0x294   :  { %8976 = vmatmul.mubr.msk.bf16.vlgmr.msra.gmra.mrb[8].mxu1 %vm2975_vm11, %v11257_v50 }
 0x295   :  { %v11269_v62 = vpop.permute.xlu1 %3343  ;;  %3140 = vmatprep.mubr.bf16.mxu1 %v14159_v14 }
 0x296   :  { %3624 = vrot.lane.b32.xlu0 %v11142_v49, %s9854_s10 }
 0x297   :  { %v11274_v44 = vpop.permute.xlu0 %3345  ;;  %4355 = vrot.lane.b32.xlu1 %v11032_v16, %s9856_s4 }
 0x299   :  { %v11278_v29 = vpop.permute.xlu1 %3335 }
 0x29a   :  { %4377 = vrot.lane.b32.xlu0 %v11079_v60, %s9856_s4 }
 0x29b   :  { %v11282_v26 = vpop.permute.xlu0 %3337  ;;  %4351 = vrot.lane.b32.xlu1 %v10971_v40, %s9856_s4 }
 0x29d   :  { %v11286_v2 = vpop.permute.xlu1 %3614 }
 0x29e   :  { %14218 = vst [vmem:[#allocation92_spill] sm:$0xff] %v11286_v2  ;;  %4636 = vrot.lane.b32.xlu0 %v11027_v30, %s9857_s8 }
 0x29f   :  { %v11290_v10 = vpop.permute.xlu0 %3616  ;;  %4379 = vrot.lane.b32.xlu1 %v11118_v41, %s9856_s4 }
 0x2a0   :  { %14219 = vst [vmem:[#allocation93_spill] sm:$0xff] %v11290_v10 }
 0x2a1   :  { %v11294_v34 = vpop.permute.xlu1 %3606 }
 0x2a2   :  { %14220 = vst [vmem:[#allocation94_spill] sm:$0xff] %v11294_v34  ;;  %4640 = vrot.lane.b32.xlu0 %v11088_v3, %s9857_s8 }
 0x2a3   :  { %v11298_v55 = vpop.permute.xlu0 %3608  ;;  %4375 = vrot.lane.b32.xlu1 %v11074_v5, %s9856_s4 }
 0x2a4   :  { %14221 = vst [vmem:[#allocation95_spill] sm:$0xff] %v11298_v55 }
 0x2a5   :  { %v11302_v1 = vpop.permute.xlu1 %4092 }
 0x2a6   :  { %14222 = vst [vmem:[#allocation96_spill] sm:$0xff] %v11302_v1  ;;  %4632 = vrot.lane.b32.xlu0 %v10966_v56, %s9857_s8 }
 0x2a7   :  { %v11306_v23 = vpop.permute.xlu0 %4094  ;;  %4371 = vrot.lane.b32.xlu1 %v11136_v51, %s9856_s4 }
 0x2a8   :  { %14223 = vst [vmem:[#allocation97_spill] sm:$0xff] %v11306_v23 }
 0x2a9   :  { %v11310_v22 = vpop.permute.xlu1 %4084 }
 0x2aa   :  { %14224 = vst [vmem:[#allocation98_spill] sm:$0xff] %v11310_v22  ;;  %4628 = vrot.lane.b32.xlu0 %v11036_v48, %s9857_s8 }
 0x2ab   :  { %v11314_v34 = vpop.permute.xlu0 %4086  ;;  %4634 = vrot.lane.b32.xlu1 %v11022_v31, %s9857_s8 }
 0x2ac   :  { %14225 = vst [vmem:[#allocation99_spill] sm:$0xff] %v11314_v34 }
 0x2ad   :  { %v2920_v55 = vpop.permute.xlu1 %2919 }
 0x2ae   :  { %4624 = vrot.lane.b32.xlu0 %v10976_v7, %s9857_s8 }
 0x2af   :  { %v11320_v1 = vpop.permute.xlu0 %2921  ;;  %4638 = vrot.lane.b32.xlu1 %v11084_v39, %s9857_s8 }
 0x2b1   :  { %v2912_v23 = vpop.permute.xlu1 %2911 }
 0x2b2   :  { %4110 = vrot.lane.b32.xlu0 %v11130_v36, %s9855_s2 }
 0x2b3   :  { %4630 = vrot.lane.b32.xlu1 %v10963_v8, %s9857_s8  ;;  %v2914_v22 = vpop.permute.xlu0 %2913 }
 0x2b5   :  { %v11328_v34 = vpop.permute.xlu1 %2845 }
 0x2b6   :  { %4648 = vrot.lane.b32.xlu0 %v11079_v60, %s9857_s8 }
 0x2b7   :  { %4626 = vrot.lane.b32.xlu1 %v11032_v16, %s9857_s8  ;;  %v11334_v20 = vpop.permute.xlu0 %2847 }
 0x2b9   :  { %v11336_v10 = vpop.permute.xlu1 %2837 }
 0x2ba   :  { %4102 = vrot.lane.b32.xlu0 %v11142_v49, %s9855_s2 }
 0x2bb   :  { %4622 = vrot.lane.b32.xlu1 %v10971_v40, %s9857_s8  ;;  %v11342_v4 = vpop.permute.xlu0 %2839 }
 0x2bd   :  { %v11344_v2 = vpop.permute.xlu1 %3355 }
 0x2be   :  { %14226 = vst [vmem:[#allocation100_spill] sm:$0xff] %v11344_v2  ;;  %4907 = vrot.lane.b32.xlu0 %v11027_v30, %s14227_s9 }
 0x2bf   :  { %4650 = vrot.lane.b32.xlu1 %v11118_v41, %s9857_s8  ;;  %v11350_v19 = vpop.permute.xlu0 %3357 }
 0x2c0   :  { %14228 = vst [vmem:[#allocation101_spill] sm:$0xff] %v11350_v19 }
 0x2c1   :  { %v11352_v28 = vpop.permute.xlu1 %3347 }
 0x2c2   :  { %14229 = vst [vmem:[#allocation102_spill] sm:$0xff] %v11352_v28  ;;  %4381 = vrot.lane.b32.xlu0 %v11130_v36, %s9856_s4 }
 0x2c3   :  { %4646 = vrot.lane.b32.xlu1 %v11074_v5, %s9857_s8  ;;  %v11358_v27 = vpop.permute.xlu0 %3349 }
 0x2c4   :  { %14230 = vst [vmem:[#allocation103_spill] sm:$0xff] %v11358_v27 }
 0x2c5   :  { %v11360_v61 = vpop.permute.xlu1 %3626 }
 0x2c6   :  { %14231 = vst [vmem:[#allocation104_spill] sm:$0xff] %v11360_v61  ;;  %4911 = vrot.lane.b32.xlu0 %v11088_v3, %s14227_s9 }
 0x2c7   :  { %4642 = vrot.lane.b32.xlu1 %v11136_v51, %s9857_s8  ;;  %v11366_v30 = vpop.permute.xlu0 %3628 }
 0x2c8   :  { %14232 = vst [vmem:[#allocation105_spill] sm:$0xff] %v11366_v30 }
 0x2c9   :  { %v11368_v19 = vpop.permute.xlu1 %3618 }
 0x2ca   :  { %14233 = vst [vmem:[#allocation106_spill] sm:$0xff] %v11368_v19  ;;  %4373 = vrot.lane.b32.xlu0 %v11142_v49, %s9856_s4  ;;  %v2862_v19 = vsel %vm119_vm3, %v11152_v0, %v11250_v12 }
 0x2cb   :  { %4905 = vrot.lane.b32.xlu1 %v11022_v31, %s14227_s9  ;;  %v11374_v28 = vpop.permute.xlu0 %3620 }
 0x2cc   :  { %14234 = vst [vmem:[#allocation107_spill] sm:$0xff] %v11374_v28  ;;  %v2934_v28 = vsel %vm206_vm1, %v11219_v46, %v2914_v22  ;;  %v2865_v46 = vsel %vm119_vm3, %v11156_v17, %v11259_v21 }
 0x2cd   :  { %v11376_v27 = vpop.permute.xlu1 %4096 }
 0x2ce   :  { %14235 = vst [vmem:[#allocation108_spill] sm:$0xff] %v11376_v27  ;;  %4903 = vrot.lane.b32.xlu0 %v10966_v56, %s14227_s9  ;;  %v2880_v56 = vmul.f32 %v2862_v19, %v10262_v63 }
 0x2cf   :  { %4909 = vrot.lane.b32.xlu1 %v11084_v39, %s14227_s9  ;;  %v11382_v3 = vpop.permute.xlu0 %4098  ;;  %v2861_v39 = vsel %vm119_vm3, %v11148_v24, %v11246_v57  ;;  %v2864_v57 = vsel %vm119_vm3, %v11263_v35, %v11152_v0 }
 0x2d0   :  { %14236 = vst [vmem:[#allocation109_spill] sm:$0xff] %v11382_v3 }
 0x2d1   :  { %v2924_v30 = vpop.permute.xlu1 %2923 }
 0x2d2   :  { %v2927_v31 = vsel %vm206_vm1, %v2920_v55, %v2924_v30  ;;  %v2941_v27 = vsel %vm206_vm1, %v2924_v30, %v11138_v25  ;;  %4652 = vrot.lane.b32.xlu0 %v11130_v36, %s9857_s8 }
 0x2d3   :  { %4901 = vrot.lane.b32.xlu1 %v10963_v8, %s14227_s9  ;;  %v2926_v3 = vpop.permute.xlu0 %2925  ;;  %v2943_v61 = vmul.f32 %v2941_v27, %v10231_v43  ;;  %v2950_v2 = vmul.f32 %v2927_v31, %v10205_v33 }
 0x2d4   :  { %v2928_v25 = vsel %vm206_vm1, %v11320_v1, %v2926_v3  ;;  %v2942_v30 = vsel %vm206_vm1, %v2926_v3, %v11144_v32  ;;  %v2866_v3 = vsel %vm119_vm3, %v11160_v58, %v11263_v35  ;;  %v2933_v32 = vsel %vm206_vm1, %v11212_v9, %v2912_v23 }
 0x2d5   :  { %v2951_v8 = vmul.f32 %v2942_v30, %v10231_v43  ;;  %v2958_v19 = vmul.f32 %v2928_v25, %v10205_v33  ;;  %v2916_v51 = vpop.permute.xlu1 %2915 }
 0x2d6   :  { %v2929_v27 = vsel %vm206_vm1, %v2916_v51, %v2920_v55  ;;  %v2931_v31 = vsel %vm206_vm1, %v2912_v23, %v2916_v51  ;;  %4899 = vrot.lane.b32.xlu0 %v11036_v48, %s14227_s9  ;;  %v2955_v51 = vmul.f32 %v2934_v28, %v10228_v42  ;;  %v2863_v28 = vsel %vm119_vm3, %v11259_v21, %v11148_v24 }
 0x2d7   :  { %v2962_v25 = vpack.c.bf16 %v2951_v8, %v2943_v61  ;;  %4897 = vrot.lane.b32.xlu1 %v11032_v16, %s14227_s9  ;;  %v2918_v0 = vpop.permute.xlu0 %2917  ;;  %v2969_v55 = vpack.c.bf16 %v2958_v19, %v2950_v2  ;;  %v2948_v30 = vmul.f32 %v2931_v31, %v10240_v52  ;;  %v2949_v43 = vmul.f32 %v2929_v27, %v10243_v53 }
 0x2d8   :  { %v2930_v33 = vsel %vm206_vm1, %v2918_v0, %v11320_v1  ;;  %v2932_v35 = vsel %vm206_vm1, %v2914_v22, %v2918_v0  ;;  %v2878_v8 = vmul.f32 %v2866_v3, %v10281_v37  ;;  %v2947_v2 = vmul.f32 %v2933_v32, %v10228_v42 }
 0x2d9   :  { %v2956_v23 = vmul.f32 %v2932_v35, %v10240_v52  ;;  %v2957_v61 = vmul.f32 %v2930_v33, %v10243_v53  ;;  %v11448_v9 = vpop.permute.xlu1 %4104  ;;  %2980 = vmatpush1.bf16.msra.mxu0 %v2962_v25  ;;  %3108 = vmatprep.subr.bf16.mxu1 %v2969_v55  ;;  %v2872_v22 = vmul.f32 %v2861_v39, %v10262_v63 }
 0x2da   :  { %4644 = vrot.lane.b32.xlu0 %v11142_v49, %s9857_s8  ;;  %v2879_v33 = vmul.f32 %v2864_v57, %v10285_v38  ;;  %v2870_v24 = vmul.f32 %v2865_v46, %v10281_v37  ;;  %v2966_v21 = vpack.c.bf16 %v2955_v51, %v2947_v2  ;;  %v2871_v31 = vmul.f32 %v2863_v28, %v10285_v38  ;;  %v11516_v28 = vld [vmem:[%s14217_s5] sm:$0xff]   ;;  %v14261_v38 = vld [vmem:[#allocation25_spill] sm:$0xff] }
 0x2db   :  { %v2968_v1 = vpack.c.bf16 %v2957_v61, %v2949_v43  ;;  %4893 = vrot.lane.b32.xlu1 %v10971_v40, %s14227_s9  ;;  %v11462_v19 = vpop.permute.xlu0 %4106  ;;  %v2967_v27 = vpack.c.bf16 %v2956_v23, %v2948_v30  ;;  %v2890_v39 = vpack.c.bf16 %v2880_v56, %v2872_v22  ;;  %v3371_v0 = vsel %vm708_vm5, %v11164_v47, %v11269_v62 }
 0x2dc   :  { %8975 = vmatmul.mubr.msk.bf16.vlgmr.msra.gmra.mrb[8].mxu0 %vm2975_vm11, %v11257_v50  ;;  %v2888_v43 = vpack.c.bf16 %v2878_v8, %v2870_v24  ;;  %v2889_v57 = vpack.c.bf16 %v2879_v33, %v2871_v31  ;;  %v3376_v55 = vsel %vm708_vm5, %v11176_v15, %v11282_v26  ;;  %v2860_v30 = vsel %vm119_vm3, %v11250_v12, %v11342_v4 }
 0x2dd   :  { %v2850_v3 = vpop.permute.xlu1 %2849  ;;  %3065 = vmatprep.subr.bf16.mxu0 %v2967_v27  ;;  %3109 = vmatpush1.bf16.msra.mxu1 %v2968_v1  ;;  %v3374_v1 = vsel %vm708_vm5, %v11282_v26, %v11168_v6  ;;  %v3388_v24 = vmul.f32 %v3376_v55, %v10377_v18  ;;  %v14239_v26 = vld [vmem:[#allocation17_spill] sm:$0xff] }
 0x2de   :  { %4895 = vrot.lane.b32.xlu0 %v10976_v7, %s14227_s9  ;;  %3066 = vmatpush1.bf16.msra.mxu0 %v2966_v21  ;;  %v2867_v56 = vsel %vm119_vm3, %v2850_v3, %v11156_v17  ;;  %v2853_v25 = vsel %vm119_vm3, %v11328_v34, %v2850_v3  ;;  %v3372_v17 = vsel %vm708_vm5, %v11168_v6, %v11274_v44  ;;  %v14237_v21 = vld [vmem:[#allocation91_spill] sm:$0xff] }
 0x2df   :  { %3202 = vmatprep.subr.bf16.mxu1 %v2890_v39  ;;  %4921 = vrot.lane.b32.xlu1 %v11118_v41, %s14227_s9  ;;  %v11472_v46 = vpop.permute.xlu0 %4365  ;;  %v2869_v35 = vmul.f32 %v2867_v56, %v10300_v54  ;;  %v2876_v12 = vmul.f32 %v2853_v25, %v10312_v59  ;;  %v2859_v31 = vsel %vm119_vm3, %v14237_v21, %v11336_v10  ;;  %v14238_v39 = vld [vmem:[#allocation81_spill] sm:$0xff]  ;;  %v14240_v56 = vld [vmem:[#allocation18_spill] sm:$0xff] }
 0x2e0   :  { %3159 = vmatprep.subr.bf16.mxu0 %v2888_v43  ;;  %8978 = vmatmul.mubr.msk.bf16.vlgmr.msra.gmra.mrb[12].mxu1 %vm2975_vm11, %v11257_v50 }
 0x2e1   :  { %v2842_v32 = vpop.permute.xlu1 %2841  ;;  %3203 = vmatpush1.bf16.msra.mxu1 %v2889_v57  ;;  %3097 = vmatprep.mubr.bf16.mxu0 %v14159_v14  ;;  %v2881_v57 = vmul.f32 %v2860_v30, %v14239_v26 }
 0x2e2   :  { %4923 = vrot.lane.b32.xlu0 %v11130_v36, %s14227_s9  ;;  %3234 = vmatprep.mubr.bf16.mxu1 %v14159_v14  ;;  %v2857_v8 = vsel %vm119_vm3, %v11336_v10, %v2842_v32  ;;  %v2855_v27 = vsel %vm119_vm3, %v2842_v32, %v11328_v34  ;;  %v5164_v10 = vld [vmem:[%s14241_s13] sm:$0xff] }
 0x2e3   :  { %4917 = vrot.lane.b32.xlu1 %v11074_v5, %s14227_s9  ;;  %v2852_v51 = vpop.permute.xlu0 %2851  ;;  %v2874_v34 = vmul.f32 %v2857_v8, %v14240_v56 }
 0x2e4   :  { %v2854_v23 = vsel %vm119_vm3, %v11334_v20, %v2852_v51  ;;  %v2868_v61 = vsel %vm119_vm3, %v2852_v51, %v11160_v58  ;;  %8977 = vmatmul.mubr.msk.bf16.vlgmr.msra.gmra.mrb[12].mxu0 %vm2975_vm11, %v11257_v50  ;;  %v3390_v58 = vmul.f32 %v3372_v17, %v10350_v45  ;;  %v3375_v50 = vsel %vm708_vm5, %v11172_v11, %v11278_v29  ;;  %v14242_v17 = vld [vmem:[#allocation19_spill] sm:$0xff] }
 0x2e5   :  { %v2877_v2 = vmul.f32 %v2868_v61, %v10300_v54  ;;  %v2884_v22 = vmul.f32 %v2854_v23, %v10312_v59  ;;  %v3360_v33 = vpop.permute.xlu1 %3359  ;;  %3191 = vmatprep.mubr.bf16.mxu0 %v14159_v14  ;;  %v2875_v55 = vmul.f32 %v2855_v27, %v14242_v17  ;;  %v2873_v23 = vmul.f32 %v2859_v31, %v14239_v26  ;;  %v14260_v59 = vld [vmem:[#allocation24_spill] sm:$0xff] }
 0x2e6   :  { %4919 = vrot.lane.b32.xlu0 %v11079_v60, %s14227_s9  ;;  %v3380_v61 = vmul.f32 %v3375_v50, %v10377_v18 }
 0x2e7   :  { %v2887_v3 = vpack.c.bf16 %v2877_v2, %v2869_v35  ;;  %4913 = vrot.lane.b32.xlu1 %v14238_v39, %s14227_s9  ;;  %v2844_v43 = vpop.permute.xlu0 %2843  ;;  %v2894_v6 = vpack.c.bf16 %v2884_v22, %v2876_v12  ;;  %v14243_v12 = vld [vmem:[#allocation21_spill] sm:$0xff] }
 0x2e8   :  { %v2856_v32 = vsel %vm119_vm3, %v2844_v43, %v11334_v20  ;;  %v2858_v25 = vsel %vm119_vm3, %v11342_v4, %v2844_v43  ;;  %8981 = vmatmul.mubr.msk.bf16.vlgmr.msra.gmra.mrb[8].mxu1 %vm2975_vm11, %v11516_v28  ;;  %v3382_v20 = vmul.f32 %v3371_v0, %v10350_v45  ;;  %v3373_v4 = vsel %vm708_vm5, %v11278_v29, %v11164_v47  ;;  %v5165_v0 = vld [vmem:[%s14241_s13 + $0x8] sm:$0xff] }
 0x2e9   :  { %v2882_v51 = vmul.f32 %v2858_v25, %v14240_v56  ;;  %v2883_v30 = vmul.f32 %v2856_v32, %v14242_v17  ;;  %v3352_v35 = vpop.permute.xlu1 %3351  ;;  %3160 = vmatpush1.bf16.msra.mxu0 %v2887_v3  ;;  %3288 = vmatprep.subr.bf16.mxu1 %v2894_v6  ;;  %v3389_v8 = vmul.f32 %v3374_v1, %v14243_v12  ;;  %v14247_v25 = vld [vmem:[#allocation93_spill] sm:$0xff] }
 0x2ea   :  { %4915 = vrot.lane.b32.xlu0 %v11142_v49, %s14227_s9  ;;  %3320 = vmatprep.mubr.bf16.mxu1 %v14159_v14  ;;  %v2891_v29 = vpack.c.bf16 %v2881_v57, %v2873_v23  ;;  %v3381_v27 = vmul.f32 %v3373_v4, %v14243_v12  ;;  %v3401_v50 = vpack.c.bf16 %v3390_v58, %v3382_v20  ;;  %v14244_v58 = vld [vmem:[#allocation100_spill] sm:$0xff]  ;;  %v14251_v4 = vld [vmem:[#allocation103_spill] sm:$0xff]  ;;  %v14252_v23 = vld [vmem:[#allocation22_spill] sm:$0xff] }
 0x2eb   :  { %v2893_v2 = vpack.c.bf16 %v2883_v30, %v2875_v55  ;;  %5168 = vperm.xlu1 %9790, %v5164_v10   ;;  %v11573_v22 = vpop.permute.xlu0 %4369  ;;  %v2892_v47 = vpack.c.bf16 %v2882_v51, %v2874_v34  ;;  %v3399_v1 = vpack.c.bf16 %v3388_v24, %v3380_v61  ;;  %v3377_v43 = vsel %vm708_vm5, %v3360_v33, %v11172_v11  ;;  %v14245_v57 = vld [vmem:[#allocation92_spill] sm:$0xff]  ;;  %v14246_v34 = vld [vmem:[#allocation83_spill] sm:$0xff]  ;;  %v14250_v51 = vld [vmem:[#allocation86_spill] sm:$0xff] }
 0x2ec   :  { %8980 = vmatmul.mubr.msk.bf16.vlgmr.msra.gmra.mrb[8].mxu0 %vm2975_vm11, %v11516_v28  ;;  %v3400_v31 = vpack.c.bf16 %v3389_v8, %v3381_v27  ;;  %v3363_v24 = vsel %vm708_vm5, %v14244_v58, %v3360_v33  ;;  %v3642_v32 = vsel %vm1017_vm6, %v14246_v34, %v14245_v57  ;;  %v14248_v10 = vld [vmem:[#allocation84_spill] sm:$0xff]  ;;  %v14249_v11 = vld [vmem:[#allocation95_spill] sm:$0xff]  ;;  %v3370_v33 = vsel %vm708_vm5, %v11274_v44, %v14251_v4  ;;  %v14253_v8 = vld [vmem:[#allocation101_spill] sm:$0xff] }
 0x2ed   :  { %v11581_v21 = vpop.permute.xlu1 %3630  ;;  %3245 = vmatprep.subr.bf16.mxu0 %v2892_v47  ;;  %3289 = vmatpush1.bf16.msra.mxu1 %v2893_v2  ;;  %v3643_v55 = vsel %vm1017_vm6, %v14248_v10, %v14247_v25  ;;  %v3647_v30 = vsel %vm1017_vm6, %v14250_v51, %v14249_v11  ;;  %v3379_v61 = vmul.f32 %v3377_v43, %v14252_v23  ;;  %v9806_v47 = vld [vmem:[%s14217_s5 + $0x10] sm:$0xff]   ;;  %v14255_v44 = vld [vmem:[#allocation102_spill] sm:$0xff]  ;;  %v14258_v17 = vld [vmem:[#allocation85_spill] sm:$0xff] }
 0x2ee   :  { %5173 = vperm.xlu0 %9789, %v5165_v0   ;;  %3246 = vmatpush1.bf16.msra.mxu0 %v2891_v29  ;;  %v14254_v29 = vld [vmem:[#allocation23_spill] sm:$0xff]  ;;  %v3391_v54 = vmul.f32 %v3370_v33, %v14260_v59 }
 0x2ef   :  { %3457 = vmatprep.subr.bf16.mxu1 %v3401_v50  ;;  %3414 = vmatprep.subr.bf16.mxu0 %v3399_v1  ;;  %v11583_v3 = vpop.permute.xlu0 %4361  ;;  %v3386_v27 = vmul.f32 %v3363_v24, %v14254_v29  ;;  %v3367_v50 = vsel %vm708_vm5, %v14255_v44, %v3352_v35  ;;  %v3645_v24 = vsel %vm1017_vm6, %v14249_v11, %v14248_v10 }
 0x2f0   :  { %8983 = vmatmul.mubr.msk.bf16.vlgmr.msra.gmra.mrb[12].mxu1 %vm2975_vm11, %v11516_v28  ;;  %3277 = vmatprep.mubr.bf16.mxu0 %v14159_v14  ;;  %v3384_v37 = vmul.f32 %v3367_v50, %v14261_v38 }
 0x2f1   :  { %v11591_v6 = vpop.permute.xlu1 %3622  ;;  %3458 = vmatpush1.bf16.msra.mxu1 %v3400_v31  ;;  %3489 = vmatprep.mubr.bf16.mxu1 %v14159_v14 }
 0x2f3   :  { %v3362_v20 = vpop.permute.xlu0 %3361 }
 0x2f4   :  { %v3364_v2 = vsel %vm708_vm5, %v14253_v8, %v3362_v20  ;;  %v3378_v0 = vsel %vm708_vm5, %v3362_v20, %v11176_v15  ;;  %8982 = vmatmul.mubr.msk.bf16.vlgmr.msra.gmra.mrb[12].mxu0 %vm2975_vm11, %v11516_v28  ;;  %v14256_v15 = vld [vmem:[#allocation27_spill] sm:$0xff]  ;;  %v14257_v20 = vld [vmem:[#allocation94_spill] sm:$0xff] }
 0x2f5   :  { %v3387_v1 = vmul.f32 %v3378_v0, %v14252_v23  ;;  %v3394_v31 = vmul.f32 %v3364_v2, %v14254_v29  ;;  %v11631_v43 = vpop.permute.xlu1 %4108  ;;  %3446 = vmatprep.mubr.bf16.mxu0 %v14159_v14  ;;  %v3661_v28 = vmul.f32 %v3643_v55, %v14256_v15  ;;  %v3646_v56 = vsel %vm1017_vm6, %v14258_v17, %v14257_v20  ;;  %v14259_v0 = vld [vmem:[#allocation28_spill] sm:$0xff] }
 0x2f6   :  { %v3365_v2 = vsel %vm708_vm5, %v3352_v35, %v14244_v58  ;;  %v3659_v29 = vmul.f32 %v3647_v30, %v14259_v0  ;;  %v3369_v55 = vsel %vm708_vm5, %v11269_v62, %v14255_v44  ;;  %v14262_v58 = vld [vmem:[#allocation26_spill] sm:$0xff]  ;;  %v3653_v33 = vmul.f32 %v3642_v32, %v14256_v15 }
 0x2f7   :  { %v3398_v23 = vpack.c.bf16 %v3387_v1, %v3379_v61  ;;  %v3354_v26 = vpop.permute.xlu0 %3353  ;;  %v3405_v45 = vpack.c.bf16 %v3394_v31, %v3386_v27  ;;  %v3385_v11 = vmul.f32 %v3365_v2, %v14262_v58  ;;  %v14263_v27 = vld [vmem:[#allocation29_spill] sm:$0xff] }
 0x2f8   :  { %v3366_v10 = vsel %vm708_vm5, %v3354_v26, %v14253_v8  ;;  %v3368_v35 = vsel %vm708_vm5, %v14251_v4, %v3354_v26  ;;  %8988 = vmatmul.mubr.msk.bf16.vlgmr.msra.gmra.mrb[8].mxu1 %vm2975_vm11, %v9806_v47  ;;  %v3644_v8 = vsel %vm1017_vm6, %v14257_v20, %v14246_v34  ;;  %v3383_v26 = vmul.f32 %v3369_v55, %v14260_v59  ;;  %v9807_v55 = vld [vmem:[%s14217_s5 + $0x18] sm:$0xff]  }
 0x2f9   :  { %v3392_v62 = vmul.f32 %v3368_v35, %v14261_v38  ;;  %v3393_v30 = vmul.f32 %v3366_v10, %v14262_v58  ;;  %v11663_v61 = vpop.permute.xlu1 %4100  ;;  %3415 = vmatpush1.bf16.msra.mxu0 %v3398_v23  ;;  %3543 = vmatprep.subr.bf16.mxu1 %v3405_v45  ;;  %v3651_v4 = vmul.f32 %v3646_v56, %v14259_v0  ;;  %v14265_v10 = vld [vmem:[#allocation107_spill] sm:$0xff] }
 0x2fa   :  { %3575 = vmatprep.mubr.bf16.mxu1 %v14159_v14  ;;  %v3660_v44 = vmul.f32 %v3645_v24, %v14263_v27  ;;  %v3402_v45 = vpack.c.bf16 %v3391_v54, %v3383_v26  ;;  %v3672_v32 = vpack.c.bf16 %v3661_v28, %v3653_v33  ;;  %v3652_v31 = vmul.f32 %v3644_v8, %v14263_v27  ;;  %v14268_v33 = vld [vmem:[#allocation31_spill] sm:$0xff]  ;;  %v14269_v26 = vld [vmem:[#allocation106_spill] sm:$0xff] }
 0x2fb   :  { %v3404_v50 = vpack.c.bf16 %v3393_v30, %v3385_v11  ;;  %v11674_v1 = vpop.permute.xlu0 %4357  ;;  %v3403_v23 = vpack.c.bf16 %v3392_v62, %v3384_v37  ;;  %v3670_v34 = vpack.c.bf16 %v3659_v29, %v3651_v4  ;;  %v3648_v54 = vsel %vm1017_vm6, %v11581_v21, %v14258_v17  ;;  %v14264_v29 = vld [vmem:[#allocation104_spill] sm:$0xff]  ;;  %v14266_v11 = vld [vmem:[#allocation30_spill] sm:$0xff]  ;;  %v14267_v17 = vld [vmem:[#allocation105_spill] sm:$0xff] }
 0x2fc   :  { %8987 = vmatmul.mubr.msk.bf16.vlgmr.msra.gmra.mrb[8].mxu0 %vm2975_vm11, %v9806_v47  ;;  %v3671_v56 = vpack.c.bf16 %v3660_v44, %v3652_v31  ;;  %v3634_v28 = vsel %vm1017_vm6, %v14264_v29, %v11581_v21  ;;  %v3641_v35 = vsel %vm1017_vm6, %v14247_v25, %v14265_v10  ;;  %v3650_v62 = vmul.f32 %v3648_v54, %v14266_v11  ;;  %v14270_v31 = vld [vmem:[#allocation32_spill] sm:$0xff] }
 0x2fd   :  { %v11678_v2 = vpop.permute.xlu1 %4363  ;;  %3500 = vmatprep.subr.bf16.mxu0 %v3403_v23  ;;  %3544 = vmatpush1.bf16.msra.mxu1 %v3404_v50  ;;  %v3657_v8 = vmul.f32 %v3634_v28, %v14268_v33  ;;  %v3638_v25 = vsel %vm1017_vm6, %v14269_v26, %v11591_v6  ;;  %v3640_v50 = vsel %vm1017_vm6, %v14245_v57, %v14269_v26  ;;  %v14272_v57 = vld [vmem:[#allocation34_spill] sm:$0xff] }
 0x2fe   :  { %3501 = vmatpush1.bf16.msra.mxu0 %v3402_v45  ;;  %3728 = vmatprep.subr.bf16.mxu1 %v3672_v32 }
 0x2ff   :  { %3685 = vmatprep.subr.bf16.mxu0 %v3670_v34  ;;  %v11680_v20 = vpop.permute.xlu0 %4353  ;;  %3532 = vmatprep.mubr.bf16.mxu0 %v14159_v14  ;;  %v3662_v34 = vmul.f32 %v3641_v35, %v14270_v31 }
 0x300   :  { %8990 = vmatmul.mubr.msk.bf16.vlgmr.msra.gmra.mrb[12].mxu1 %vm2975_vm11, %v9806_v47 }
 0x301   :  { %v11684_v37 = vpop.permute.xlu1 %4367  ;;  %3729 = vmatpush1.bf16.msra.mxu1 %v3671_v56  ;;  %3760 = vmatprep.mubr.bf16.mxu1 %v14159_v14  ;;  %v14271_v56 = vld [vmem:[#allocation33_spill] sm:$0xff] }
 0x302   :  { %v3655_v54 = vmul.f32 %v3638_v25, %v14271_v56  ;;  %v14273_v25 = vld [vmem:[#allocation71_spill] sm:$0xff] }
 0x304   :  { %v3633_v24 = vpop.permute.xlu0 %3632  ;;  %8989 = vmatmul.mubr.msk.bf16.vlgmr.msra.gmra.mrb[12].mxu0 %vm2975_vm11, %v9806_v47 }
 0x305   :  { %v3635_v30 = vsel %vm1017_vm6, %v14267_v17, %v3633_v24  ;;  %v3649_v21 = vsel %vm1017_vm6, %v3633_v24, %v14250_v51  ;;  %v11710_v47 = vpop.permute.xlu1 %4359  ;;  %3717 = vmatprep.mubr.bf16.mxu0 %v14159_v14  ;;  %v3636_v51 = vsel %vm1017_vm6, %v11591_v6, %v14264_v29 }
 0x306   :  { %v3658_v4 = vmul.f32 %v3649_v21, %v14266_v11  ;;  %v3665_v44 = vmul.f32 %v3635_v30, %v14268_v33  ;;  %v3656_v24 = vmul.f32 %v3636_v51, %v14272_v57  ;;  %v3654_v30 = vmul.f32 %v3640_v50, %v14270_v31  ;;  %v14332_v31 = vld [vmem:[#allocation6_spill] sm:$0xff]  ;;  %v14333_v11 = vld [vmem:[#allocation7_spill] sm:$0xff] }
 0x307   :  { %v3877_v51 = vpack.c.bf16 %v11036_v48, %v11032_v16  ;;  %v14289_v16 = vld [vmem:[#allocation78_spill] sm:$0xff] }
 0x308   :  { %v3669_v23 = vpack.c.bf16 %v3658_v4, %v3650_v62  ;;  %v3625_v45 = vpop.permute.xlu0 %3624  ;;  %8995 = vmatmul.mubr.msk.bf16.vlgmr.msra.gmra.mrb[8].mxu1 %vm2975_vm11, %v9807_v55  ;;  %v3676_v32 = vpack.c.bf16 %v3665_v44, %v3657_v8  ;;  %v3673_v26 = vpack.c.bf16 %v3662_v34, %v3654_v30  ;;  %v14274_v4 = vld [vmem:[#allocation72_spill] sm:$0xff] }
 0x309   :  { %v3637_v28 = vsel %vm1017_vm6, %v3625_v45, %v14267_v17  ;;  %v3639_v6 = vsel %vm1017_vm6, %v14265_v10, %v3625_v45  ;;  %v11737_v29 = vpop.permute.xlu1 %4355  ;;  %3846 = vmatprep.mubr.bf16.mxu1 %v14159_v14  ;;  %v3879_v44 = vpack.c.bf16 %v14274_v4, %v14273_v25  ;;  %v14276_v45 = vld [vmem:[#allocation68_spill] sm:$0xff]  ;;  %v3882_v25 = vpack.c.bf16 %v11079_v60, %v11074_v5 }
 0x30a   :  { %v3663_v62 = vmul.f32 %v3639_v6, %v14271_v56  ;;  %v3664_v35 = vmul.f32 %v3637_v28, %v14272_v57  ;;  %3686 = vmatpush1.bf16.msra.mxu0 %v3669_v23  ;;  %3814 = vmatprep.subr.bf16.mxu1 %v3676_v32  ;;  %v14275_v23 = vld [vmem:[#allocation67_spill] sm:$0xff]  ;;  %v14277_v28 = vld [vmem:[#allocation109_spill] sm:$0xff]  ;;  %v4392_v56 = vsel %vm1866_vm8, %v11583_v3, %v11472_v46 }
 0x30b   :  { %v3878_v32 = vpack.c.bf16 %v14276_v45, %v14275_v23  ;;  %v14278_v6 = vld [vmem:[#allocation97_spill] sm:$0xff]  ;;  %v14285_v45 = vld [vmem:[#allocation98_spill] sm:$0xff]  ;;  %v14286_v23 = vld [vmem:[#allocation36_spill] sm:$0xff] }
 0x30c   :  { %v3675_v21 = vpack.c.bf16 %v3664_v35, %v3656_v24  ;;  %v11744_v17 = vpop.permute.xlu0 %4377  ;;  %v3674_v8 = vpack.c.bf16 %v3663_v62, %v3655_v54  ;;  %v3883_v54 = vpack.c.bf16 %v11130_v36, %v11118_v41  ;;  %v4119_v24 = vsel %vm1557_vm7, %v14278_v6, %v14277_v28  ;;  %v14279_v62 = vld [vmem:[#allocation108_spill] sm:$0xff]  ;;  %v14283_v41 = vld [vmem:[#allocation99_spill] sm:$0xff] }
 0x30d   :  { %8994 = vmatmul.mubr.msk.bf16.vlgmr.msra.gmra.mrb[8].mxu0 %vm2975_vm11, %v9807_v55  ;;  %v11747_v10 = vpop.permute.xlu1 %4351  ;;  %v14280_v35 = vld [vmem:[#allocation96_spill] sm:$0xff] }
 0x30e   :  { %3771 = vmatprep.subr.bf16.mxu0 %v3674_v8  ;;  %3815 = vmatpush1.bf16.msra.mxu1 %v3675_v21  ;;  %v4118_v30 = vsel %vm1557_vm7, %v14280_v35, %v14279_v62  ;;  %v3876_v8 = vpack.c.bf16 %v10976_v7, %v10971_v40  ;;  %v14282_v36 = vld [vmem:[#allocation88_spill] sm:$0xff]  ;;  %v14287_v7 = vld [vmem:[#allocation37_spill] sm:$0xff] }
 0x30f   :  { %3772 = vmatpush1.bf16.msra.mxu0 %v3673_v26  ;;  %3935 = vmatprep.subr.bf16.mxu1 %v3879_v44  ;;  %v14281_v26 = vld [vmem:[#allocation35_spill] sm:$0xff]  ;;  %v4123_v4 = vsel %vm1557_vm7, %v14283_v41, %v14282_v36 }
 0x310   :  { %3892 = vmatprep.subr.bf16.mxu0 %v3877_v51  ;;  %v11753_v50 = vpop.permute.xlu0 %4636  ;;  %3803 = vmatprep.mubr.bf16.mxu0 %v14159_v14  ;;  %v4139_v44 = vmul.f32 %v4119_v24, %v14281_v26  ;;  %v4131_v24 = vmul.f32 %v4118_v30, %v14281_v26  ;;  %v4137_v48 = vmul.f32 %v4123_v4, %v14286_v23  ;;  %v14288_v4 = vld [vmem:[#allocation77_spill] sm:$0xff] }
 0x311   :  { %8997 = vmatmul.mubr.msk.bf16.vlgmr.msra.gmra.mrb[12].mxu1 %vm2975_vm11, %v9807_v55  ;;  %v11759_v34 = vpop.permute.xlu1 %4379  ;;  %v3880_v40 = vpack.c.bf16 %v14289_v16, %v14288_v4  ;;  %v14292_v16 = vld [vmem:[#allocation39_spill] sm:$0xff] }
 0x312   :  { %3936 = vmatpush1.bf16.msra.mxu1 %v3878_v32  ;;  %3967 = vmatprep.mubr.bf16.mxu1 %v14159_v14  ;;  %v3881_v32 = vpack.c.bf16 %v11142_v49, %v14238_v39 }
 0x313   :  { %4021 = vmatprep.subr.bf16.mxu1 %v3883_v54  ;;  %v9808_v54 = vld [vmem:[%s14217_s5 + $0x20] sm:$0xff]  }
 0x314   :  { %v11772_v21 = vpop.permute.xlu0 %4640 }
 0x315   :  { %8996 = vmatmul.mubr.msk.bf16.vlgmr.msra.gmra.mrb[12].mxu0 %vm2975_vm11, %v9807_v55  ;;  %v11778_v51 = vpop.permute.xlu1 %4375  ;;  %v14284_v55 = vld [vmem:[#allocation87_spill] sm:$0xff] }
 0x316   :  { %3893 = vmatpush1.bf16.msra.mxu0 %v3876_v8  ;;  %3924 = vmatprep.mubr.bf16.mxu0 %v14159_v14  ;;  %v4122_v49 = vsel %vm1557_vm7, %v14285_v45, %v14284_v55  ;;  %v4121_v8 = vsel %vm1557_vm7, %v14282_v36, %v14278_v6  ;;  %v4120_v60 = vsel %vm1557_vm7, %v14284_v55, %v14280_v35  ;;  %v14291_v55 = vld [vmem:[#allocation89_spill] sm:$0xff] }
 0x317   :  { %3978 = vmatprep.subr.bf16.mxu0 %v3881_v32  ;;  %v4150_v32 = vpack.c.bf16 %v4139_v44, %v4131_v24  ;;  %v4129_v5 = vmul.f32 %v4122_v49, %v14286_v23  ;;  %v4138_v36 = vmul.f32 %v4121_v8, %v14287_v7  ;;  %v14290_v44 = vld [vmem:[#allocation90_spill] sm:$0xff]  ;;  %v4130_v49 = vmul.f32 %v4120_v60, %v14287_v7 }
 0x318   :  { %v11795_v39 = vpop.permute.xlu0 %4632  ;;  %v4124_v8 = vsel %vm1557_vm7, %v14291_v55, %v14285_v45  ;;  %v4389_v60 = vsel %vm1866_vm8, %v11678_v2, %v11684_v37 }
 0x319   :  { %9002 = vmatmul.mubr.msk.bf16.vlgmr.msra.gmra.mrb[8].mxu1 %vm2975_vm11, %v9808_v54  ;;  %v11805_v30 = vpop.permute.xlu1 %4371  ;;  %v4148_v35 = vpack.c.bf16 %v4137_v48, %v4129_v5  ;;  %v4128_v48 = vmul.f32 %v4124_v8, %v14292_v16  ;;  %v4126_v5 = vsel %vm1557_vm7, %v11631_v43, %v14291_v55  ;;  %v14294_v8 = vld [vmem:[#allocation38_spill] sm:$0xff] }
 0x31a   :  { %4022 = vmatpush1.bf16.msra.mxu1 %v3882_v25  ;;  %4053 = vmatprep.mubr.bf16.mxu1 %v14159_v14  ;;  %v4125_v25 = vsel %vm1557_vm7, %v14290_v44, %v14283_v41  ;;  %v4135_v7 = vmul.f32 %v4126_v5, %v14294_v8 }
 0x31b   :  { %4206 = vmatprep.subr.bf16.mxu1 %v4150_v32  ;;  %v4149_v32 = vpack.c.bf16 %v4138_v36, %v4130_v49  ;;  %v4136_v4 = vmul.f32 %v4125_v25, %v14292_v16  ;;  %v4390_v36 = vsel %vm1866_vm8, %v11472_v46, %v11573_v22  ;;  %v4114_v46 = vsel %vm1557_vm7, %v11663_v61, %v11448_v9 }
 0x31c   :  { %v11814_v6 = vpop.permute.xlu0 %4628 }
 0x31d   :  { %9001 = vmatmul.mubr.msk.bf16.vlgmr.msra.gmra.mrb[8].mxu0 %vm2975_vm11, %v9808_v54  ;;  %v11823_v24 = vpop.permute.xlu1 %4634  ;;  %v4147_v45 = vpack.c.bf16 %v4136_v4, %v4128_v48  ;;  %v14295_v48 = vld [vmem:[#allocation42_spill] sm:$0xff] }
 0x31e   :  { %3979 = vmatpush1.bf16.msra.mxu0 %v3880_v40  ;;  %4010 = vmatprep.mubr.bf16.mxu0 %v14159_v14  ;;  %v4112_v40 = vsel %vm1557_vm7, %v11448_v9, %v11631_v43  ;;  %v4395_v9 = vsel %vm1866_vm8, %v11747_v10, %v11737_v29 }
 0x31f   :  { %4163 = vmatprep.subr.bf16.mxu0 %v4148_v35  ;;  %v14293_v35 = vld [vmem:[#allocation41_spill] sm:$0xff] }
 0x320   :  { %v11832_v41 = vpop.permute.xlu0 %4624  ;;  %v4134_v49 = vmul.f32 %v4112_v40, %v14293_v35  ;;  %v4402_v40 = vmul.f32 %v4389_v60, %v14295_v48  ;;  %v4391_v60 = vsel %vm1866_vm8, %v11710_v47, %v11678_v2  ;;  %v4393_v2 = vsel %vm1866_vm8, %v11737_v29, %v11710_v47 }
 0x321   :  { %9004 = vmatmul.mubr.msk.bf16.vlgmr.msra.gmra.mrb[12].mxu1 %vm2975_vm11, %v9808_v54  ;;  %v11835_v23 = vpop.permute.xlu1 %4638 }
 0x322   :  { %4207 = vmatpush1.bf16.msra.mxu1 %v4149_v32  ;;  %4238 = vmatprep.mubr.bf16.mxu1 %v14159_v14  ;;  %v11869_v32 = vld [vmem:[%s14217_s5 + $0x28] sm:$0xff]  }
 0x324   :  { %v4111_v25 = vpop.permute.xlu0 %4110 }
 0x325   :  { %v4113_v43 = vsel %vm1557_vm7, %v11462_v19, %v4111_v25  ;;  %v4127_v55 = vsel %vm1557_vm7, %v4111_v25, %v14290_v44  ;;  %9003 = vmatmul.mubr.msk.bf16.vlgmr.msra.gmra.mrb[12].mxu0 %vm2975_vm11, %v9808_v54  ;;  %v11864_v4 = vpop.permute.xlu1 %4630  ;;  %v4410_v44 = vmul.f32 %v4390_v36, %v14295_v48  ;;  %v14296_v36 = vld [vmem:[#allocation45_spill] sm:$0xff] }
 0x326   :  { %v4142_v5 = vmul.f32 %v4113_v43, %v14293_v35  ;;  %v4143_v26 = vmul.f32 %v4127_v55, %v14294_v8  ;;  %4164 = vmatpush1.bf16.msra.mxu0 %v4147_v45  ;;  %4195 = vmatprep.mubr.bf16.mxu0 %v14159_v14  ;;  %v14297_v55 = vld [vmem:[#allocation44_spill] sm:$0xff] }
 0x328   :  { %v4153_v25 = vpack.c.bf16 %v4142_v5, %v4134_v49  ;;  %v11876_v54 = vpop.permute.xlu0 %4648  ;;  %v4154_v57 = vpack.c.bf16 %v4143_v26, %v4135_v7  ;;  %v4116_v7 = vsel %vm1557_vm7, %v14279_v62, %v11663_v61  ;;  %v4421_v26 = vpack.c.bf16 %v4410_v44, %v4402_v40  ;;  %v14299_v44 = vld [vmem:[#allocation43_spill] sm:$0xff] }
 0x329   :  { %9009 = vmatmul.mubr.msk.bf16.vlgmr.msra.gmra.mrb[8].mxu1 %vm2975_vm11, %v11869_v32  ;;  %v11888_v45 = vpop.permute.xlu1 %4626  ;;  %v4409_v49 = vmul.f32 %v4392_v56, %v14296_v36  ;;  %v4401_v62 = vmul.f32 %v4391_v60, %v14296_v36  ;;  %v4132_v40 = vmul.f32 %v4116_v7, %v14297_v55  ;;  %v14298_v56 = vld [vmem:[#allocation40_spill] sm:$0xff] }
 0x32a   :  { %4292 = vmatprep.subr.bf16.mxu1 %v4154_v57  ;;  %4324 = vmatprep.mubr.bf16.mxu1 %v14159_v14  ;;  %v4394_v57 = vsel %vm1866_vm8, %v11674_v1, %v11583_v3  ;;  %v4133_v5 = vmul.f32 %v4114_v46, %v14298_v56 }
 0x32b   :  { %4293 = vmatpush1.bf16.msra.mxu1 %v4153_v25  ;;  %v4400_v25 = vmul.f32 %v4393_v2, %v14299_v44  ;;  %v4420_v7 = vpack.c.bf16 %v4409_v49, %v4401_v62  ;;  %v4383_v49 = vsel %vm1866_vm8, %v11778_v51, %v11759_v34  ;;  %v4660_v62 = vsel %vm2175_vm9, %v11823_v24, %v11835_v23 }
 0x32c   :  { %4477 = vmatprep.subr.bf16.mxu1 %v4421_v26  ;;  %v4103_v43 = vpop.permute.xlu0 %4102  ;;  %v14300_v26 = vld [vmem:[#allocation47_spill] sm:$0xff] }
 0x32d   :  { %v4115_v61 = vsel %vm1557_vm7, %v4103_v43, %v11462_v19  ;;  %v4117_v47 = vsel %vm1557_vm7, %v14277_v28, %v4103_v43  ;;  %v11920_v3 = vpop.permute.xlu1 %4622  ;;  %9008 = vmatmul.mubr.msk.bf16.vlgmr.msra.gmra.mrb[8].mxu0 %vm2975_vm11, %v11869_v32  ;;  %v4408_v19 = vmul.f32 %v4394_v57, %v14299_v44  ;;  %v4396_v28 = vsel %vm1866_vm8, %v11680_v20, %v11674_v1 }
 0x32e   :  { %v4140_v60 = vmul.f32 %v4117_v47, %v14297_v55  ;;  %v4141_v29 = vmul.f32 %v4115_v61, %v14298_v56  ;;  %4281 = vmatprep.mubr.bf16.mxu0 %v14159_v14  ;;  %v4399_v43 = vmul.f32 %v4395_v9, %v14300_v26  ;;  %v4407_v47 = vmul.f32 %v4396_v28, %v14300_v26 }
 0x32f   :  { %v4397_v57 = vsel %vm1866_vm8, %v11759_v34, %v11747_v10  ;;  %v4419_v1 = vpack.c.bf16 %v4408_v19, %v4400_v25  ;;  %v14301_v10 = vld [vmem:[#allocation46_spill] sm:$0xff]  ;;  %v4661_v25 = vsel %vm2175_vm9, %v11753_v50, %v11772_v21  ;;  %v14302_v19 = vld [vmem:[#allocation49_spill] sm:$0xff] }
 0x330   :  { %v4151_v36 = vpack.c.bf16 %v4140_v60, %v4132_v40  ;;  %v11935_v46 = vpop.permute.xlu0 %4907  ;;  %v4152_v2 = vpack.c.bf16 %v4141_v29, %v4133_v5  ;;  %v4418_v40 = vpack.c.bf16 %v4407_v47, %v4399_v43  ;;  %v4406_v5 = vmul.f32 %v4397_v57, %v14301_v10  ;;  %v11971_v29 = vld [vmem:[%s14217_s5 + $0x30] sm:$0xff]  }
 0x331   :  { %9011 = vmatmul.mubr.msk.bf16.vlgmr.msra.gmra.mrb[12].mxu1 %vm2975_vm11, %v11869_v32  ;;  %v11939_v61 = vpop.permute.xlu1 %4650  ;;  %v4405_v28 = vmul.f32 %v4383_v49, %v14302_v19  ;;  %v4663_v49 = vsel %vm2175_vm9, %v11795_v39, %v11753_v50  ;;  %v4385_v50 = vsel %vm1866_vm8, %v11805_v30, %v11778_v51  ;;  %v4666_v51 = vsel %vm2175_vm9, %v11920_v3, %v11888_v45 }
 0x332   :  { %4478 = vmatpush1.bf16.msra.mxu1 %v4420_v7  ;;  %4249 = vmatprep.subr.bf16.mxu0 %v4152_v2  ;;  %v14303_v7 = vld [vmem:[#allocation50_spill] sm:$0xff] }
 0x333   :  { %4250 = vmatpush1.bf16.msra.mxu0 %v4151_v36  ;;  %4509 = vmatprep.mubr.bf16.mxu1 %v14159_v14  ;;  %v4673_v43 = vmul.f32 %v4660_v62, %v14303_v7  ;;  %v4662_v62 = vsel %vm2175_vm9, %v11864_v4, %v11823_v24  ;;  %v4664_v24 = vsel %vm2175_vm9, %v11888_v45, %v11864_v4 }
 0x334   :  { %v4382_v9 = vpop.permute.xlu0 %4381  ;;  %4434 = vmatprep.subr.bf16.mxu0 %v4419_v1 }
 0x335   :  { %v4384_v34 = vsel %vm1866_vm8, %v11744_v17, %v4382_v9  ;;  %v4398_v36 = vsel %vm1866_vm8, %v4382_v9, %v11680_v20  ;;  %v11966_v60 = vpop.permute.xlu1 %4646  ;;  %v4681_v20 = vmul.f32 %v4661_v25, %v14303_v7  ;;  %v14304_v25 = vld [vmem:[#allocation53_spill] sm:$0xff] }
 0x336   :  { %v4413_v2 = vmul.f32 %v4384_v34, %v14302_v19  ;;  %v4414_v47 = vmul.f32 %v4398_v36, %v14301_v10  ;;  %9010 = vmatmul.mubr.msk.bf16.vlgmr.msra.gmra.mrb[12].mxu0 %vm2975_vm11, %v11869_v32  ;;  %v4680_v34 = vmul.f32 %v4663_v49, %v14304_v25  ;;  %v4672_v36 = vmul.f32 %v4662_v62, %v14304_v25 }
 0x337   :  { %4435 = vmatpush1.bf16.msra.mxu0 %v4418_v40  ;;  %4466 = vmatprep.mubr.bf16.mxu0 %v14159_v14  ;;  %v4387_v40 = vsel %vm1866_vm8, %v11684_v37, %v11805_v30  ;;  %v4665_v37 = vsel %vm2175_vm9, %v11814_v6, %v11795_v39 }
 0x338   :  { %v4424_v57 = vpack.c.bf16 %v4413_v2, %v4405_v28  ;;  %v11981_v1 = vpop.permute.xlu0 %4911  ;;  %v4425_v9 = vpack.c.bf16 %v4414_v47, %v4406_v5  ;;  %v4692_v5 = vpack.c.bf16 %v4681_v20, %v4673_v43  ;;  %v14305_v43 = vld [vmem:[#allocation52_spill] sm:$0xff] }
 0x339   :  { %9016 = vmatmul.mubr.msk.bf16.vlgmr.msra.gmra.mrb[8].mxu1 %vm2975_vm11, %v11971_v29  ;;  %v11993_v32 = vpop.permute.xlu1 %4642  ;;  %v4403_v2 = vmul.f32 %v4387_v40, %v14305_v43  ;;  %v14306_v47 = vld [vmem:[#allocation48_spill] sm:$0xff]  ;;  %v14308_v40 = vld [vmem:[#allocation55_spill] sm:$0xff] }
 0x33a   :  { %4563 = vmatprep.subr.bf16.mxu1 %v4425_v9  ;;  %4595 = vmatprep.mubr.bf16.mxu1 %v14159_v14  ;;  %v4404_v20 = vmul.f32 %v4385_v50, %v14306_v47 }
 0x33b   :  { %4564 = vmatpush1.bf16.msra.mxu1 %v4424_v57  ;;  %v14307_v57 = vld [vmem:[#allocation51_spill] sm:$0xff] }
 0x33c   :  { %4748 = vmatprep.subr.bf16.mxu1 %v4692_v5  ;;  %v4374_v28 = vpop.permute.xlu0 %4373  ;;  %v4671_v9 = vmul.f32 %v4664_v24, %v14307_v57  ;;  %v4679_v45 = vmul.f32 %v4665_v37, %v14307_v57  ;;  %v4670_v5 = vmul.f32 %v4666_v51, %v14308_v40 }
 0x33d   :  { %v4386_v30 = vsel %vm1866_vm8, %v4374_v28, %v11744_v17  ;;  %v4388_v4 = vsel %vm1866_vm8, %v11573_v22, %v4374_v28  ;;  %v4906_v39 = vpop.permute.xlu1 %4905  ;;  %v4667_v17 = vsel %vm2175_vm9, %v11832_v41, %v11814_v6  ;;  %v4691_v22 = vpack.c.bf16 %v4680_v34, %v4672_v36 }
 0x33e   :  { %v4411_v49 = vmul.f32 %v4388_v4, %v14305_v43  ;;  %v4412_v62 = vmul.f32 %v4386_v30, %v14306_v47  ;;  %9015 = vmatmul.mubr.msk.bf16.vlgmr.msra.gmra.mrb[8].mxu0 %vm2975_vm11, %v11971_v29  ;;  %v4678_v37 = vmul.f32 %v4667_v17, %v14308_v40  ;;  %v4668_v6 = vsel %vm2175_vm9, %v11939_v61, %v11920_v3  ;;  %v14310_v17 = vld [vmem:[#allocation57_spill] sm:$0xff] }
 0x33f   :  { %4552 = vmatprep.mubr.bf16.mxu0 %v14159_v14  ;;  %v4690_v34 = vpack.c.bf16 %v4679_v45, %v4671_v9  ;;  %v4654_v36 = vsel %vm2175_vm9, %v11966_v60, %v11939_v61  ;;  %v4932_v9 = vsel %vm2484_vm10, %v11935_v46, %v11981_v1  ;;  %v12069_v45 = vld [vmem:[%s14217_s5 + $0x38] sm:$0xff]  }
 0x340   :  { %v4422_v50 = vpack.c.bf16 %v4411_v49, %v4403_v2  ;;  %v4904_v24 = vpop.permute.xlu0 %4903  ;;  %v4423_v28 = vpack.c.bf16 %v4412_v62, %v4404_v20  ;;  %v4689_v51 = vpack.c.bf16 %v4678_v37, %v4670_v5  ;;  %v14309_v20 = vld [vmem:[#allocation54_spill] sm:$0xff] }
 0x341   :  { %9018 = vmatmul.mubr.msk.bf16.vlgmr.msra.gmra.mrb[12].mxu1 %vm2975_vm11, %v11971_v29  ;;  %v12040_v30 = vpop.permute.xlu1 %4909  ;;  %v4677_v3 = vmul.f32 %v4668_v6, %v14309_v20  ;;  %v14311_v5 = vld [vmem:[#allocation58_spill] sm:$0xff] }
 0x342   :  { %4749 = vmatpush1.bf16.msra.mxu1 %v4691_v22  ;;  %4520 = vmatprep.subr.bf16.mxu0 %v4423_v28  ;;  %v4931_v2 = vsel %vm2484_vm10, %v4906_v39, %v12040_v30  ;;  %v4676_v22 = vmul.f32 %v4654_v36, %v14310_v17  ;;  %v4658_v36 = vsel %vm2175_vm9, %v11835_v23, %v11993_v32 }
 0x343   :  { %4521 = vmatpush1.bf16.msra.mxu0 %v4422_v50  ;;  %4780 = vmatprep.mubr.bf16.mxu1 %v14159_v14  ;;  %v4944_v50 = vmul.f32 %v4931_v2, %v14311_v5  ;;  %v4934_v23 = vsel %vm2484_vm10, %v4904_v24, %v11935_v46 }
 0x344   :  { %v4653_v4 = vpop.permute.xlu0 %4652  ;;  %4705 = vmatprep.subr.bf16.mxu0 %v4690_v34 }
 0x345   :  { %v4655_v61 = vsel %vm2175_vm9, %v11876_v54, %v4653_v4  ;;  %v4669_v49 = vsel %vm2175_vm9, %v4653_v4, %v11832_v41  ;;  %v4902_v62 = vpop.permute.xlu1 %4901  ;;  %v4952_v41 = vmul.f32 %v4932_v9, %v14311_v5 }
 0x346   :  { %v4684_v28 = vmul.f32 %v4655_v61, %v14310_v17  ;;  %v4685_v37 = vmul.f32 %v4669_v49, %v14309_v20  ;;  %9017 = vmatmul.mubr.msk.bf16.vlgmr.msra.gmra.mrb[12].mxu0 %vm2975_vm11, %v11971_v29  ;;  %v4933_v2 = vsel %vm2484_vm10, %v4902_v62, %v4906_v39  ;;  %v14313_v49 = vld [vmem:[#allocation61_spill] sm:$0xff] }
 0x347   :  { %4706 = vmatpush1.bf16.msra.mxu0 %v4689_v51  ;;  %4737 = vmatprep.mubr.bf16.mxu0 %v14159_v14  ;;  %v4656_v51 = vsel %vm2175_vm9, %v11993_v32, %v11966_v60  ;;  %v4963_v9 = vpack.c.bf16 %v4952_v41, %v4944_v50  ;;  %v4951_v41 = vmul.f32 %v4934_v23, %v14313_v49 }
 0x348   :  { %v4695_v6 = vpack.c.bf16 %v4684_v28, %v4676_v22  ;;  %v4900_v34 = vpop.permute.xlu0 %4899  ;;  %v4696_v4 = vpack.c.bf16 %v4685_v37, %v4677_v3  ;;  %v14312_v3 = vld [vmem:[#allocation60_spill] sm:$0xff]  ;;  %v4943_v22 = vmul.f32 %v4933_v2, %v14313_v49 }
 0x349   :  { %9023 = vmatmul.mubr.msk.bf16.vlgmr.msra.gmra.mrb[8].mxu1 %vm2975_vm11, %v12069_v45  ;;  %v4898_v29 = vpop.permute.xlu1 %4897  ;;  %v4674_v61 = vmul.f32 %v4658_v36, %v14312_v3  ;;  %v14314_v37 = vld [vmem:[#allocation56_spill] sm:$0xff]  ;;  %v4936_v32 = vsel %vm2484_vm10, %v4900_v34, %v4904_v24 }
 0x34a   :  { %4834 = vmatprep.subr.bf16.mxu1 %v4696_v4  ;;  %4866 = vmatprep.mubr.bf16.mxu1 %v14159_v14  ;;  %v4935_v39 = vsel %vm2484_vm10, %v4898_v29, %v4902_v62  ;;  %v4675_v60 = vmul.f32 %v4656_v51, %v14314_v37 }
 0x34b   :  { %4835 = vmatpush1.bf16.msra.mxu1 %v4695_v6  ;;  %v14315_v6 = vld [vmem:[#allocation59_spill] sm:$0xff] }
 0x34c   :  { %5019 = vmatprep.subr.bf16.mxu1 %v4963_v9  ;;  %v4645_v28 = vpop.permute.xlu0 %4644  ;;  %v4942_v4 = vmul.f32 %v4935_v39, %v14315_v6 }
 0x34d   :  { %v4657_v50 = vsel %vm2175_vm9, %v4645_v28, %v11876_v54  ;;  %v4659_v46 = vsel %vm2175_vm9, %v11772_v21, %v4645_v28  ;;  %v4894_v62 = vpop.permute.xlu1 %4893  ;;  %v4962_v54 = vpack.c.bf16 %v4951_v41, %v4943_v22  ;;  %v4950_v21 = vmul.f32 %v4936_v32, %v14315_v6  ;;  %v9812_v41 = vld [vmem:[%s14217_s5 + $0x40] sm:$0xff]   ;;  %s14362_s5 = sld [smem:[#allocation117_spill]] }
 0x34e   :  { %v4682_v36 = vmul.f32 %v4659_v46, %v14312_v3  ;;  %v4683_v2 = vmul.f32 %v4657_v50, %v14314_v37  ;;  %9022 = vmatmul.mubr.msk.bf16.vlgmr.msra.gmra.mrb[8].mxu0 %vm2975_vm11, %v12069_v45  ;;  %v4937_v24 = vsel %vm2484_vm10, %v4894_v62, %v4898_v29  ;;  %v14316_v50 = vld [vmem:[#allocation63_spill] sm:$0xff]  ;;  %v14327_v3 = vld [vmem:[#allocation5_spill] sm:$0xff] }
 0x34f   :  { %4823 = vmatprep.mubr.bf16.mxu0 %v14159_v14  ;;  %v4941_v46 = vmul.f32 %v4937_v24, %v14316_v50  ;;  %v4961_v29 = vpack.c.bf16 %v4950_v21, %v4942_v4 }
 0x350   :  { %v4693_v51 = vpack.c.bf16 %v4682_v36, %v4674_v61  ;;  %v4896_v9 = vpop.permute.xlu0 %4895  ;;  %v4694_v23 = vpack.c.bf16 %v4683_v2, %v4675_v60  ;;  %v14317_v36 = vld [vmem:[#allocation62_spill] sm:$0xff] }
 0x351   :  { %v4938_v39 = vsel %vm2484_vm10, %v4896_v9, %v4900_v34  ;;  %9025 = vmatmul.mubr.msk.bf16.vlgmr.msra.gmra.mrb[12].mxu1 %vm2975_vm11, %v12069_v45  ;;  %v4922_v28 = vpop.permute.xlu1 %4921 }
 0x352   :  { %v4949_v5 = vmul.f32 %v4938_v39, %v14316_v50  ;;  %5020 = vmatpush1.bf16.msra.mxu1 %v4962_v54  ;;  %4791 = vmatprep.subr.bf16.mxu0 %v4694_v23  ;;  %v4939_v22 = vsel %vm2484_vm10, %v4922_v28, %v4894_v62 }
 0x353   :  { %4792 = vmatpush1.bf16.msra.mxu0 %v4693_v51  ;;  %5051 = vmatprep.mubr.bf16.mxu1 %v14159_v14  ;;  %v4948_v2 = vmul.f32 %v4939_v22, %v14317_v36  ;;  %v14318_v51 = vld [vmem:[#allocation65_spill] sm:$0xff] }
 0x354   :  { %v4960_v61 = vpack.c.bf16 %v4949_v5, %v4941_v46  ;;  %v4924_v60 = vpop.permute.xlu0 %4923  ;;  %4976 = vmatprep.subr.bf16.mxu0 %v4961_v29  ;;  %v14319_v29 = vld [vmem:[#allocation66_spill] sm:$0xff] }
 0x355   :  { %v4940_v34 = vsel %vm2484_vm10, %v4924_v60, %v4896_v9  ;;  %v4918_v32 = vpop.permute.xlu1 %4917 }
 0x356   :  { %v4956_v4 = vmul.f32 %v4940_v34, %v14317_v36  ;;  %9024 = vmatmul.mubr.msk.bf16.vlgmr.msra.gmra.mrb[12].mxu0 %vm2975_vm11, %v12069_v45  ;;  %v4925_v5 = vsel %vm2484_vm10, %v4918_v32, %v4922_v28  ;;  %v14320_v34 = vld [vmem:[#allocation64_spill] sm:$0xff] }
 0x357   :  { %4977 = vmatpush1.bf16.msra.mxu0 %v4960_v61  ;;  %5008 = vmatprep.mubr.bf16.mxu0 %v14159_v14  ;;  %v4947_v9 = vmul.f32 %v4925_v5, %v14318_v51 }
 0x358   :  { %v4920_v62 = vpop.permute.xlu0 %4919  ;;  %v4967_v24 = vpack.c.bf16 %v4956_v4, %v4948_v2 }
 0x359   :  { %v4926_v54 = vsel %vm2484_vm10, %v4920_v62, %v4924_v60  ;;  %9030 = vmatmul.mubr.msk.bf16.vlgmr.msra.gmra.mrb[8].mxu1 %vm2975_vm11, %v9812_v41  ;;  %v4914_v21 = vpop.permute.xlu1 %4913 }
 0x35a   :  { %v4955_v23 = vmul.f32 %v4926_v54, %v14318_v51  ;;  %v4929_v45 = vsel %vm2484_vm10, %v12040_v30, %v4914_v21  ;;  %5105 = vmatprep.subr.bf16.mxu1 %v4967_v24  ;;  %5137 = vmatprep.mubr.bf16.mxu1 %v14159_v14  ;;  %v4927_v39 = vsel %vm2484_vm10, %v4914_v21, %v4918_v32 }
 0x35b   :  { %v4945_v22 = vmul.f32 %v4929_v45, %v14319_v29  ;;  %v4946_v2 = vmul.f32 %v4927_v39, %v14320_v34 }
 0x35c   :  { %v4966_v28 = vpack.c.bf16 %v4955_v23, %v4947_v9  ;;  %v4916_v46 = vpop.permute.xlu0 %4915 }
 0x35d   :  { %v4928_v61 = vsel %vm2484_vm10, %v4916_v46, %v4920_v62  ;;  %v4930_v60 = vsel %vm2484_vm10, %v11981_v1, %v4916_v46 }
 0x35e   :  { %v4953_v30 = vmul.f32 %v4930_v60, %v14319_v29  ;;  %v4954_v4 = vmul.f32 %v4928_v61, %v14320_v34  ;;  %9029 = vmatmul.mubr.msk.bf16.vlgmr.msra.gmra.mrb[8].mxu0 %vm2975_vm11, %v9812_v41  ;;  %5106 = vmatpush1.bf16.msra.mxu1 %v4966_v28 }
 0x35f   :  { %5094 = vmatprep.mubr.bf16.mxu0 %v14159_v14 }
 0x360   :  { %v4964_v32 = vpack.c.bf16 %v4953_v30, %v4945_v22  ;;  %v4965_v5 = vpack.c.bf16 %v4954_v4, %v4946_v2 }
 0x361   :  { %9032 = vmatmul.mubr.msk.bf16.vlgmr.msra.gmra.mrb[12].mxu1 %vm2975_vm11, %v9812_v41 }
 0x362   :  { %5062 = vmatprep.subr.bf16.mxu0 %v4965_v5  ;;  %5440 = vmatprep.mubr.bf16.mxu1 %v14159_v14 }
 0x363   :  { %5063 = vmatpush1.bf16.msra.mxu0 %v4964_v32 }
 0x366   :  { %9031 = vmatmul.mubr.msk.bf16.vlgmr.msra.gmra.mrb[12].mxu0 %vm2975_vm11, %v9812_v41 }
 0x367   :  { %5397 = vmatprep.mubr.bf16.mxu0 %v14159_v14 }
 0x36a   :  { %v12165_v1 = vpop.permute.xlu1 %5168 }
 0x36d   :  { %v12168_v21 = vpop.permute.xlu0 %5173 }
 0x42c   :  { %v5053_v62 = vpop.f32.mrb[8].mxu1 }
 0x42d   :  { %v5178_v24 = vadd.f32 %v12165_v1, %v5053_v62  ;;  %v5055_v54 = vpop.f32.mrb[9].mxu1 }
 0x42e   :  { %v5057_v9 = vpop.f32.mrb[10].mxu1  ;;  %v5179_v62 = vadd.f32 %v12165_v1, %v5055_v54 }
 0x42f   :  { %v12170_v23 = vmax.f32 %v5178_v24, 0.0  ;;  %v5186_v45 = vadd.f32 %v12168_v21, %v5057_v9  ;;  %v5059_v39 = vpop.f32.mrb[11].mxu1 }
 0x430   :  { %v12197_v36 = vmax.f32 %v5179_v62, 0.0 }
 0x431   :  { %14321 = vst [vmem:[#allocation91_spill] sm:$0xff] %v12170_v23  ;;  %v12173_v28 = vmax.f32 %v5186_v45, 0.0  ;;  %5290 = vrot.lane.b32.xlu1 %v12170_v23, %s9850_s6  ;;  %v5010_v41 = vpop.f32.mrb[8].mxu0  ;;  %v5187_v45 = vadd.f32 %v12168_v21, %v5059_v39 }
 0x432   :  { %v5012_v46 = vpop.f32.mrb[9].mxu0  ;;  %v5176_v54 = vadd.f32 %v12165_v1, %v5010_v41 }
 0x433   :  { %5292 = vrot.lane.b32.xlu0 %v12173_v28, %s9850_s6  ;;  %v5014_v22 = vpop.f32.mrb[10].mxu0  ;;  %v12201_v51 = vmax.f32 %v5187_v45, 0.0  ;;  %v5177_v41 = vadd.f32 %v12165_v1, %v5012_v46 }
 0x434   :  { %v5016_v61 = vpop.f32.mrb[11].mxu0  ;;  %v5139_v60 = vpop.f32.mrb[12].mxu1  ;;  %v5184_v39 = vadd.f32 %v12168_v21, %v5014_v22  ;;  %v12219_v62 = vmax.f32 %v5176_v54, 0.0 }
 0x435   :  { %5216 = vrot.lane.b32.xlu1 %v12170_v23, %s9852_s1  ;;  %v5141_v2 = vpop.f32.mrb[13].mxu1  ;;  %v5185_v22 = vadd.f32 %v12168_v21, %v5016_v61  ;;  %v12241_v54 = vmax.f32 %v5177_v41, 0.0  ;;  %v5182_v46 = vadd.f32 %v12165_v1, %v5139_v60 }
 0x436   :  { %v5143_v30 = vpop.f32.mrb[14].mxu1  ;;  %v12223_v45 = vmax.f32 %v5184_v39, 0.0  ;;  %v5183_v60 = vadd.f32 %v12165_v1, %v5141_v2 }
 0x437   :  { %v5145_v4 = vpop.f32.mrb[15].mxu1  ;;  %5218 = vrot.lane.b32.xlu0 %v12173_v28, %s9852_s1  ;;  %14322 = vst [vmem:[#allocation21_spill] sm:$0xff] %v12241_v54  ;;  %v12245_v39 = vmax.f32 %v5185_v22, 0.0  ;;  %v5190_v61 = vadd.f32 %v12168_v21, %v5143_v30  ;;  %v12255_v41 = vmax.f32 %v5182_v46, 0.0 }
 0x438   :  { %v5191_v30 = vadd.f32 %v12168_v21, %v5145_v4  ;;  %v12285_v46 = vmax.f32 %v5183_v60, 0.0 }
 0x439   :  { %5725 = vrot.lane.b32.xlu1 %v12170_v23, %s9853_s7  ;;  %v12185_v32 = vpop.f32.mrb[12].mxu0  ;;  %14323 = vst [vmem:[#allocation100_spill] sm:$0xff] %v12245_v39  ;;  %v12259_v22 = vmax.f32 %v5190_v61, 0.0 }
 0x43a   :  { %v12187_v5 = vpop.f32.mrb[13].mxu0  ;;  %v12289_v61 = vmax.f32 %v5191_v30, 0.0  ;;  %v5180_v2 = vadd.f32 %v12165_v1, %v12185_v32 }
 0x43b   :  { %5727 = vrot.lane.b32.xlu0 %v12173_v28, %s9853_s7  ;;  %v5100_v24 = vpop.f32.mrb[14].mxu0  ;;  %v5181_v32 = vadd.f32 %v12165_v1, %v12187_v5 }
 0x43c   :  { %v12192_v9 = vpop.f32.mrb[15].mxu0  ;;  %14324 = vst [vmem:[#allocation92_spill] sm:$0xff] %v12289_v61  ;;  %v5188_v4 = vadd.f32 %v12168_v21, %v5100_v24  ;;  %v12308_v60 = vmax.f32 %v5180_v2, 0.0 }
 0x43d   :  { %5996 = vrot.lane.b32.xlu1 %v12170_v23, %s9854_s10  ;;  %v5189_v24 = vadd.f32 %v12168_v21, %v12192_v9  ;;  %v12332_v2 = vmax.f32 %v5181_v32, 0.0 }
 0x43e   :  { %v12312_v30 = vmax.f32 %v5188_v4, 0.0 }
 0x43f   :  { %5998 = vrot.lane.b32.xlu0 %v12173_v28, %s9854_s10  ;;  %v12336_v4 = vmax.f32 %v5189_v24, 0.0 }
 0x441   :  { %5294 = vrot.lane.b32.xlu1 %v12197_v36, %s9850_s6 }
 0x443   :  { %5296 = vrot.lane.b32.xlu0 %v12201_v51, %s9850_s6 }
 0x445   :  { %5220 = vrot.lane.b32.xlu1 %v12197_v36, %s9852_s1 }
 0x447   :  { %5222 = vrot.lane.b32.xlu0 %v12201_v51, %s9852_s1 }
 0x449   :  { %5729 = vrot.lane.b32.xlu1 %v12197_v36, %s9853_s7 }
 0x44b   :  { %5731 = vrot.lane.b32.xlu0 %v12201_v51, %s9853_s7 }
 0x44d   :  { %6000 = vrot.lane.b32.xlu1 %v12197_v36, %s9854_s10 }
 0x44f   :  { %6002 = vrot.lane.b32.xlu0 %v12201_v51, %s9854_s10 }
 0x451   :  { %5282 = vrot.lane.b32.xlu1 %v12219_v62, %s9850_s6 }
 0x453   :  { %5284 = vrot.lane.b32.xlu0 %v12223_v45, %s9850_s6 }
 0x455   :  { %5208 = vrot.lane.b32.xlu1 %v12219_v62, %s9852_s1 }
 0x457   :  { %5210 = vrot.lane.b32.xlu0 %v12223_v45, %s9852_s1 }
 0x459   :  { %5717 = vrot.lane.b32.xlu1 %v12219_v62, %s9853_s7 }
 0x45b   :  { %5719 = vrot.lane.b32.xlu0 %v12223_v45, %s9853_s7 }
 0x45d   :  { %5988 = vrot.lane.b32.xlu1 %v12219_v62, %s9854_s10 }
 0x45f   :  { %5990 = vrot.lane.b32.xlu0 %v12223_v45, %s9854_s10 }
 0x461   :  { %5286 = vrot.lane.b32.xlu1 %v12241_v54, %s9850_s6 }
 0x463   :  { %5288 = vrot.lane.b32.xlu0 %v12245_v39, %s9850_s6 }
 0x465   :  { %5212 = vrot.lane.b32.xlu1 %v12241_v54, %s9852_s1 }
 0x467   :  { %5214 = vrot.lane.b32.xlu0 %v12245_v39, %s9852_s1 }
 0x469   :  { %5306 = vrot.lane.b32.xlu1 %v12255_v41, %s9850_s6 }
 0x46b   :  { %5308 = vrot.lane.b32.xlu0 %v12259_v22, %s9850_s6 }
 0x46d   :  { %5232 = vrot.lane.b32.xlu1 %v12255_v41, %s9852_s1 }
 0x46f   :  { %5234 = vrot.lane.b32.xlu0 %v12259_v22, %s9852_s1 }
 0x471   :  { %5721 = vrot.lane.b32.xlu1 %v12241_v54, %s9853_s7 }
 0x473   :  { %5723 = vrot.lane.b32.xlu0 %v12245_v39, %s9853_s7 }
 0x475   :  { %5741 = vrot.lane.b32.xlu1 %v12255_v41, %s9853_s7 }
 0x477   :  { %5743 = vrot.lane.b32.xlu0 %v12259_v22, %s9853_s7 }
 0x479   :  { %5992 = vrot.lane.b32.xlu1 %v12241_v54, %s9854_s10 }
 0x47b   :  { %5994 = vrot.lane.b32.xlu0 %v12245_v39, %s9854_s10 }
 0x47d   :  { %6012 = vrot.lane.b32.xlu1 %v12255_v41, %s9854_s10 }
 0x47f   :  { %6014 = vrot.lane.b32.xlu0 %v12259_v22, %s9854_s10 }
 0x481   :  { %5310 = vrot.lane.b32.xlu1 %v12285_v46, %s9850_s6 }
 0x483   :  { %5312 = vrot.lane.b32.xlu0 %v12289_v61, %s9850_s6 }
 0x485   :  { %5236 = vrot.lane.b32.xlu1 %v12285_v46, %s9852_s1 }
 0x487   :  { %5238 = vrot.lane.b32.xlu0 %v12289_v61, %s9852_s1 }
 0x489   :  { %5745 = vrot.lane.b32.xlu1 %v12285_v46, %s9853_s7 }
 0x48b   :  { %5747 = vrot.lane.b32.xlu0 %v12289_v61, %s9853_s7 }
 0x48d   :  { %6016 = vrot.lane.b32.xlu1 %v12285_v46, %s9854_s10 }
 0x48f   :  { %6018 = vrot.lane.b32.xlu0 %v12289_v61, %s9854_s10 }
 0x491   :  { %5298 = vrot.lane.b32.xlu1 %v12308_v60, %s9850_s6 }
 0x493   :  { %5300 = vrot.lane.b32.xlu0 %v12312_v30, %s9850_s6 }
 0x495   :  { %5224 = vrot.lane.b32.xlu1 %v12308_v60, %s9852_s1 }
 0x497   :  { %5226 = vrot.lane.b32.xlu0 %v12312_v30, %s9852_s1 }
 0x499   :  { %5733 = vrot.lane.b32.xlu1 %v12308_v60, %s9853_s7 }
 0x49b   :  { %5735 = vrot.lane.b32.xlu0 %v12312_v30, %s9853_s7 }
 0x49d   :  { %6004 = vrot.lane.b32.xlu1 %v12308_v60, %s9854_s10 }
 0x49f   :  { %6006 = vrot.lane.b32.xlu0 %v12312_v30, %s9854_s10 }
 0x4a1   :  { %5302 = vrot.lane.b32.xlu1 %v12332_v2, %s9850_s6 }
 0x4a3   :  { %v5291_v1 = vpop.permute.xlu1 %5290  ;;  %5304 = vrot.lane.b32.xlu0 %v12336_v4, %s9850_s6 }
 0x4a5   :  { %v5293_v5 = vpop.permute.xlu0 %5292  ;;  %6470 = vrot.lane.b32.xlu1 %v12241_v54, %s9855_s2 }
 0x4a7   :  { %v12344_v21 = vpop.permute.xlu1 %5216  ;;  %6472 = vrot.lane.b32.xlu0 %v12245_v39, %s9855_s2 }
 0x4a9   :  { %v12348_v9 = vpop.permute.xlu0 %5218  ;;  %5228 = vrot.lane.b32.xlu1 %v12332_v2, %s9852_s1 }
 0x4ab   :  { %v12352_v32 = vpop.permute.xlu1 %5725  ;;  %6476 = vrot.lane.b32.xlu0 %v12173_v28, %s9855_s2 }
 0x4ad   :  { %v12356_v24 = vpop.permute.xlu0 %5727  ;;  %5737 = vrot.lane.b32.xlu1 %v12332_v2, %s9853_s7 }
 0x4af   :  { %v12360_v34 = vpop.permute.xlu1 %5996  ;;  %6468 = vrot.lane.b32.xlu0 %v12223_v45, %s9855_s2 }
 0x4b0   :  { %14325 = vst [vmem:[#allocation83_spill] sm:$0xff] %v12360_v34 }
 0x4b1   :  { %v12364_v29 = vpop.permute.xlu0 %5998  ;;  %6008 = vrot.lane.b32.xlu1 %v12332_v2, %s9854_s10 }
 0x4b2   :  { %14326 = vst [vmem:[#allocation93_spill] sm:$0xff] %v12364_v29 }
 0x4b3   :  { %v12368_v49 = vpop.permute.xlu1 %5294  ;;  %5230 = vrot.lane.b32.xlu0 %v12336_v4, %s9852_s1 }
 0x4b4   :  { %v5322_v50 = vsel %vm206_vm1, %v5291_v1, %v12368_v49 }
 0x4b5   :  { %v12375_v6 = vpop.permute.xlu0 %5296  ;;  %6474 = vrot.lane.b32.xlu1 %v12170_v23, %s9855_s2  ;;  %v5333_v20 = vmul.f32 %v5322_v50, %v14327_v3 }
 0x4b6   :  { %v5323_v37 = vsel %vm206_vm1, %v5293_v5, %v12375_v6 }
 0x4b7   :  { %v5341_v17 = vmul.f32 %v5323_v37, %v14327_v3  ;;  %v12384_v40 = vpop.permute.xlu1 %5220  ;;  %6480 = vrot.lane.b32.xlu0 %v12201_v51, %s9855_s2 }
 0x4b9   :  { %v12388_v25 = vpop.permute.xlu0 %5222  ;;  %6466 = vrot.lane.b32.xlu1 %v12219_v62, %s9855_s2  ;;  %v5352_v57 = vpack.c.bf16 %v5341_v17, %v5333_v20 }
 0x4bb   :  { %v12392_v47 = vpop.permute.xlu1 %5729  ;;  %5408 = vmatprep.subr.bf16.mxu1 %v5352_v57  ;;  %6484 = vrot.lane.b32.xlu0 %v12312_v30, %s9855_s2 }
 0x4bd   :  { %v12396_v50 = vpop.permute.xlu0 %5731  ;;  %6478 = vrot.lane.b32.xlu1 %v12197_v36, %s9855_s2 }
 0x4bf   :  { %v12400_v3 = vpop.permute.xlu1 %6000  ;;  %6492 = vrot.lane.b32.xlu0 %v12259_v22, %s9855_s2 }
 0x4c0   :  { %14328 = vst [vmem:[#allocation84_spill] sm:$0xff] %v12400_v3 }
 0x4c1   :  { %v12404_v37 = vpop.permute.xlu0 %6002  ;;  %6482 = vrot.lane.b32.xlu1 %v12308_v60, %s9855_s2 }
 0x4c2   :  { %14329 = vst [vmem:[#allocation95_spill] sm:$0xff] %v12404_v37 }
 0x4c3   :  { %v12408_v20 = vpop.permute.xlu1 %5282  ;;  %5739 = vrot.lane.b32.xlu0 %v12336_v4, %s9853_s7  ;;  %s14334_s7 = sld [smem:[#allocation116_spill]] }
 0x4c5   :  { %v12412_v57 = vpop.permute.xlu0 %5284  ;;  %6486 = vrot.lane.b32.xlu1 %v12332_v2, %s9855_s2 }
 0x4c7   :  { %v12416_v17 = vpop.permute.xlu1 %5208  ;;  %6496 = vrot.lane.b32.xlu0 %v12289_v61, %s9855_s2 }
 0x4c9   :  { %v12420_v7 = vpop.permute.xlu0 %5210  ;;  %6490 = vrot.lane.b32.xlu1 %v12255_v41, %s9855_s2 }
 0x4cb   :  { %v12424_v43 = vpop.permute.xlu1 %5717  ;;  %6743 = vrot.lane.b32.xlu0 %v12245_v39, %s9856_s4 }
 0x4cd   :  { %v12428_v19 = vpop.permute.xlu0 %5719  ;;  %6494 = vrot.lane.b32.xlu1 %v12285_v46, %s9855_s2 }
 0x4cf   :  { %v12432_v26 = vpop.permute.xlu1 %5988  ;;  %6747 = vrot.lane.b32.xlu0 %v12173_v28, %s9856_s4 }
 0x4d0   :  { %14330 = vst [vmem:[#allocation86_spill] sm:$0xff] %v12432_v26 }
 0x4d1   :  { %v12436_v10 = vpop.permute.xlu0 %5990  ;;  %6741 = vrot.lane.b32.xlu1 %v12241_v54, %s9856_s4 }
 0x4d2   :  { %14331 = vst [vmem:[#allocation103_spill] sm:$0xff] %v12436_v10 }
 0x4d3   :  { %v5287_v44 = vpop.permute.xlu1 %5286  ;;  %6010 = vrot.lane.b32.xlu0 %v12336_v4, %s9854_s10 }
 0x4d4   :  { %v5324_v56 = vsel %vm206_vm1, %v5287_v44, %v5291_v1  ;;  %v5326_v55 = vsel %vm206_vm1, %v12408_v20, %v5287_v44 }
 0x4d5   :  { %v5289_v48 = vpop.permute.xlu0 %5288  ;;  %6745 = vrot.lane.b32.xlu1 %v12170_v23, %s9856_s4  ;;  %v5331_v33 = vmul.f32 %v5326_v55, %v14332_v31  ;;  %v5332_v58 = vmul.f32 %v5324_v56, %v14333_v11  ;;  %v12469_v55 = vld [vmem:[%s14334_s7 + $0x8] sm:$0xff]  }
 0x4d6   :  { %v5325_v35 = vsel %vm206_vm1, %v5289_v48, %v5293_v5  ;;  %v5327_v8 = vsel %vm206_vm1, %v12412_v57, %v5289_v48 }
 0x4d7   :  { %v5339_v1 = vmul.f32 %v5327_v8, %v14332_v31  ;;  %v5340_v38 = vmul.f32 %v5325_v35, %v14333_v11  ;;  %v12458_v44 = vpop.permute.xlu1 %5212  ;;  %6739 = vrot.lane.b32.xlu0 %v12223_v45, %s9856_s4 }
 0x4d9   :  { %v5351_v59 = vpack.c.bf16 %v5340_v38, %v5332_v58  ;;  %v12462_v15 = vpop.permute.xlu0 %5214  ;;  %6737 = vrot.lane.b32.xlu1 %v12219_v62, %s9856_s4  ;;  %v5350_v48 = vpack.c.bf16 %v5339_v1, %v5331_v33 }
 0x4db   :  { %v12471_v31 = vpop.permute.xlu1 %5306  ;;  %5365 = vmatprep.subr.bf16.mxu0 %v5350_v48  ;;  %5409 = vmatpush1.bf16.msra.mxu1 %v5351_v59 }
 0x4dc   :  { %6751 = vrot.lane.b32.xlu0 %v12201_v51, %s9856_s4 }
 0x4dd   :  { %v12475_v11 = vpop.permute.xlu0 %5308  ;;  %6749 = vrot.lane.b32.xlu1 %v12197_v36, %s9856_s4 }
 0x4de   :  { %9037 = vmatmul.mubr.msk.bf16.vlgmr.msra.gmra.mrb[16].mxu1 %vm2975_vm11, %v12469_v55 }
 0x4df   :  { %v12481_v38 = vpop.permute.xlu1 %5232  ;;  %5526 = vmatprep.mubr.bf16.mxu1 %v14159_v14 }
 0x4e0   :  { %6755 = vrot.lane.b32.xlu0 %v12312_v30, %s9856_s4 }
 0x4e1   :  { %v12486_v58 = vpop.permute.xlu0 %5234  ;;  %6753 = vrot.lane.b32.xlu1 %v12308_v60, %s9856_s4 }
 0x4e3   :  { %v5722_v59 = vpop.permute.xlu1 %5721 }
 0x4e4   :  { %v5759_v33 = vsel %vm708_vm5, %v5722_v59, %v12352_v32  ;;  %v5761_v35 = vsel %vm708_vm5, %v12424_v43, %v5722_v59  ;;  %6763 = vrot.lane.b32.xlu0 %v12259_v22, %s9856_s4 }
 0x4e5   :  { %v5724_v8 = vpop.permute.xlu0 %5723  ;;  %6757 = vrot.lane.b32.xlu1 %v12332_v2, %s9856_s4  ;;  %v12507_v1 = vmul.f32 %v5761_v35, %v10377_v18  ;;  %v12510_v48 = vmul.f32 %v5759_v33, %v14243_v12 }
 0x4e6   :  { %v5760_v56 = vsel %vm708_vm5, %v5724_v8, %v12356_v24  ;;  %v5762_v5 = vsel %vm708_vm5, %v12428_v19, %v5724_v8 }
 0x4e7   :  { %14335 = vst [vmem:[#allocation101_spill] sm:$0xff] %v12510_v48  ;;  %v12513_v59 = vmul.f32 %v5762_v5, %v10377_v18  ;;  %v12516_v3 = vmul.f32 %v5760_v56, %v14243_v12  ;;  %v12518_v37 = vpop.permute.xlu1 %5741 }
 0x4e8   :  { %6767 = vrot.lane.b32.xlu0 %v12289_v61, %s9856_s4 }
 0x4e9   :  { %v12524_v16 = vpop.permute.xlu0 %5743  ;;  %6761 = vrot.lane.b32.xlu1 %v12255_v41, %s9856_s4 }
 0x4eb   :  { %v5993_v33 = vpop.permute.xlu1 %5992 }
 0x4ec   :  { %v6030_v12 = vsel %vm1017_vm6, %v5993_v33, %v12360_v34  ;;  %v6032_v35 = vsel %vm1017_vm6, %v12432_v26, %v5993_v33  ;;  %7014 = vrot.lane.b32.xlu0 %v12245_v39, %s9857_s8 }
 0x4ed   :  { %v5995_v56 = vpop.permute.xlu0 %5994  ;;  %6765 = vrot.lane.b32.xlu1 %v12285_v46, %s9856_s4  ;;  %v12547_v18 = vmul.f32 %v6032_v35, %v14259_v0  ;;  %v12550_v33 = vmul.f32 %v6030_v12, %v14263_v27 }
 0x4ee   :  { %v6031_v5 = vsel %vm1017_vm6, %v5995_v56, %v12364_v29  ;;  %v6033_v8 = vsel %vm1017_vm6, %v12436_v10, %v5995_v56 }
 0x4ef   :  { %14336 = vst [vmem:[#allocation102_spill] sm:$0xff] %v12547_v18  ;;  %14337 = vst [vmem:[#allocation94_spill] sm:$0xff] %v12550_v33  ;;  %v12553_v26 = vmul.f32 %v6033_v8, %v14259_v0  ;;  %v12556_v34 = vmul.f32 %v6031_v5, %v14263_v27  ;;  %v12558_v48 = vpop.permute.xlu1 %6012  ;;  %v14342_v0 = vld [vmem:[#allocation12_spill] sm:$0xff] }
 0x4f0   :  { %14340 = vst [vmem:[#allocation29_spill] sm:$0xff] %v12558_v48  ;;  %7018 = vrot.lane.b32.xlu0 %v12173_v28, %s9857_s8 }
 0x4f1   :  { %14338 = vst [vmem:[#allocation85_spill] sm:$0xff] %v12553_v26  ;;  %14339 = vst [vmem:[#allocation28_spill] sm:$0xff] %v12556_v34  ;;  %v12564_v10 = vpop.permute.xlu0 %6014  ;;  %7012 = vrot.lane.b32.xlu1 %v12241_v54, %s9857_s8  ;;  %v14343_v34 = vld [vmem:[#allocation11_spill] sm:$0xff] }
 0x4f2   :  { %14341 = vst [vmem:[#allocation104_spill] sm:$0xff] %v12564_v10 }
 0x4f3   :  { %v5311_v8 = vpop.permute.xlu1 %5310 }
 0x4f4   :  { %v5314_v27 = vsel %vm206_vm1, %v12471_v31, %v5311_v8  ;;  %v5328_v12 = vsel %vm206_vm1, %v5311_v8, %v12408_v20  ;;  %6488 = vrot.lane.b32.xlu0 %v12336_v4, %s9855_s2  ;;  %s14449_s2 = sld [smem:[#allocation122_spill]] }
 0x4f5   :  { %v5313_v35 = vpop.permute.xlu0 %5312  ;;  %7016 = vrot.lane.b32.xlu1 %v12170_v23, %s9857_s8  ;;  %v5330_v33 = vmul.f32 %v5328_v12, %v14342_v0  ;;  %v5337_v18 = vmul.f32 %v5314_v27, %v14343_v34 }
 0x4f6   :  { %v5315_v5 = vsel %vm206_vm1, %v12475_v11, %v5313_v35  ;;  %v5329_v56 = vsel %vm206_vm1, %v5313_v35, %v12412_v57 }
 0x4f7   :  { %v5338_v20 = vmul.f32 %v5329_v56, %v14342_v0  ;;  %v5345_v8 = vmul.f32 %v5315_v5, %v14343_v34  ;;  %v12590_v26 = vpop.permute.xlu1 %5236  ;;  %v5248_v5 = vsel %vm119_vm3, %v12344_v21, %v12384_v40 }
 0x4f8   :  { %7010 = vrot.lane.b32.xlu0 %v12223_v45, %s9857_s8 }
 0x4f9   :  { %v5349_v48 = vpack.c.bf16 %v5338_v20, %v5330_v33  ;;  %v5239_v10 = vpop.permute.xlu0 %5238  ;;  %7008 = vrot.lane.b32.xlu1 %v12219_v62, %s9857_s8  ;;  %v5356_v29 = vpack.c.bf16 %v5345_v8, %v5337_v18  ;;  %v5249_v20 = vsel %vm119_vm3, %v12348_v9, %v12388_v25 }
 0x4fb   :  { %v12596_v57 = vpop.permute.xlu1 %5745  ;;  %5366 = vmatpush1.bf16.msra.mxu0 %v5349_v48  ;;  %5494 = vmatprep.subr.bf16.mxu1 %v5356_v29 }
 0x4fc   :  { %7022 = vrot.lane.b32.xlu0 %v12201_v51, %s9857_s8 }
 0x4fd   :  { %v12600_v56 = vpop.permute.xlu0 %5747  ;;  %7020 = vrot.lane.b32.xlu1 %v12197_v36, %s9857_s8 }
 0x4fe   :  { %9036 = vmatmul.mubr.msk.bf16.vlgmr.msra.gmra.mrb[16].mxu0 %vm2975_vm11, %v12469_v55 }
 0x4ff   :  { %v12606_v34 = vpop.permute.xlu1 %6016  ;;  %5483 = vmatprep.mubr.bf16.mxu0 %v14159_v14 }
 0x500   :  { %14344 = vst [vmem:[#allocation107_spill] sm:$0xff] %v12606_v34  ;;  %7026 = vrot.lane.b32.xlu0 %v12312_v30, %s9857_s8  ;;  %v5259_v34 = vmul.f32 %v5248_v5, %v10262_v63 }
 0x501   :  { %v12611_v48 = vpop.permute.xlu0 %6018  ;;  %7024 = vrot.lane.b32.xlu1 %v12308_v60, %s9857_s8 }
 0x502   :  { %14345 = vst [vmem:[#allocation105_spill] sm:$0xff] %v12611_v48  ;;  %v5267_v48 = vmul.f32 %v5249_v20, %v10262_v63  ;;  %v5251_v63 = vsel %vm119_vm3, %v12462_v15, %v12348_v9  ;;  %v5255_v20 = vsel %vm119_vm3, %v5239_v10, %v12420_v7 }
 0x503   :  { %v5299_v29 = vpop.permute.xlu1 %5298 }
 0x504   :  { %6759 = vrot.lane.b32.xlu0 %v12336_v4, %s9856_s4 }
 0x505   :  { %7028 = vrot.lane.b32.xlu1 %v12332_v2, %s9857_s8  ;;  %v5301_v18 = vpop.permute.xlu0 %5300 }
 0x507   :  { %v12619_v33 = vpop.permute.xlu1 %5224 }
 0x508   :  { %7034 = vrot.lane.b32.xlu0 %v12259_v22, %s9857_s8 }
 0x509   :  { %7032 = vrot.lane.b32.xlu1 %v12255_v41, %s9857_s8  ;;  %v12625_v0 = vpop.permute.xlu0 %5226 }
 0x50b   :  { %v12627_v27 = vpop.permute.xlu1 %5733 }
 0x50c   :  { %14346 = vst [vmem:[#allocation106_spill] sm:$0xff] %v12627_v27  ;;  %7038 = vrot.lane.b32.xlu0 %v12289_v61, %s9857_s8 }
 0x50d   :  { %7036 = vrot.lane.b32.xlu1 %v12285_v46, %s9857_s8  ;;  %v12633_v12 = vpop.permute.xlu0 %5735 }
 0x50e   :  { %14347 = vst [vmem:[#allocation109_spill] sm:$0xff] %v12633_v12 }
 0x50f   :  { %v12635_v35 = vpop.permute.xlu1 %6004 }
 0x510   :  { %14348 = vst [vmem:[#allocation97_spill] sm:$0xff] %v12635_v35  ;;  %7285 = vrot.lane.b32.xlu0 %v12245_v39, %s14227_s9  ;;  %v5321_v35 = vsel %vm206_vm1, %v12375_v6, %v5301_v18  ;;  %v5252_v6 = vsel %vm119_vm3, %v12416_v17, %v12458_v44 }
 0x511   :  { %7283 = vrot.lane.b32.xlu1 %v12241_v54, %s14227_s9  ;;  %v12649_v8 = vpop.permute.xlu0 %6006  ;;  %v5342_v54 = vmul.f32 %v5321_v35, %v10228_v42  ;;  %v14350_v35 = vld [vmem:[#allocation13_spill] sm:$0xff] }
 0x512   :  { %14349 = vst [vmem:[#allocation108_spill] sm:$0xff] %v12649_v8 }
 0x513   :  { %v5303_v39 = vpop.permute.xlu1 %5302 }
 0x514   :  { %v5316_v27 = vsel %vm206_vm1, %v5303_v39, %v12471_v31  ;;  %v5318_v12 = vsel %vm206_vm1, %v5299_v29, %v5303_v39  ;;  %7030 = vrot.lane.b32.xlu0 %v12336_v4, %s9857_s8  ;;  %v5253_v31 = vsel %vm119_vm3, %v12420_v7, %v12462_v15  ;;  %v5320_v39 = vsel %vm206_vm1, %v12368_v49, %v5299_v29 }
 0x515   :  { %7287 = vrot.lane.b32.xlu1 %v12170_v23, %s14227_s9  ;;  %v5305_v5 = vpop.permute.xlu0 %5304  ;;  %v5335_v8 = vmul.f32 %v5318_v12, %v10240_v52  ;;  %v5336_v49 = vmul.f32 %v5316_v27, %v10243_v53  ;;  %v5250_v7 = vsel %vm119_vm3, %v12458_v44, %v12344_v21  ;;  %v5334_v12 = vmul.f32 %v5320_v39, %v10228_v42 }
 0x516   :  { %v5317_v9 = vsel %vm206_vm1, %v5305_v5, %v12475_v11  ;;  %v5319_v15 = vsel %vm206_vm1, %v5301_v18, %v5305_v5  ;;  %v5265_v11 = vmul.f32 %v5253_v31, %v14350_v35  ;;  %v5241_v18 = vsel %vm119_vm3, %v12486_v58, %v5239_v10 }
 0x517   :  { %v5343_v29 = vmul.f32 %v5319_v15, %v10240_v52  ;;  %v5344_v23 = vmul.f32 %v5317_v9, %v10243_v53  ;;  %v12693_v61 = vpop.permute.xlu1 %6470  ;;  %v14351_v52 = vld [vmem:[#allocation14_spill] sm:$0xff]  ;;  %v5254_v27 = vsel %vm119_vm3, %v12590_v26, %v12416_v17  ;;  %v5257_v10 = vmul.f32 %v5252_v6, %v14350_v35  ;;  %v14353_v17 = vld [vmem:[#allocation16_spill] sm:$0xff] }
 0x518   :  { %7289 = vrot.lane.b32.xlu0 %v12173_v28, %s14227_s9  ;;  %v5266_v53 = vmul.f32 %v5251_v63, %v14351_v52  ;;  %v5240_v42 = vsel %vm119_vm3, %v12481_v38, %v12590_v26  ;;  %v14352_v63 = vld [vmem:[#allocation15_spill] sm:$0xff]  ;;  %v5353_v39 = vpack.c.bf16 %v5342_v54, %v5334_v12  ;;  %v5258_v9 = vmul.f32 %v5250_v7, %v14351_v52 }
 0x519   :  { %v5355_v5 = vpack.c.bf16 %v5344_v23, %v5336_v49  ;;  %7279 = vrot.lane.b32.xlu1 %v12219_v62, %s14227_s9  ;;  %v12713_v21 = vpop.permute.xlu0 %6472  ;;  %v5354_v44 = vpack.c.bf16 %v5343_v29, %v5335_v8  ;;  %v5264_v31 = vmul.f32 %v5255_v20, %v14352_v63  ;;  %v5271_v23 = vmul.f32 %v5241_v18, %v14353_v17 }
 0x51a   :  { %v5277_v49 = vpack.c.bf16 %v5267_v48, %v5259_v34  ;;  %v5256_v8 = vmul.f32 %v5254_v27, %v14352_v63  ;;  %v5275_v6 = vpack.c.bf16 %v5265_v11, %v5257_v10  ;;  %v5276_v29 = vpack.c.bf16 %v5266_v53, %v5258_v9  ;;  %v14354_v53 = vld [vmem:[#allocation20_spill] sm:$0xff] }
 0x51b   :  { %v5229_v15 = vpop.permute.xlu1 %5228  ;;  %5451 = vmatprep.subr.bf16.mxu0 %v5354_v44  ;;  %5495 = vmatpush1.bf16.msra.mxu1 %v5355_v5  ;;  %v5263_v26 = vmul.f32 %v5240_v42, %v14353_v17  ;;  %v5758_v35 = vsel %vm708_vm5, %v12356_v24, %v12396_v50  ;;  %v5247_v11 = vsel %vm119_vm3, %v12388_v25, %v12625_v0  ;;  %v14355_v44 = vld [vmem:[#allocation17_spill] sm:$0xff]  ;;  %v14356_v42 = vld [vmem:[#allocation18_spill] sm:$0xff]  ;;  %vm8434_vm1 = vcmask 392192  }
 0x51c   :  { %7281 = vrot.lane.b32.xlu0 %v12223_v45, %s14227_s9  ;;  %5452 = vmatpush1.bf16.msra.mxu0 %v5353_v39  ;;  %v5274_v20 = vpack.c.bf16 %v5264_v31, %v5256_v8  ;;  %v5244_v18 = vsel %vm119_vm3, %v12619_v33, %v5229_v15  ;;  %v5242_v24 = vsel %vm119_vm3, %v5229_v15, %v12481_v38  ;;  %v14357_v31 = vld [vmem:[#allocation19_spill] sm:$0xff] }
 0x51d   :  { %5588 = vmatprep.subr.bf16.mxu1 %v5277_v49  ;;  %7291 = vrot.lane.b32.xlu1 %v12197_v36, %s14227_s9  ;;  %v12729_v54 = vpop.permute.xlu0 %6476  ;;  %v5281_v48 = vpack.c.bf16 %v5271_v23, %v5263_v26  ;;  %v5757_v52 = vsel %vm708_vm5, %v12352_v32, %v12392_v47  ;;  %v5776_v25 = vmul.f32 %v5758_v35, %v14354_v53 }
 0x51e   :  { %5545 = vmatprep.subr.bf16.mxu0 %v5275_v6  ;;  %9039 = vmatmul.mubr.msk.bf16.vlgmr.msra.gmra.mrb[20].mxu1 %vm2975_vm11, %v12469_v55  ;;  %v5764_v27 = vsel %vm708_vm5, %v12600_v56, %v12428_v19  ;;  %v5246_v38 = vsel %vm119_vm3, %v12384_v40, %v12619_v33  ;;  %v5268_v10 = vmul.f32 %v5247_v11, %v14355_v44  ;;  %v14358_v6 = vld [vmem:[#allocation22_spill] sm:$0xff] }
 0x51f   :  { %v12733_v34 = vpop.permute.xlu1 %5737  ;;  %9038 = vmatmul.mubr.msk.bf16.vlgmr.msra.gmra.mrb[20].mxu0 %vm2975_vm11, %v12469_v55  ;;  %5589 = vmatpush1.bf16.msra.mxu1 %v5276_v29  ;;  %v9814_v55 = vld [vmem:[%s14334_s7] sm:$0xff]   ;;  %v5261_v32 = vmul.f32 %v5244_v18, %v14356_v42  ;;  %v5262_v40 = vmul.f32 %v5242_v24, %v14357_v31  ;;  %v5768_v17 = vmul.f32 %v5757_v52, %v14354_v53  ;;  %v14360_v52 = vld [vmem:[#allocation39_spill] sm:$0xff] }
 0x520   :  { %7293 = vrot.lane.b32.xlu0 %v12201_v51, %s14227_s9  ;;  %5546 = vmatpush1.bf16.msra.mxu0 %v5274_v20  ;;  %v5763_v23 = vsel %vm708_vm5, %v12596_v57, %v12424_v43  ;;  %v5749_v8 = vsel %vm708_vm5, %v12518_v37, %v12596_v57  ;;  %v5773_v29 = vmul.f32 %v5764_v27, %v14358_v6  ;;  %v14359_v20 = vld [vmem:[#allocation23_spill] sm:$0xff] }
 0x521   :  { %5674 = vmatprep.subr.bf16.mxu1 %v5281_v48  ;;  %7295 = vrot.lane.b32.xlu1 %v12308_v60, %s14227_s9  ;;  %v12741_v7 = vpop.permute.xlu0 %6468  ;;  %v5787_v11 = vpack.c.bf16 %v5776_v25, %v5768_v17  ;;  %v5765_v18 = vmul.f32 %v5763_v23, %v14358_v6  ;;  %v5772_v24 = vmul.f32 %v5749_v8, %v14359_v20 }
 0x522   :  { %5620 = vmatprep.mubr.bf16.mxu1 %v14159_v14  ;;  %5577 = vmatprep.mubr.bf16.mxu0 %v14159_v14  ;;  %v6511_v43 = vsel %vm1557_vm7, %v12741_v7, %v12713_v21  ;;  %v5751_v6 = vsel %vm708_vm5, %v12733_v34, %v12518_v37  ;;  %v14376_v37 = vld [vmem:[#allocation24_spill] sm:$0xff] }
 0x523   :  { %v12759_v12 = vpop.permute.xlu1 %6008  ;;  %v12835_v53 = vmul.f32 %v6511_v43, %v14360_v52  ;;  %v14374_v43 = vld [vmem:[#allocation104_spill] sm:$0xff] }
 0x524   :  { %7297 = vrot.lane.b32.xlu0 %v12312_v30, %s14227_s9 }
 0x525   :  { %7299 = vrot.lane.b32.xlu1 %v12332_v2, %s14227_s9  ;;  %v5231_v5 = vpop.permute.xlu0 %5230 }
 0x526   :  { %v5243_v63 = vsel %vm119_vm3, %v5231_v5, %v12486_v58  ;;  %v5245_v19 = vsel %vm119_vm3, %v12625_v0, %v5231_v5  ;;  %9042 = vmatmul.mubr.msk.bf16.vlgmr.msra.gmra.mrb[16].mxu1 %vm2975_vm11, %v9814_v55  ;;  %v5750_v58 = vsel %vm708_vm5, %v12524_v16, %v12600_v56  ;;  %v5260_v0 = vmul.f32 %v5246_v38, %v14355_v44  ;;  %v7550_v44 = vld [vmem:[%s14362_s5] sm:$0xff] }
 0x527   :  { %v5269_v33 = vmul.f32 %v5245_v19, %v14356_v42  ;;  %v5270_v39 = vmul.f32 %v5243_v63, %v14357_v31  ;;  %v12793_v9 = vpop.permute.xlu1 %6474  ;;  %9041 = vmatmul.mubr.msk.bf16.vlgmr.msra.gmra.mrb[16].mxu0 %vm2975_vm11, %v9814_v55  ;;  %5706 = vmatprep.mubr.bf16.mxu1 %v14159_v14  ;;  %v5780_v48 = vmul.f32 %v5750_v58, %v14359_v20  ;;  %v7551_v31 = vld [vmem:[%s14362_s5 + $0x8] sm:$0xff] }
 0x528   :  { %7301 = vrot.lane.b32.xlu0 %v12336_v4, %s14227_s9  ;;  %5663 = vmatprep.mubr.bf16.mxu0 %v14159_v14  ;;  %v5278_v26 = vpack.c.bf16 %v5268_v10, %v5260_v0  ;;  %v5784_v38 = vpack.c.bf16 %v5773_v29, %v5765_v18  ;;  %v14361_v5 = vpack.c.bf16 %v12513_v59, %v12507_v1  ;;  %v14365_v1 = vld [vmem:[#allocation92_spill] sm:$0xff]  ;;  %v14369_v0 = vld [vmem:[#allocation106_spill] sm:$0xff]  ;;  %v14372_v29 = vld [vmem:[#allocation27_spill] sm:$0xff] }
 0x529   :  { %v5280_v15 = vpack.c.bf16 %v5270_v39, %v5262_v40  ;;  %7303 = vrot.lane.b32.xlu1 %v12255_v41, %s14227_s9  ;;  %v12812_v49 = vpop.permute.xlu0 %6480  ;;  %v5279_v56 = vpack.c.bf16 %v5269_v33, %v5261_v32  ;;  %v14363_v32 = vld [vmem:[#allocation101_spill] sm:$0xff]  ;;  %v5791_v19 = vpack.c.bf16 %v5780_v48, %v5772_v24  ;;  %v14366_v40 = vld [vmem:[#allocation95_spill] sm:$0xff]  ;;  %v5753_v17 = vsel %vm708_vm5, %v14369_v0, %v12733_v34 }
 0x52a   :  { %v14364_v63 = vpack.c.bf16 %v12516_v3, %v14363_v32  ;;  %v14367_v33 = vld [vmem:[#allocation93_spill] sm:$0xff]  ;;  %v9815_v3 = vld [vmem:[%s14334_s7 + $0x10] sm:$0xff]   ;;  %v14375_v48 = vld [vmem:[#allocation103_spill] sm:$0xff]  ;;  %v5755_v18 = vsel %vm708_vm5, %v12392_v47, %v14369_v0 }
 0x52b   :  { %v12824_v35 = vpop.permute.xlu1 %6466  ;;  %5631 = vmatprep.subr.bf16.mxu0 %v5279_v56  ;;  %5675 = vmatpush1.bf16.msra.mxu1 %v5280_v15  ;;  %v14368_v39 = vld [vmem:[#allocation109_spill] sm:$0xff]  ;;  %v14370_v15 = vld [vmem:[#allocation84_spill] sm:$0xff]  ;;  %v14371_v56 = vld [vmem:[#allocation83_spill] sm:$0xff] }
 0x52c   :  { %v6510_v57 = vsel %vm1557_vm7, %v12824_v35, %v12693_v61  ;;  %7305 = vrot.lane.b32.xlu0 %v12259_v22, %s14227_s9  ;;  %5632 = vmatpush1.bf16.msra.mxu0 %v5278_v26  ;;  %v5756_v58 = vsel %vm708_vm5, %v12396_v50, %v14368_v39  ;;  %v6028_v8 = vsel %vm1017_vm6, %v14371_v56, %v14370_v15  ;;  %v14373_v26 = vld [vmem:[#allocation105_spill] sm:$0xff] }
 0x52d   :  { %v12838_v27 = vmul.f32 %v6510_v57, %v14360_v52  ;;  %5843 = vmatprep.subr.bf16.mxu1 %v5787_v11  ;;  %7307 = vrot.lane.b32.xlu1 %v12285_v46, %s14227_s9  ;;  %v12842_v25 = vpop.permute.xlu0 %6484  ;;  %v6021_v20 = vsel %vm1017_vm6, %v14374_v43, %v14373_v26  ;;  %v6035_v11 = vsel %vm1017_vm6, %v14373_v26, %v14375_v48  ;;  %v14377_v24 = vld [vmem:[#allocation25_spill] sm:$0xff]  ;;  %v14382_v26 = vld [vmem:[#allocation30_spill] sm:$0xff] }
 0x52e   :  { %5800 = vmatprep.subr.bf16.mxu0 %v14361_v5  ;;  %9044 = vmatmul.mubr.msk.bf16.vlgmr.msra.gmra.mrb[20].mxu1 %vm2975_vm11, %v9814_v55  ;;  %v5777_v34 = vmul.f32 %v5756_v58, %v14376_v37  ;;  %v5770_v52 = vmul.f32 %v5753_v17, %v14377_v24  ;;  %v14381_v58 = vld [vmem:[#allocation86_spill] sm:$0xff] }
 0x52f   :  { %v6533_v10 = vpack.c.bf16 %v12835_v53, %v12838_v27  ;;  %v12853_v42 = vpop.permute.xlu1 %6478  ;;  %9043 = vmatmul.mubr.msk.bf16.vlgmr.msra.gmra.mrb[20].mxu0 %vm2975_vm11, %v9814_v55  ;;  %5844 = vmatpush1.bf16.msra.mxu1 %v14364_v63  ;;  %v6029_v55 = vsel %vm1017_vm6, %v14367_v33, %v14366_v40  ;;  %v14379_v33 = vld [vmem:[#allocation107_spill] sm:$0xff]  ;;  %v14403_v27 = vld [vmem:[#allocation42_spill] sm:$0xff] }
 0x530   :  { %7309 = vrot.lane.b32.xlu0 %v14365_v1, %s14227_s9  ;;  %5801 = vmatpush1.bf16.msra.mxu0 %v5784_v38  ;;  %v6047_v50 = vmul.f32 %v6029_v55, %v14372_v29  ;;  %v14380_v55 = vld [vmem:[#allocation29_spill] sm:$0xff]  ;;  %v6034_v0 = vsel %vm1017_vm6, %v14379_v33, %v14381_v58  ;;  %s14429_s9 = sld [smem:[#allocation118_spill]] }
 0x531   :  { %5929 = vmatprep.subr.bf16.mxu1 %v5791_v19  ;;  %7554 = vperm.xlu1 %9790, %v7550_v44   ;;  %v12861_v59 = vpop.permute.xlu0 %6492  ;;  %v14378_v44 = vld [vmem:[#allocation26_spill] sm:$0xff] }
 0x532   :  { %5875 = vmatprep.mubr.bf16.mxu1 %v14159_v14  ;;  %5832 = vmatprep.mubr.bf16.mxu0 %v14159_v14  ;;  %v5771_v32 = vmul.f32 %v5751_v6, %v14378_v44 }
 0x533   :  { %v12883_v23 = vpop.permute.xlu1 %6482 }
 0x534   :  { %7559 = vperm.xlu0 %9789, %v7551_v31   ;;  %v5769_v31 = vmul.f32 %v5755_v18, %v14376_v37 }
 0x535   :  { %v5740_v57 = vpop.permute.xlu0 %5739 }
 0x536   :  { %v5752_v38 = vsel %vm708_vm5, %v5740_v57, %v12524_v16  ;;  %v5754_v5 = vsel %vm708_vm5, %v14368_v39, %v5740_v57  ;;  %9049 = vmatmul.mubr.msk.bf16.vlgmr.msra.gmra.mrb[16].mxu1 %vm2975_vm11, %v9815_v3  ;;  %v6039_v16 = vmul.f32 %v6028_v8, %v14372_v29  ;;  %v6020_v39 = vsel %vm1017_vm6, %v14380_v55, %v14379_v33  ;;  %v14383_v29 = vld [vmem:[#allocation31_spill] sm:$0xff]  ;;  %v14390_v33 = vld [vmem:[#allocation108_spill] sm:$0xff]  ;;  %v13363_v13 = vld [vmem:[%s14429_s9] sm:$0xff] }
 0x537   :  { %v5778_v63 = vmul.f32 %v5754_v5, %v14377_v24  ;;  %v5779_v47 = vmul.f32 %v5752_v38, %v14378_v44  ;;  %v12918_v19 = vpop.permute.xlu1 %6486  ;;  %9048 = vmatmul.mubr.msk.bf16.vlgmr.msra.gmra.mrb[16].mxu0 %vm2975_vm11, %v9815_v3  ;;  %5961 = vmatprep.mubr.bf16.mxu1 %v14159_v14  ;;  %v6044_v8 = vmul.f32 %v6035_v11, %v14382_v26  ;;  %v14384_v5 = vld [vmem:[#allocation85_spill] sm:$0xff]  ;;  %v14385_v44 = vld [vmem:[#allocation102_spill] sm:$0xff] }
 0x538   :  { %5918 = vmatprep.mubr.bf16.mxu0 %v14159_v14  ;;  %v6051_v48 = vmul.f32 %v6021_v20, %v14383_v29  ;;  %v5788_v18 = vpack.c.bf16 %v5777_v34, %v5769_v31  ;;  %v6058_v57 = vpack.c.bf16 %v6047_v50, %v6039_v16  ;;  %v6036_v24 = vmul.f32 %v6034_v0, %v14382_v26  ;;  %v14387_v34 = vld [vmem:[#allocation28_spill] sm:$0xff]  ;;  %v9816_v31 = vld [vmem:[%s14334_s7 + $0x18] sm:$0xff]  }
 0x539   :  { %v5790_v17 = vpack.c.bf16 %v5779_v47, %v5771_v32  ;;  %v12933_v56 = vpop.permute.xlu0 %6496  ;;  %v5789_v6 = vpack.c.bf16 %v5778_v63, %v5770_v52  ;;  %v6043_v38 = vmul.f32 %v6020_v39, %v14383_v29  ;;  %v14386_v32 = vpack.c.bf16 %v14384_v5, %v14385_v44  ;;  %v14388_v63 = vld [vmem:[#allocation94_spill] sm:$0xff]  ;;  %v14391_v39 = vld [vmem:[#allocation97_spill] sm:$0xff] }
 0x53a   :  { %v6055_v11 = vpack.c.bf16 %v6044_v8, %v6036_v24  ;;  %v14389_v47 = vpack.c.bf16 %v14387_v34, %v14388_v63  ;;  %v6024_v58 = vsel %vm1017_vm6, %v14391_v39, %v12759_v12  ;;  %v14392_v8 = vld [vmem:[#allocation32_spill] sm:$0xff]  ;;  %v14393_v29 = vld [vmem:[#allocation33_spill] sm:$0xff] }
 0x53b   :  { %v12937_v37 = vpop.permute.xlu1 %6490  ;;  %5886 = vmatprep.subr.bf16.mxu0 %v5789_v6  ;;  %5930 = vmatpush1.bf16.msra.mxu1 %v5790_v17  ;;  %v6062_v50 = vpack.c.bf16 %v6051_v48, %v6043_v38  ;;  %v6022_v17 = vsel %vm1017_vm6, %v12759_v12, %v14380_v55  ;;  %v6026_v6 = vsel %vm1017_vm6, %v14370_v15, %v14391_v39  ;;  %v14394_v12 = vld [vmem:[#allocation34_spill] sm:$0xff]  ;;  %v14395_v63 = vld [vmem:[#allocation21_spill] sm:$0xff] }
 0x53c   :  { %5887 = vmatpush1.bf16.msra.mxu0 %v5788_v18  ;;  %6114 = vmatprep.subr.bf16.mxu1 %v6058_v57  ;;  %v6041_v48 = vmul.f32 %v6024_v58, %v14393_v29  ;;  %v6042_v55 = vmul.f32 %v6022_v17, %v14394_v12  ;;  %v6504_v17 = vsel %vm1557_vm7, %v12853_v42, %v12883_v23 }
 0x53d   :  { %6071 = vmatprep.subr.bf16.mxu0 %v14386_v32  ;;  %v12944_v52 = vpop.permute.xlu0 %6743  ;;  %v6500_v53 = vsel %vm1557_vm7, %v12918_v19, %v12937_v37 }
 0x53e   :  { %9051 = vmatmul.mubr.msk.bf16.vlgmr.msra.gmra.mrb[20].mxu1 %vm2975_vm11, %v9815_v3 }
 0x53f   :  { %v12947_v20 = vpop.permute.xlu1 %6494  ;;  %9050 = vmatmul.mubr.msk.bf16.vlgmr.msra.gmra.mrb[20].mxu0 %vm2975_vm11, %v9815_v3  ;;  %6115 = vmatpush1.bf16.msra.mxu1 %v14389_v47  ;;  %v6027_v3 = vsel %vm1017_vm6, %v14366_v40, %v14390_v33  ;;  %v14396_v47 = vld [vmem:[#allocation100_spill] sm:$0xff] }
 0x540   :  { %6072 = vmatpush1.bf16.msra.mxu0 %v6055_v11  ;;  %6200 = vmatprep.subr.bf16.mxu1 %v6062_v50  ;;  %v6048_v40 = vmul.f32 %v6027_v3, %v14392_v8  ;;  %v6265_v50 = vpack.c.bf16 %v12201_v51, %v12197_v36  ;;  %v14397_v3 = vld [vmem:[#allocation91_spill] sm:$0xff]  ;;  %v6262_v36 = vpack.c.bf16 %v12223_v45, %v12219_v62 }
 0x541   :  { %v12953_v16 = vpop.permute.xlu0 %6747  ;;  %6146 = vmatprep.mubr.bf16.mxu1 %v14159_v14  ;;  %6103 = vmatprep.mubr.bf16.mxu0 %v14159_v14  ;;  %v6264_v39 = vpack.c.bf16 %v12173_v28, %v14397_v3  ;;  %v6269_v51 = vpack.c.bf16 %v14365_v1, %v12285_v46  ;;  %v6267_v28 = vpack.c.bf16 %v12336_v4, %v12332_v2  ;;  %v14398_v2 = vld [vmem:[#allocation35_spill] sm:$0xff] }
 0x542   :  { %v6508_v62 = vsel %vm1557_vm7, %v12693_v61, %v12793_v9  ;;  %v6505_v45 = vsel %vm1557_vm7, %v12812_v49, %v12842_v25  ;;  %v6509_v46 = vsel %vm1557_vm7, %v12713_v21, %v12729_v54  ;;  %v6517_v4 = vmul.f32 %v6504_v17, %v14398_v2  ;;  %v9817_v61 = vld [vmem:[%s14334_s7 + $0x20] sm:$0xff]  }
 0x543   :  { %v12968_v0 = vpop.permute.xlu1 %6741  ;;  %v6268_v21 = vpack.c.bf16 %v12259_v22, %v12255_v41 }
 0x545   :  { %v6011_v26 = vpop.permute.xlu0 %6010 }
 0x546   :  { %v6023_v18 = vsel %vm1017_vm6, %v6011_v26, %v14374_v43  ;;  %v6025_v57 = vsel %vm1017_vm6, %v14390_v33, %v6011_v26  ;;  %9056 = vmatmul.mubr.msk.bf16.vlgmr.msra.gmra.mrb[16].mxu1 %vm2975_vm11, %v9816_v31  ;;  %v6040_v43 = vmul.f32 %v6026_v6, %v14392_v8  ;;  %v6263_v33 = vpack.c.bf16 %v14396_v47, %v14395_v63 }
 0x547   :  { %v6049_v24 = vmul.f32 %v6025_v57, %v14393_v29  ;;  %v6050_v15 = vmul.f32 %v6023_v18, %v14394_v12  ;;  %v12990_v38 = vpop.permute.xlu1 %6745  ;;  %9055 = vmatmul.mubr.msk.bf16.vlgmr.msra.gmra.mrb[16].mxu0 %vm2975_vm11, %v9816_v31  ;;  %6232 = vmatprep.mubr.bf16.mxu1 %v14159_v14  ;;  %v6266_v57 = vpack.c.bf16 %v12312_v30, %v12308_v60  ;;  %v14400_v60 = vld [vmem:[#allocation37_spill] sm:$0xff] }
 0x548   :  { %6189 = vmatprep.mubr.bf16.mxu0 %v14159_v14  ;;  %v6059_v11 = vpack.c.bf16 %v6048_v40, %v6040_v43  ;;  %v6525_v40 = vmul.f32 %v6505_v45, %v14398_v2  ;;  %v6499_v47 = vsel %vm1557_vm7, %v12861_v59, %v12933_v56  ;;  %v6780_v2 = vsel %vm1866_vm8, %v12944_v52, %v12953_v16 }
 0x549   :  { %v6061_v5 = vpack.c.bf16 %v6050_v15, %v6042_v55  ;;  %v12996_v44 = vpop.permute.xlu0 %6739  ;;  %v6060_v32 = vpack.c.bf16 %v6049_v24, %v6041_v48  ;;  %v6506_v48 = vsel %vm1557_vm7, %v12793_v9, %v12853_v42  ;;  %v6512_v55 = vsel %vm1557_vm7, %v12947_v20, %v12824_v35  ;;  %v14401_v42 = vld [vmem:[#allocation38_spill] sm:$0xff] }
 0x54a   :  { %v6536_v12 = vpack.c.bf16 %v6525_v40, %v6517_v4  ;;  %v6507_v9 = vsel %vm1557_vm7, %v12729_v54, %v12812_v49  ;;  %v6516_v30 = vmul.f32 %v6506_v48, %v14400_v60  ;;  %v6513_v35 = vsel %vm1557_vm7, %v12933_v56, %v12741_v7  ;;  %v14406_v4 = vld [vmem:[#allocation43_spill] sm:$0xff] }
 0x54b   :  { %v13000_v34 = vpop.permute.xlu1 %6737  ;;  %6157 = vmatprep.subr.bf16.mxu0 %v6060_v32  ;;  %6201 = vmatpush1.bf16.msra.mxu1 %v6061_v5  ;;  %v6521_v24 = vmul.f32 %v6512_v55, %v14401_v42  ;;  %v6524_v54 = vmul.f32 %v6507_v9, %v14400_v60  ;;  %v6529_v43 = vmul.f32 %v6513_v35, %v14401_v42  ;;  %v14409_v35 = vld [vmem:[#allocation47_spill] sm:$0xff] }
 0x54c   :  { %6158 = vmatpush1.bf16.msra.mxu0 %v6059_v11  ;;  %6321 = vmatprep.subr.bf16.mxu1 %v6265_v50  ;;  %v6498_v7 = vsel %vm1557_vm7, %v12937_v37, %v12947_v20  ;;  %v14402_v20 = vld [vmem:[#allocation41_spill] sm:$0xff]  ;;  %v6502_v56 = vsel %vm1557_vm7, %v12883_v23, %v12918_v19  ;;  %v6779_v23 = vsel %vm1866_vm8, %v12968_v0, %v12990_v38  ;;  %v14404_v19 = vld [vmem:[#allocation44_spill] sm:$0xff] }
 0x54d   :  { %6278 = vmatprep.subr.bf16.mxu0 %v6263_v33  ;;  %v6535_v5 = vpack.c.bf16 %v6524_v54, %v6516_v30  ;;  %v6540_v11 = vpack.c.bf16 %v6529_v43, %v6521_v24  ;;  %v6520_v33 = vmul.f32 %v6498_v7, %v14402_v20  ;;  %v6518_v37 = vmul.f32 %v6502_v56, %v14404_v19 }
 0x54e   :  { %v13006_v58 = vpop.permute.xlu0 %6751  ;;  %9058 = vmatmul.mubr.msk.bf16.vlgmr.msra.gmra.mrb[20].mxu1 %vm2975_vm11, %v9816_v31 }
 0x54f   :  { %v13017_v6 = vpop.permute.xlu1 %6749  ;;  %9057 = vmatmul.mubr.msk.bf16.vlgmr.msra.gmra.mrb[20].mxu0 %vm2975_vm11, %v9816_v31  ;;  %6322 = vmatpush1.bf16.msra.mxu1 %v6264_v39  ;;  %v14399_v31 = vld [vmem:[#allocation36_spill] sm:$0xff] }
 0x550   :  { %6279 = vmatpush1.bf16.msra.mxu0 %v6262_v36  ;;  %6407 = vmatprep.subr.bf16.mxu1 %v6269_v51  ;;  %v6515_v26 = vmul.f32 %v6508_v62, %v14399_v31  ;;  %v6523_v29 = vmul.f32 %v6509_v46, %v14399_v31  ;;  %v9818_v36 = vld [vmem:[%s14334_s7 + $0x28] sm:$0xff]   ;;  %v6528_v51 = vmul.f32 %v6499_v47, %v14402_v20  ;;  %v14405_v62 = vld [vmem:[#allocation40_spill] sm:$0xff] }
 0x551   :  { %6364 = vmatprep.subr.bf16.mxu0 %v6267_v28  ;;  %6353 = vmatprep.mubr.bf16.mxu1 %v14159_v14  ;;  %v6519_v45 = vmul.f32 %v6500_v53, %v14405_v62  ;;  %v6781_v31 = vsel %vm1866_vm8, %v13000_v34, %v12968_v0 }
 0x552   :  { %v13036_v1 = vpop.permute.xlu0 %6755  ;;  %6310 = vmatprep.mubr.bf16.mxu0 %v14159_v14  ;;  %v6534_v22 = vpack.c.bf16 %v6523_v29, %v6515_v26  ;;  %v6539_v46 = vpack.c.bf16 %v6528_v51, %v6520_v33  ;;  %v6777_v26 = vsel %vm1866_vm8, %v12990_v38, %v13017_v6  ;;  %v6778_v38 = vsel %vm1866_vm8, %v12953_v16, %v13006_v58 }
 0x553   :  { %v13043_v8 = vpop.permute.xlu1 %6753  ;;  %v6776_v3 = vsel %vm1866_vm8, %v13006_v58, %v13036_v1  ;;  %v6782_v16 = vsel %vm1866_vm8, %v12996_v44, %v12944_v52  ;;  %v14408_v58 = vld [vmem:[#allocation46_spill] sm:$0xff]  ;;  %v6785_v42 = vmul.f32 %v6781_v31, %v14409_v35 }
 0x554   :  { %v6775_v50 = vsel %vm1866_vm8, %v13017_v6, %v13043_v8  ;;  %v6796_v28 = vmul.f32 %v6776_v3, %v14403_v27  ;;  %v6793_v7 = vmul.f32 %v6782_v16, %v14409_v35  ;;  %v14410_v3 = vld [vmem:[#allocation49_spill] sm:$0xff] }
 0x556   :  { %v13053_v18 = vpop.permute.xlu0 %6763  ;;  %9063 = vmatmul.mubr.msk.bf16.vlgmr.msra.gmra.mrb[16].mxu1 %vm2975_vm11, %v9817_v61  ;;  %v6804_v47 = vpack.c.bf16 %v6793_v7, %v6785_v42 }
 0x557   :  { %6408 = vmatpush1.bf16.msra.mxu1 %v6268_v21  ;;  %v13062_v41 = vpop.permute.xlu1 %6757  ;;  %9062 = vmatmul.mubr.msk.bf16.vlgmr.msra.gmra.mrb[16].mxu0 %vm2975_vm11, %v9817_v61 }
 0x558   :  { %6365 = vmatpush1.bf16.msra.mxu0 %v6266_v57  ;;  %6592 = vmatprep.subr.bf16.mxu1 %v6536_v12  ;;  %v14407_v12 = vld [vmem:[#allocation45_spill] sm:$0xff]  ;;  %v6773_v56 = vsel %vm1866_vm8, %v13043_v8, %v13062_v41 }
 0x559   :  { %6549 = vmatprep.subr.bf16.mxu0 %v6534_v22  ;;  %6439 = vmatprep.mubr.bf16.mxu1 %v14159_v14  ;;  %v6795_v24 = vmul.f32 %v6778_v38, %v14407_v12 }
 0x55a   :  { %v13076_v15 = vpop.permute.xlu0 %6767  ;;  %6396 = vmatprep.mubr.bf16.mxu0 %v14159_v14 }
 0x55b   :  { %v13080_v49 = vpop.permute.xlu1 %6761  ;;  %v6784_v55 = vsel %vm1866_vm8, %v13076_v15, %v12996_v44  ;;  %v6770_v33 = vsel %vm1866_vm8, %v13053_v18, %v13076_v15 }
 0x55c   :  { %v6800_v43 = vmul.f32 %v6784_v55, %v14408_v58  ;;  %v6799_v15 = vmul.f32 %v6770_v33, %v14410_v3  ;;  %v9820_v33 = vld [vmem:[%s14334_s7 + $0x38] sm:$0xff]  }
 0x55e   :  { %v13087_v32 = vpop.permute.xlu0 %7014  ;;  %9065 = vmatmul.mubr.msk.bf16.vlgmr.msra.gmra.mrb[20].mxu1 %vm2975_vm11, %v9817_v61 }
 0x55f   :  { %6593 = vmatpush1.bf16.msra.mxu1 %v6535_v5  ;;  %v6766_v63 = vpop.permute.xlu1 %6765  ;;  %9064 = vmatmul.mubr.msk.bf16.vlgmr.msra.gmra.mrb[20].mxu0 %vm2975_vm11, %v9817_v61  ;;  %v6786_v61 = vmul.f32 %v6779_v23, %v14406_v4 }
 0x560   :  { %6550 = vmatpush1.bf16.msra.mxu0 %v6533_v10  ;;  %6678 = vmatprep.subr.bf16.mxu1 %v6540_v11  ;;  %v6788_v10 = vmul.f32 %v6775_v50, %v14403_v27  ;;  %v6783_v21 = vsel %vm1866_vm8, %v6766_v63, %v13000_v34  ;;  %v6769_v52 = vsel %vm1866_vm8, %v13080_v49, %v6766_v63  ;;  %v9819_v27 = vld [vmem:[%s14334_s7 + $0x30] sm:$0xff]  }
 0x561   :  { %6624 = vmatprep.mubr.bf16.mxu1 %v14159_v14  ;;  %6581 = vmatprep.mubr.bf16.mxu0 %v14159_v14  ;;  %v6792_v22 = vmul.f32 %v6783_v21, %v14408_v58  ;;  %v6791_v63 = vmul.f32 %v6769_v52, %v14410_v3 }
 0x562   :  { %v13118_v39 = vpop.permute.xlu0 %7018  ;;  %v6807_v29 = vpack.c.bf16 %v6796_v28, %v6788_v10  ;;  %v6771_v10 = vsel %vm1866_vm8, %v13062_v41, %v13080_v49  ;;  %v14411_v28 = vld [vmem:[#allocation52_spill] sm:$0xff] }
 0x563   :  { %v13128_v17 = vpop.permute.xlu1 %7012  ;;  %v6811_v50 = vpack.c.bf16 %v6800_v43, %v6792_v22  ;;  %v14413_v49 = vld [vmem:[#allocation48_spill] sm:$0xff] }
 0x566   :  { %v6489_v40 = vpop.permute.xlu0 %6488  ;;  %9070 = vmatmul.mubr.msk.bf16.vlgmr.msra.gmra.mrb[16].mxu1 %vm2975_vm11, %v9818_v36 }
 0x567   :  { %v6501_v48 = vsel %vm1557_vm7, %v6489_v40, %v12861_v59  ;;  %v6503_v0 = vsel %vm1557_vm7, %v12842_v25, %v6489_v40  ;;  %6679 = vmatpush1.bf16.msra.mxu1 %v6539_v46  ;;  %v7017_v57 = vpop.permute.xlu1 %7016  ;;  %9069 = vmatmul.mubr.msk.bf16.vlgmr.msra.gmra.mrb[16].mxu0 %vm2975_vm11, %v9818_v36  ;;  %v6794_v59 = vmul.f32 %v6780_v2, %v14406_v4  ;;  %v14414_v4 = vld [vmem:[#allocation51_spill] sm:$0xff] }
 0x568   :  { %v6526_v6 = vmul.f32 %v6503_v0, %v14404_v19  ;;  %v6527_v34 = vmul.f32 %v6501_v48, %v14405_v62  ;;  %6863 = vmatprep.subr.bf16.mxu1 %v6807_v29  ;;  %6710 = vmatprep.mubr.bf16.mxu1 %v14159_v14  ;;  %v6787_v25 = vmul.f32 %v6777_v26, %v14407_v12  ;;  %v14412_v62 = vld [vmem:[#allocation50_spill] sm:$0xff] }
 0x569   :  { %6667 = vmatprep.mubr.bf16.mxu0 %v14159_v14  ;;  %v6805_v5 = vpack.c.bf16 %v6794_v59, %v6786_v61  ;;  %v6789_v19 = vmul.f32 %v6773_v56, %v14411_v28  ;;  %v6790_v46 = vmul.f32 %v6771_v10, %v14413_v49  ;;  %v7051_v2 = vsel %vm2175_vm9, %v13087_v32, %v13118_v39 }
 0x56a   :  { %v6537_v9 = vpack.c.bf16 %v6526_v6, %v6518_v37  ;;  %v13176_v60 = vpop.permute.xlu0 %7010  ;;  %v6538_v30 = vpack.c.bf16 %v6527_v34, %v6519_v45  ;;  %v6806_v11 = vpack.c.bf16 %v6795_v24, %v6787_v25  ;;  %v6810_v37 = vpack.c.bf16 %v6799_v15, %v6791_v63  ;;  %v14416_v25 = vld [vmem:[#allocation55_spill] sm:$0xff] }
 0x56b   :  { %v13180_v54 = vpop.permute.xlu1 %7008  ;;  %v7065_v34 = vmul.f32 %v7051_v2, %v14414_v4 }
 0x56c   :  { %6635 = vmatprep.subr.bf16.mxu0 %v6538_v30  ;;  %v7052_v0 = vsel %vm2175_vm9, %v13180_v54, %v13128_v17 }
 0x56d   :  { %6636 = vmatpush1.bf16.msra.mxu0 %v6537_v9  ;;  %v7056_v55 = vmul.f32 %v7052_v0, %v14416_v25  ;;  %v14422_v0 = vld [vmem:[#allocation63_spill] sm:$0xff] }
 0x56e   :  { %v7023_v44 = vpop.permute.xlu0 %7022  ;;  %6820 = vmatprep.subr.bf16.mxu0 %v6805_v5  ;;  %9072 = vmatmul.mubr.msk.bf16.vlgmr.msra.gmra.mrb[20].mxu1 %vm2975_vm11, %v9818_v36  ;;  %v14417_v5 = vld [vmem:[#allocation57_spill] sm:$0xff] }
 0x56f   :  { %6864 = vmatpush1.bf16.msra.mxu1 %v6806_v11  ;;  %v7021_v20 = vpop.permute.xlu1 %7020  ;;  %6895 = vmatprep.mubr.bf16.mxu1 %v14159_v14 }
 0x570   :  { %9071 = vmatmul.mubr.msk.bf16.vlgmr.msra.gmra.mrb[20].mxu0 %vm2975_vm11, %v9818_v36  ;;  %6949 = vmatprep.subr.bf16.mxu1 %v6811_v50  ;;  %v7050_v36 = vsel %vm2175_vm9, %v13128_v17, %v7017_v57  ;;  %v7048_v31 = vsel %vm2175_vm9, %v7017_v57, %v7021_v20  ;;  %v7049_v57 = vsel %vm2175_vm9, %v13118_v39, %v7023_v44 }
 0x571   :  { %6821 = vmatpush1.bf16.msra.mxu0 %v6804_v47  ;;  %6852 = vmatprep.mubr.bf16.mxu0 %v14159_v14  ;;  %v7057_v61 = vmul.f32 %v7050_v36, %v14414_v4  ;;  %v7053_v17 = vsel %vm2175_vm9, %v13176_v60, %v13087_v32  ;;  %v14421_v4 = vld [vmem:[#allocation59_spill] sm:$0xff] }
 0x572   :  { %v13200_v53 = vpop.permute.xlu0 %7026  ;;  %v7064_v9 = vmul.f32 %v7053_v17, %v14416_v25  ;;  %v9821_v17 = vld [vmem:[%s14334_s7 + $0x40] sm:$0xff]   ;;  %v14423_v25 = vld [vmem:[#allocation61_spill] sm:$0xff] }
 0x573   :  { %v7047_v8 = vsel %vm2175_vm9, %v7023_v44, %v13200_v53  ;;  %v13216_v51 = vpop.permute.xlu1 %7024  ;;  %v7076_v22 = vpack.c.bf16 %v7065_v34, %v7057_v61  ;;  %v14418_v44 = vld [vmem:[#allocation54_spill] sm:$0xff] }
 0x574   :  { %v7046_v23 = vsel %vm2175_vm9, %v7021_v20, %v13216_v51  ;;  %v7067_v45 = vmul.f32 %v7047_v8, %v14412_v62  ;;  %v7075_v42 = vpack.c.bf16 %v7064_v9, %v7056_v55 }
 0x575   :  { %v7059_v41 = vmul.f32 %v7046_v23, %v14412_v62  ;;  %v14419_v23 = vld [vmem:[#allocation60_spill] sm:$0xff] }
 0x576   :  { %v6760_v26 = vpop.permute.xlu0 %6759  ;;  %9077 = vmatmul.mubr.msk.bf16.vlgmr.msra.gmra.mrb[16].mxu1 %vm2975_vm11, %v9819_v27 }
 0x577   :  { %v6772_v40 = vsel %vm1866_vm8, %v6760_v26, %v13053_v18  ;;  %v6774_v29 = vsel %vm1866_vm8, %v13036_v1, %v6760_v26  ;;  %6950 = vmatpush1.bf16.msra.mxu1 %v6810_v37  ;;  %v7029_v21 = vpop.permute.xlu1 %7028  ;;  %v7078_v48 = vpack.c.bf16 %v7067_v45, %v7059_v41  ;;  %6981 = vmatprep.mubr.bf16.mxu1 %v14159_v14  ;;  %v14415_v1 = vld [vmem:[#allocation53_spill] sm:$0xff] }
 0x578   :  { %v6797_v18 = vmul.f32 %v6774_v29, %v14411_v28  ;;  %v6798_v38 = vmul.f32 %v6772_v40, %v14413_v49  ;;  %9076 = vmatmul.mubr.msk.bf16.vlgmr.msra.gmra.mrb[16].mxu0 %vm2975_vm11, %v9819_v27  ;;  %v7058_v6 = vmul.f32 %v7048_v31, %v14415_v1  ;;  %v7066_v16 = vmul.f32 %v7049_v57, %v14415_v1  ;;  %v14420_v28 = vld [vmem:[#allocation56_spill] sm:$0xff] }
 0x579   :  { %7134 = vmatprep.subr.bf16.mxu1 %v7078_v48  ;;  %6938 = vmatprep.mubr.bf16.mxu0 %v14159_v14 }
 0x57a   :  { %v6808_v59 = vpack.c.bf16 %v6797_v18, %v6789_v19  ;;  %v7035_v39 = vpop.permute.xlu0 %7034  ;;  %v6809_v12 = vpack.c.bf16 %v6798_v38, %v6790_v46  ;;  %v7077_v30 = vpack.c.bf16 %v7066_v16, %v7058_v6 }
 0x57b   :  { %v7033_v58 = vpop.permute.xlu1 %7032 }
 0x57c   :  { %6906 = vmatprep.subr.bf16.mxu0 %v6809_v12 }
 0x57d   :  { %6907 = vmatpush1.bf16.msra.mxu0 %v6808_v59 }
 0x57e   :  { %v7039_v35 = vpop.permute.xlu0 %7038  ;;  %7091 = vmatprep.subr.bf16.mxu0 %v7076_v22  ;;  %9079 = vmatmul.mubr.msk.bf16.vlgmr.msra.gmra.mrb[20].mxu1 %vm2975_vm11, %v9819_v27  ;;  %v14424_v22 = vld [vmem:[#allocation58_spill] sm:$0xff] }
 0x57f   :  { %v7041_v32 = vsel %vm2175_vm9, %v7035_v39, %v7039_v35  ;;  %v7055_v24 = vsel %vm2175_vm9, %v7039_v35, %v13176_v60  ;;  %7135 = vmatpush1.bf16.msra.mxu1 %v7077_v30  ;;  %v7037_v43 = vpop.permute.xlu1 %7036  ;;  %7166 = vmatprep.mubr.bf16.mxu1 %v14159_v14 }
 0x580   :  { %v7070_v7 = vmul.f32 %v7041_v32, %v14417_v5  ;;  %v7040_v11 = vsel %vm2175_vm9, %v7033_v58, %v7037_v43  ;;  %v7054_v52 = vsel %vm2175_vm9, %v7037_v43, %v13180_v54  ;;  %9078 = vmatmul.mubr.msk.bf16.vlgmr.msra.gmra.mrb[20].mxu0 %vm2975_vm11, %v9819_v27  ;;  %v7071_v50 = vmul.f32 %v7055_v24, %v14418_v44 }
 0x581   :  { %v7062_v47 = vmul.f32 %v7040_v11, %v14417_v5  ;;  %v7063_v60 = vmul.f32 %v7054_v52, %v14418_v44  ;;  %7092 = vmatpush1.bf16.msra.mxu0 %v7075_v42  ;;  %7123 = vmatprep.mubr.bf16.mxu0 %v14159_v14  ;;  %v7044_v54 = vsel %vm2175_vm9, %v13216_v51, %v7029_v21  ;;  %v14425_v44 = vld [vmem:[#allocation66_spill] sm:$0xff] }
 0x582   :  { %v7286_v20 = vpop.permute.xlu0 %7285  ;;  %v7042_v27 = vsel %vm2175_vm9, %v7029_v21, %v7033_v58  ;;  %v7060_v51 = vmul.f32 %v7044_v54, %v14419_v23 }
 0x583   :  { %v7081_v3 = vpack.c.bf16 %v7070_v7, %v7062_v47  ;;  %v7284_v63 = vpop.permute.xlu1 %7283  ;;  %v7082_v56 = vpack.c.bf16 %v7071_v50, %v7063_v60  ;;  %v7061_v19 = vmul.f32 %v7042_v27, %v14420_v28 }
 0x585   :  { %7220 = vmatprep.subr.bf16.mxu1 %v7082_v56 }
 0x586   :  { %v7031_v15 = vpop.permute.xlu0 %7030  ;;  %9084 = vmatmul.mubr.msk.bf16.vlgmr.msra.gmra.mrb[16].mxu1 %vm2975_vm11, %v9820_v33 }
 0x587   :  { %v7043_v10 = vsel %vm2175_vm9, %v7031_v15, %v7035_v39  ;;  %v7045_v36 = vsel %vm2175_vm9, %v13200_v53, %v7031_v15  ;;  %7221 = vmatpush1.bf16.msra.mxu1 %v7081_v3  ;;  %v7288_v8 = vpop.permute.xlu1 %7287  ;;  %7252 = vmatprep.mubr.bf16.mxu1 %v14159_v14 }
 0x588   :  { %v7068_v37 = vmul.f32 %v7045_v36, %v14419_v23  ;;  %v7069_v62 = vmul.f32 %v7043_v10, %v14420_v28  ;;  %9083 = vmatmul.mubr.msk.bf16.vlgmr.msra.gmra.mrb[16].mxu0 %vm2975_vm11, %v9820_v33  ;;  %v7321_v45 = vsel %vm2484_vm10, %v7284_v63, %v7288_v8  ;;  %v14427_v23 = vld [vmem:[#allocation65_spill] sm:$0xff]  ;;  %v14428_v28 = vld [vmem:[#allocation62_spill] sm:$0xff] }
 0x589   :  { %7209 = vmatprep.mubr.bf16.mxu0 %v14159_v14  ;;  %v7328_v61 = vmul.f32 %v7321_v45, %v14421_v4 }
 0x58a   :  { %v7079_v53 = vpack.c.bf16 %v7068_v37, %v7060_v51  ;;  %v7290_v41 = vpop.permute.xlu0 %7289  ;;  %v7080_v49 = vpack.c.bf16 %v7069_v62, %v7061_v19 }
 0x58b   :  { %v7322_v46 = vsel %vm2484_vm10, %v7286_v20, %v7290_v41  ;;  %v7280_v2 = vpop.permute.xlu1 %7279 }
 0x58c   :  { %v7336_v31 = vmul.f32 %v7322_v46, %v14421_v4  ;;  %7177 = vmatprep.subr.bf16.mxu0 %v7080_v49  ;;  %v7323_v26 = vsel %vm2484_vm10, %v7280_v2, %v7284_v63  ;;  %v7906_v49 = vld [vmem:[%s14430_s3] sm:$0xff]  ;;  %v7907_v46 = vld [vmem:[%s14430_s3 + $0x8] sm:$0xff] }
 0x58d   :  { %7178 = vmatpush1.bf16.msra.mxu0 %v7079_v53  ;;  %v7327_v57 = vmul.f32 %v7323_v26, %v14422_v0  ;;  %v7618_v53 = vcombine.high %v13363_v13, %v13363_v13 }
 0x58e   :  { %v7282_v40 = vpop.permute.xlu0 %7281  ;;  %v7347_v29 = vpack.c.bf16 %v7336_v31, %v7328_v61  ;;  %9086 = vmatmul.mubr.msk.bf16.vlgmr.msra.gmra.mrb[20].mxu1 %vm2975_vm11, %v9820_v33 }
 0x58f   :  { %v7324_v21 = vsel %vm2484_vm10, %v7282_v40, %v7286_v20  ;;  %v7292_v48 = vpop.permute.xlu1 %7291  ;;  %7437 = vmatprep.mubr.bf16.mxu1 %v14159_v14  ;;  %v14426_v20 = vld [vmem:[#allocation64_spill] sm:$0xff] }
 0x590   :  { %v7335_v18 = vmul.f32 %v7324_v21, %v14422_v0  ;;  %9085 = vmatmul.mubr.msk.bf16.vlgmr.msra.gmra.mrb[20].mxu0 %vm2975_vm11, %v9820_v33  ;;  %7362 = vmatprep.subr.bf16.mxu0 %v7347_v29  ;;  %v7319_v39 = vsel %vm2484_vm10, %v7288_v8, %v7292_v48 }
 0x591   :  { %7394 = vmatprep.mubr.bf16.mxu0 %v14159_v14  ;;  %v7329_v35 = vmul.f32 %v7319_v39, %v14423_v25 }
 0x592   :  { %v7346_v38 = vpack.c.bf16 %v7335_v18, %v7327_v57  ;;  %v7294_v1 = vpop.permute.xlu0 %7293 }
 0x593   :  { %v7296_v6 = vpop.permute.xlu1 %7295  ;;  %v7320_v34 = vsel %vm2484_vm10, %v7290_v41, %v7294_v1  ;;  %v9860_v41 = vmov 0.0|0.0  }
 0x594   :  { %7363 = vmatpush1.bf16.msra.mxu0 %v7346_v38  ;;  %v7317_v59 = vsel %vm2484_vm10, %v7292_v48, %v7296_v6  ;;  %v7337_v55 = vmul.f32 %v7320_v34, %v14423_v25  ;;  %v14431_v48 = vld [vmem:[#allocation69_spill] sm:$0xff]  ;;  %v14433_v34 = vld [vmem:[#allocation70_spill] sm:$0xff] }
 0x595   :  { %v7330_v9 = vmul.f32 %v7317_v59, %v14424_v22  ;;  %v14432_v38 = vld [vmem:[#allocation73_spill] sm:$0xff]  ;;  %v14434_v59 = vld [vmem:[#allocation74_spill] sm:$0xff] }
 0x596   :  { %v7298_v12 = vpop.permute.xlu0 %7297  ;;  %v7348_v24 = vpack.c.bf16 %v7337_v55, %v7329_v35 }
 0x597   :  { %v7318_v16 = vsel %vm2484_vm10, %v7294_v1, %v7298_v12  ;;  %v7300_v58 = vpop.permute.xlu1 %7299 }
 0x598   :  { %v7338_v30 = vmul.f32 %v7318_v16, %v14424_v22  ;;  %9090 = vmatmul.mubr.msk.bf16.vlgmr.msra.gmra.mrb[16].mxu0 %vm2975_vm11, %v9821_v17  ;;  %v7315_v11 = vsel %vm2484_vm10, %v7296_v6, %v7300_v58 }
 0x599   :  { %7480 = vmatprep.mubr.bf16.mxu0 %v14159_v14  ;;  %v7331_v63 = vmul.f32 %v7315_v11, %v14425_v44  ;;  %v14436_v11 = vld [vmem:[#allocation71_spill] sm:$0xff] }
 0x59a   :  { %v7302_v42 = vpop.permute.xlu0 %7301  ;;  %v7349_v32 = vpack.c.bf16 %v7338_v30, %v7330_v9 }
 0x59b   :  { %v7304_v43 = vpop.permute.xlu1 %7303  ;;  %v7316_v5 = vsel %vm2484_vm10, %v7298_v12, %v7302_v42 }
 0x59c   :  { %7405 = vmatprep.subr.bf16.mxu1 %v7349_v32  ;;  %v7313_v7 = vsel %vm2484_vm10, %v7300_v58, %v7304_v43  ;;  %v7339_v50 = vmul.f32 %v7316_v5, %v14425_v44 }
 0x59d   :  { %7406 = vmatpush1.bf16.msra.mxu1 %v7348_v24  ;;  %v7332_v33 = vmul.f32 %v7313_v7, %v14426_v20  ;;  %v14435_v24 = vld [vmem:[#allocation67_spill] sm:$0xff] }
 0x59e   :  { %v7306_v52 = vpop.permute.xlu0 %7305  ;;  %v7350_v10 = vpack.c.bf16 %v7339_v50, %v7331_v63  ;;  %v14437_v50 = vld [vmem:[#allocation68_spill] sm:$0xff] }
 0x59f   :  { %v7314_v47 = vsel %vm2484_vm10, %v7302_v42, %v7306_v52  ;;  %v7308_v60 = vpop.permute.xlu1 %7307 }
 0x5a0   :  { %v7340_v3 = vmul.f32 %v7314_v47, %v14426_v20  ;;  %9091 = vmatmul.mubr.msk.bf16.vlgmr.msra.gmra.mrb[16].mxu1 %vm2975_vm11, %v9821_v17  ;;  %v7311_v56 = vsel %vm2484_vm10, %v7304_v43, %v7308_v60  ;;  %v7325_v54 = vsel %vm2484_vm10, %v7308_v60, %v7280_v2  ;;  %v9264_v2 = vpack.c.bf16 %v7907_v46, %v7906_v49  ;;  %v14438_v60 = vld [vmem:[#allocation72_spill] sm:$0xff] }
 0x5a1   :  { %7523 = vmatprep.mubr.bf16.mxu1 %v14159_v14  ;;  %v7333_v51 = vmul.f32 %v7311_v56, %v14427_v23  ;;  %v7334_v19 = vmul.f32 %v7325_v54, %v14428_v28 }
 0x5a2   :  { %v7310_v27 = vpop.permute.xlu0 %7309  ;;  %v7351_v15 = vpack.c.bf16 %v7340_v3, %v7332_v33  ;;  %v7611_v33 = vld [vmem:[%s14429_s9 + $0x8] sm:$0xff] }
 0x5a3   :  { %v7312_v36 = vsel %vm2484_vm10, %v7306_v52, %v7310_v27  ;;  %v7326_v8 = vsel %vm2484_vm10, %v7310_v27, %v7282_v40 }
 0x5a4   :  { %v7341_v37 = vmul.f32 %v7312_v36, %v14427_v23  ;;  %v7342_v62 = vmul.f32 %v7326_v8, %v14428_v28  ;;  %7448 = vmatprep.subr.bf16.mxu0 %v7351_v15  ;;  %v7619_v8 = vcombine.high %v7611_v33, %v7611_v33 }
 0x5a5   :  { %7449 = vmatpush1.bf16.msra.mxu0 %v7350_v10 }
 0x5a6   :  { %v7352_v14 = vpack.c.bf16 %v7341_v37, %v7333_v51  ;;  %v7353_v45 = vpack.c.bf16 %v7342_v62, %v7334_v19  ;;  %v14439_v19 = vld [vmem:[#allocation77_spill] sm:$0xff] }
 0x5a8   :  { %9092 = vmatmul.mubr.msk.bf16.vlgmr.msra.gmra.mrb[20].mxu0 %vm2975_vm11, %v9821_v17  ;;  %7491 = vmatprep.subr.bf16.mxu1 %v7353_v45  ;;  %v14440_v45 = vld [vmem:[#allocation81_spill] sm:$0xff] }
 0x5a9   :  { %7492 = vmatpush1.bf16.msra.mxu1 %v7352_v14  ;;  %7690 = vmatprep.mubr.f32.mxu0 %v7618_v53 }
 0x5aa   :  { %9263 = vmatprep.subr.bf16.mxu1 %v9860_v41 }
 0x5ac   :  { %9093 = vmatmul.mubr.msk.bf16.vlgmr.msra.gmra.mrb[20].mxu1 %vm2975_vm11, %v9821_v17 }
 0x5ad   :  { %9265 = vmatpush3.bf16.msra.mxu1 %v9264_v2  ;;  %v14441_v2 = vld [vmem:[#allocation78_spill] sm:$0xff] }
 0x5ae   :  { %9266 = vmatprep.subr.bf16.mxu1 %v9860_v41 }
 0x5b0   :  { %v7555_v4 = vpop.permute.xlu1 %7554 }
 0x5b3   :  { %v13375_v40 = vpop.permute.xlu0 %7559 }
 0x66b   :  { %v7396_v61 = vpop.f32.mrb[16].mxu0 }
 0x66c   :  { %v7562_v31 = vadd.f32 %v7555_v4, %v7396_v61  ;;  %v7398_v26 = vpop.f32.mrb[17].mxu0 }
 0x66d   :  { %v7563_v29 = vadd.f32 %v7555_v4, %v7398_v26  ;;  %v7400_v21 = vpop.f32.mrb[18].mxu0 }
 0x66e   :  { %v7578_v0 = vadd.f32 %v7562_v31, %v14431_v48  ;;  %v7570_v57 = vadd.f32 %v13375_v40, %v7400_v21  ;;  %v7402_v18 = vpop.f32.mrb[19].mxu0 }
 0x66f   :  { %v7579_v1 = vadd.f32 %v7563_v29, %v14432_v38  ;;  %v7571_v6 = vadd.f32 %v13375_v40, %v7402_v18  ;;  %v14442_v29 = vld [vmem:[#allocation82_spill] sm:$0xff] }
 0x670   :  { %v7586_v17 = vadd.f32 %v7570_v57, %v14433_v34  ;;  %v7594_v12 = vmax.f32 %v7578_v0, 0.0  ;;  %v7612_v57 = vld [vmem:[%s14429_s9 + $0x10] sm:$0xff] }
 0x671   :  { %v7587_v39 = vadd.f32 %v7571_v6, %v14434_v59  ;;  %v7595_v55 = vmax.f32 %v7579_v1, 0.0  ;;  %v14443_v1 = vld [vmem:[#allocation75_spill] sm:$0xff] }
 0x672   :  { %v7602_v25 = vmax.f32 %v7586_v17, 0.0 }
 0x673   :  { %v7603_v16 = vmax.f32 %v7587_v39, 0.0  ;;  %v7439_v58 = vpop.f32.mrb[16].mxu1  ;;  %v14444_v39 = vld [vmem:[#allocation79_spill] sm:$0xff] }
 0x674   :  { %v9249_v22 = vpack.c.bf16 %v7602_v25, %v7594_v12  ;;  %v7564_v9 = vadd.f32 %v7555_v4, %v7439_v58  ;;  %v7441_v30 = vpop.f32.mrb[17].mxu1  ;;  %v7620_v58 = vcombine.high %v7612_v57, %v7612_v57 }
 0x675   :  { %v7565_v35 = vadd.f32 %v7555_v4, %v7441_v30  ;;  %v7443_v42 = vpop.f32.mrb[18].mxu1  ;;  %v9247_v32 = vpack.c.bf16 %v7603_v16, %v7595_v55 }
 0x676   :  { %v7580_v43 = vadd.f32 %v7564_v9, %v14435_v24  ;;  %v7572_v5 = vadd.f32 %v13375_v40, %v7443_v42  ;;  %v7445_v7 = vpop.f32.mrb[19].mxu1 }
 0x677   :  { %v7581_v52 = vadd.f32 %v7565_v35, %v14436_v11  ;;  %v7573_v44 = vadd.f32 %v13375_v40, %v7445_v7  ;;  %9248 = vmatprep.subr.bf16.mxu0 %v9247_v32  ;;  %v9862_v11 = vmov 0.0  }
 0x678   :  { %v7588_v47 = vadd.f32 %v7572_v5, %v14437_v50  ;;  %9250 = vmatpush1.bf16.xpose.msra.mxu0 %v9249_v22  ;;  %v7596_v3 = vmax.f32 %v7580_v43, 0.0  ;;  %v14446_v22 = vld [vmem:[#allocation80_spill] sm:$0xff]  ;;  %9162 = vmatprep.mubr.msk.f32.mxu1 %vm9861_vm12, %v9862_v11 }
 0x679   :  { %v7589_v20 = vadd.f32 %v7573_v44, %v14438_v60  ;;  %v7597_v56 = vmax.f32 %v7581_v52, 0.0  ;;  %v7990_v52 = vld [vmem:[%s14447_s29] sm:$0xff]  ;;  %v7991_v44 = vld [vmem:[%s14447_s29 + $0x8] sm:$0xff]  ;;  %v7993_v60 = vld [vmem:[%s14447_s29 + $0x18] sm:$0xff] }
 0x67a   :  { %v7604_v63 = vmax.f32 %v7588_v47, 0.0  ;;  %v9267_v50 = vpack.c.bf16 %v7991_v44, %v7990_v52  ;;  %v7992_v47 = vld [vmem:[%s14447_s29 + $0x10] sm:$0xff]  ;;  %v8424_v44 = vld [vmem:[%s13840_s21 + $0x18] sm:$0xff] }
 0x67b   :  { %v7605_v54 = vmax.f32 %v7589_v20, 0.0  ;;  %v7482_v27 = vpop.f32.mrb[20].mxu0 }
 0x67c   :  { %v9253_v15 = vpack.c.bf16 %v7604_v63, %v7596_v3  ;;  %v7566_v10 = vadd.f32 %v7555_v4, %v7482_v27  ;;  %v7484_v36 = vpop.f32.mrb[21].mxu0  ;;  %v9270_v3 = vpack.c.bf16 %v7993_v60, %v7992_v47  ;;  %v7994_v63 = vld [vmem:[%s14447_s29 + $0x20] sm:$0xff]  ;;  %v7996_v27 = vld [vmem:[%s14447_s29 + $0x30] sm:$0xff]  ;;  %v8426_v60 = vld [vmem:[%s13840_s21 + $0x28] sm:$0xff] }
 0x67d   :  { %v7567_v23 = vadd.f32 %v7555_v4, %v7484_v36  ;;  %v7486_v51 = vpop.f32.mrb[22].mxu0  ;;  %v9251_v28 = vpack.c.bf16 %v7605_v54, %v7597_v56  ;;  %v7995_v56 = vld [vmem:[%s14447_s29 + $0x28] sm:$0xff]  ;;  %v8080_v36 = vld [vmem:[%s14448_s0] sm:$0xff] }
 0x67e   :  { %v7582_v37 = vadd.f32 %v7566_v10, %v14439_v19  ;;  %v7574_v62 = vadd.f32 %v13375_v40, %v7486_v51  ;;  %v7488_v14 = vpop.f32.mrb[23].mxu0  ;;  %v9273_v54 = vpack.c.bf16 %v7995_v56, %v7994_v63  ;;  %v8425_v47 = vld [vmem:[%s13840_s21 + $0x20] sm:$0xff]  ;;  %v8515_v56 = vld [vmem:[%s13841_s23 + $0x30] sm:$0xff] }
 0x67f   :  { %v7583_v53 = vadd.f32 %v7567_v23, %v14440_v45  ;;  %v7575_v49 = vadd.f32 %v13375_v40, %v7488_v14  ;;  %v7525_v46 = vpop.f32.mrb[20].mxu1  ;;  %7691 = vmatmul.mubr.f32.vlgmr.msra.gmra.mrb[24].mxu0 %v13363_v13  ;;  %9252 = vmatprep.subr.bf16.mxu0 %v9251_v28  ;;  %v9094_v23 = vld [vmem:[%s14449_s2] ss:$0 sm:$0xff]  ;;  %v8083_v14 = vld [vmem:[%s14448_s0 + $0x18] sm:$0xff] }
 0x680   :  { %v7590_v61 = vadd.f32 %v7574_v62, %v14441_v2  ;;  %v7568_v31 = vadd.f32 %v7555_v4, %v7525_v46  ;;  %v7527_v26 = vpop.f32.mrb[21].mxu1  ;;  %9254 = vmatpush1.bf16.xpose.msra.mxu0 %v9253_v15  ;;  %7760 = vmatprep.mubr.f32.mxu0 %v7619_v8  ;;  %v7598_v18 = vmax.f32 %v7582_v37, 0.0  ;;  %v7997_v15 = vld [vmem:[%s14447_s29 + $0x38] sm:$0xff]  ;;  %v8081_v8 = vld [vmem:[%s14448_s0 + $0x8] sm:$0xff]  ;;  %v8082_v62 = vld [vmem:[%s14448_s0 + $0x10] sm:$0xff] }
 0x681   :  { %v7591_v21 = vadd.f32 %v7575_v49, %v14442_v29  ;;  %v7569_v48 = vadd.f32 %v7555_v4, %v7527_v26  ;;  %v7529_v0 = vpop.f32.mrb[22].mxu1  ;;  %v7599_v17 = vmax.f32 %v7583_v53, 0.0  ;;  %v14445_v4 = vld [vmem:[#allocation76_spill] sm:$0xff]  ;;  %v9276_v10 = vpack.c.bf16 %v7997_v15, %v7996_v27  ;;  %v8167_v53 = vld [vmem:[%s13833_s15] sm:$0xff]  ;;  %v8168_v49 = vld [vmem:[%s13833_s15 + $0x8] sm:$0xff] }
 0x682   :  { %v7606_v38 = vmax.f32 %v7590_v61, 0.0  ;;  %v7584_v6 = vadd.f32 %v7568_v31, %v14443_v1  ;;  %v7576_v13 = vadd.f32 %v13375_v40, %v7529_v0  ;;  %v7531_v34 = vpop.f32.mrb[23].mxu1  ;;  %v9279_v28 = vpack.c.bf16 %v8081_v8, %v8080_v36  ;;  %v9096_v2 = vld [vmem:[%s13834_s12] ss:$0 sm:$0xff]  ;;  %v8518_v27 = vld [vmem:[%s13841_s23 + $0x48] sm:$0xff]  ;;  %v8528_v8 = vld [vmem:[%s13841_s23 + $0x98] sm:$0xff] }
 0x683   :  { %v7607_v59 = vmax.f32 %v7591_v21, 0.0  ;;  %v7585_v12 = vadd.f32 %v7569_v48, %v14444_v39  ;;  %v7577_v25 = vadd.f32 %v13375_v40, %v7531_v34  ;;  %v7613_v40 = vld [vmem:[%s14429_s9 + $0x18] sm:$0xff]  ;;  %v9282_v45 = vpack.c.bf16 %v8083_v14, %v8082_v62  ;;  %v8169_v21 = vld [vmem:[%s13833_s15 + $0x10] sm:$0xff]  ;;  %v8336_v39 = vld [vmem:[%s13839_s19 + $0x8] sm:$0xff] }
 0x684   :  { %v9257_v55 = vpack.c.bf16 %v7606_v38, %v7598_v18  ;;  %v7592_v16 = vadd.f32 %v7576_v13, %v14445_v4  ;;  %v7600_v35 = vmax.f32 %v7584_v6, 0.0  ;;  %v7621_v7 = vcombine.high %v7613_v40, %v7613_v40  ;;  %v8170_v48 = vld [vmem:[%s13833_s15 + $0x18] sm:$0xff]  ;;  %v8252_v6 = vld [vmem:[%s13837_s17] sm:$0xff]  ;;  %v8253_v13 = vld [vmem:[%s13837_s17 + $0x8] sm:$0xff] }
 0x685   :  { %v7593_v9 = vadd.f32 %v7577_v25, %v14446_v22  ;;  %v9255_v30 = vpack.c.bf16 %v7607_v59, %v7599_v17  ;;  %v7601_v32 = vmax.f32 %v7585_v12, 0.0  ;;  %v9285_v46 = vpack.c.bf16 %v8168_v49, %v8167_v53  ;;  %v9100_v17 = vld [vmem:[%s13838_s16] ss:$0 sm:$0xff]  ;;  %v8338_v22 = vld [vmem:[%s13839_s19 + $0x18] sm:$0xff]  ;;  %v8522_v36 = vld [vmem:[%s13841_s23 + $0x68] sm:$0xff] }
 0x686   :  { %v7608_v42 = vmax.f32 %v7592_v16, 0.0  ;;  %v9288_v0 = vpack.c.bf16 %v8170_v48, %v8169_v21  ;;  %v9291_v34 = vpack.c.bf16 %v8253_v13, %v8252_v6  ;;  %v8335_v59 = vld [vmem:[%s13839_s19] sm:$0xff]  ;;  %v8540_v62 = vld [vmem:[%s13841_s23 + $0xf8] sm:$0xff]  ;;  %v8539_v53 = vld [vmem:[%s13841_s23 + $0xf0] sm:$0xff] }
 0x687   :  { %v7609_v24 = vmax.f32 %v7593_v9, 0.0  ;;  %7761 = vmatmul.mubr.f32.vlgmr.msra.gmra.mrb[24].mxu0 %v7611_v33  ;;  %9256 = vmatprep.subr.bf16.mxu0 %v9255_v30  ;;  %v9294_v4 = vpack.c.bf16 %v8336_v39, %v8335_v59  ;;  %v8339_v30 = vld [vmem:[%s13839_s19 + $0x20] sm:$0xff]  ;;  %v8558_v21 = vld [vmem:[%s13841_s23 + $0x188] sm:$0xff]  ;;  %v8564_v48 = vld [vmem:[%s13841_s23 + $0x1b8] sm:$0xff] }
 0x688   :  { %v9261_v43 = vpack.c.bf16 %v7608_v42, %v7600_v35  ;;  %9258 = vmatpush1.bf16.xpose.msra.mxu0 %v9257_v55  ;;  %7830 = vmatprep.mubr.f32.mxu0 %v7620_v58  ;;  %v8337_v58 = vld [vmem:[%s13839_s19 + $0x10] sm:$0xff]  ;;  %v8340_v35 = vld [vmem:[%s13839_s19 + $0x28] sm:$0xff]  ;;  %v8517_v39 = vld [vmem:[%s13841_s23 + $0x40] sm:$0xff] }
 0x689   :  { %v9259_v5 = vpack.c.bf16 %v7609_v24, %v7601_v32  ;;  %v9297_v9 = vpack.c.bf16 %v8338_v22, %v8337_v58  ;;  %v9300_v42 = vpack.c.bf16 %v8340_v35, %v8339_v30  ;;  %v8341_v32 = vld [vmem:[%s13839_s19 + $0x30] sm:$0xff]  ;;  %v8342_v24 = vld [vmem:[%s13839_s19 + $0x38] sm:$0xff]  ;;  %v8529_v35 = vld [vmem:[%s13841_s23 + $0xa0] sm:$0xff] }
 0x68a   :  { %v8511_v59 = vld [vmem:[%s13841_s23 + $0x10] sm:$0xff] }
 0x68b   :  { %9260 = vmatprep.subr.bf16.mxu0 %v9259_v5  ;;  %v8421_v5 = vld [vmem:[%s13840_s21] sm:$0xff]  ;;  %v9340_v58 = vpack.c.bf16 %v8517_v39, %v8511_v59  ;;  %v8523_v30 = vld [vmem:[%s13841_s23 + $0x70] sm:$0xff] }
 0x68c   :  { %v8537_v59 = vld [vmem:[%s13841_s23 + $0xe0] sm:$0xff]  ;;  %v8543_v39 = vld [vmem:[%s13841_s23 + $0x110] sm:$0xff] }
 0x68f   :  { %7831 = vmatmul.mubr.f32.vlgmr.msra.gmra.mrb[24].mxu0 %v7612_v57  ;;  %v9098_v57 = vld [vmem:[%s13835_s14] ss:$0 sm:$0xff] }
 0x690   :  { %9262 = vmatpush1.bf16.xpose.msra.mxu0 %v9261_v43  ;;  %7900 = vmatprep.mubr.f32.mxu0 %v7621_v7  ;;  %v9303_v43 = vpack.c.bf16 %v8342_v24, %v8341_v32  ;;  %v8423_v7 = vld [vmem:[%s13840_s21 + $0x10] sm:$0xff]  ;;  %v8542_v32 = vld [vmem:[%s13841_s23 + $0x108] sm:$0xff]  ;;  %v9344_v24 = vpack.c.bf16 %v8529_v35, %v8523_v30  ;;  %v8561_v35 = vld [vmem:[%s13841_s23 + $0x1a0] sm:$0xff] }
 0x691   :  { %9284 = vmatprep.subr.bf16.mxu0 %v9860_v41 }
 0x697   :  { %7901 = vmatmul.mubr.f32.vlgmr.msra.gmra.mrb[24].mxu0 %v7613_v40  ;;  %v8422_v40 = vld [vmem:[%s13840_s21 + $0x8] sm:$0xff] }
 0x698   :  { %9203 = vmatprep.mubr.msk.f32.mxu0 %vm9861_vm12, %v9862_v11  ;;  %9286 = vmatpush3.bf16.msra.mxu0 %v9285_v46  ;;  %v9306_v52 = vpack.c.bf16 %v8422_v40, %v8421_v5  ;;  %v8546_v46 = vld [vmem:[%s13841_s23 + $0x128] sm:$0xff]  ;;  %v8535_v5 = vld [vmem:[%s13841_s23 + $0xd0] sm:$0xff]  ;;  %v8541_v40 = vld [vmem:[%s13841_s23 + $0x100] sm:$0xff] }
 0x699   :  { %9287 = vmatprep.subr.bf16.mxu0 %v9860_v41 }
 0x69c   :  { %9289 = vmatpush3.bf16.msra.mxu0 %v9288_v0  ;;  %v9330_v0 = vpack.c.bf16 %v8564_v48, %v8558_v21 }
 0x76a   :  { %v7902_v20 = vpop.f32.mrb[24].mxu0 }
 0x76b   :  { %v7904_v33 = vpop.f32.mrb[25].mxu0  ;;  %9163 = vmatmul.mubr.msk.f32.vlgmr.msra.gmra.mrb[24].mxu1 %vm2975_vm11, %v7902_v20  ;;  %v9312_v20 = vpack.c.bf16 %v8426_v60, %v8425_v47  ;;  %v8547_v47 = vld [vmem:[%s13841_s23 + $0x130] sm:$0xff]  ;;  %v8553_v60 = vld [vmem:[%s13841_s23 + $0x160] sm:$0xff] }
 0x76c   :  { %9268 = vmatpush3.bf16.msra.mxu1 %v9267_v50  ;;  %9181 = vmatprep.mubr.msk.f32.mxu1 %vm9861_vm12, %v9862_v11  ;;  %v9309_v50 = vpack.c.bf16 %v8424_v44, %v8423_v7  ;;  %v8510_v33 = vld [vmem:[%s13841_s23 + $0x8] sm:$0xff]  ;;  %v8548_v7 = vld [vmem:[%s13841_s23 + $0x138] sm:$0xff]  ;;  %v9348_v44 = vpack.c.bf16 %v8541_v40, %v8535_v5  ;;  %v8573_v40 = vld [vmem:[%s13841_s23 + $0x200] sm:$0xff] }
 0x76d   :  { %9269 = vmatprep.subr.bf16.mxu1 %v9860_v41 }
 0x770   :  { %9271 = vmatpush3.bf16.msra.mxu1 %v9270_v3  ;;  %v8516_v3 = vld [vmem:[%s13841_s23 + $0x38] sm:$0xff] }
 0x771   :  { %9272 = vmatprep.subr.bf16.mxu1 %v9860_v41  ;;  %v9314_v63 = vpack.c.bf16 %v8516_v3, %v8510_v33  ;;  %v8566_v33 = vld [vmem:[%s13841_s23 + $0x1c8] sm:$0xff]  ;;  %v9352_v3 = vpack.c.bf16 %v8553_v60, %v8547_v47  ;;  %v14451_v60 = vld [vmem:[#allocation4_spill] sm:$0xff] }
 0x773   :  { %9315 = vmatprep.subr.bf16.mxu0 %v9314_v63  ;;  %v8559_v63 = vld [vmem:[%s13841_s23 + $0x190] sm:$0xff] }
 0x774   :  { %9274 = vmatpush3.bf16.msra.mxu1 %v9273_v54  ;;  %v8512_v54 = vld [vmem:[%s13841_s23 + $0x18] sm:$0xff] }
 0x775   :  { %9275 = vmatprep.subr.bf16.mxu1 %v9860_v41 }
 0x778   :  { %9277 = vmatpush3.bf16.msra.mxu1 %v9276_v10  ;;  %v9338_v10 = vpack.c.bf16 %v8518_v27, %v8512_v54  ;;  %v8570_v27 = vld [vmem:[%s13841_s23 + $0x1e8] sm:$0xff] }
 0x779   :  { %9278 = vmatprep.subr.bf16.mxu1 %v9860_v41 }
 0x83e   :  { %v7984_v51 = vpop.f32.mrb[24].mxu1 }
 0x83f   :  { %v13456_v19 = vadd.f32 %v9094_v23, %v7984_v51  ;;  %v9164_v37 = vpop.f32.mrb[25].mxu1  ;;  %v8521_v23 = vld [vmem:[%s13841_s23 + $0x60] sm:$0xff]  ;;  %v8527_v51 = vld [vmem:[%s13841_s23 + $0x90] sm:$0xff] }
 0x840   :  { %v8534_v37 = vld [vmem:[%s13841_s23 + $0xc8] sm:$0xff] }
 0x841   :  { %7989 = vst.msk [vmem:[%s13832_s25] sm:$0xf] %vm7988_vm13, %v13456_v19  ;;  %9182 = vmatmul.mubr.msk.f32.vlgmr.msra.gmra.mrb[26].mxu1 %vm8005_vm14, %v13456_v19  ;;  %v9322_v14 = vpack.c.bf16 %v8540_v62, %v8534_v37  ;;  %v8577_v37 = vld [vmem:[%s13841_s23 + $0x220] sm:$0xff] }
 0x842   :  { %9280 = vmatpush3.bf16.msra.mxu1 %v9279_v28  ;;  %9192 = vmatprep.mubr.msk.f32.mxu1 %vm9861_vm12, %v9862_v11  ;;  %v9318_v28 = vpack.c.bf16 %v8528_v8, %v8522_v36  ;;  %v8569_v36 = vld [vmem:[%s13841_s23 + $0x1e0] sm:$0xff]  ;;  %v8575_v8 = vld [vmem:[%s13841_s23 + $0x210] sm:$0xff] }
 0x843   :  { %9281 = vmatprep.subr.bf16.mxu1 %v9860_v41 }
 0x846   :  { %9283 = vmatpush3.bf16.msra.mxu1 %v9282_v45  ;;  %v8533_v45 = vld [vmem:[%s13841_s23 + $0xc0] sm:$0xff] }
 0x847   :  { %9290 = vmatprep.subr.bf16.mxu1 %v9860_v41  ;;  %v9324_v49 = vpack.c.bf16 %v8539_v53, %v8533_v45  ;;  %v8514_v45 = vld [vmem:[%s13841_s23 + $0x28] sm:$0xff]  ;;  %v8520_v53 = vld [vmem:[%s13841_s23 + $0x58] sm:$0xff] }
 0x914   :  { %v8075_v61 = vpop.f32.mrb[26].mxu1 }
 0x915   :  { %v8076_v31 = vadd.f32 %v9096_v2, %v8075_v61  ;;  %v9183_v26 = vpop.f32.mrb[27].mxu1  ;;  %v8552_v2 = vld [vmem:[%s13841_s23 + $0x158] sm:$0xff] }
 0x916   :  { %v9326_v61 = vpack.c.bf16 %v8552_v2, %v8546_v46  ;;  %v8551_v26 = vld [vmem:[%s13841_s23 + $0x150] sm:$0xff]  ;;  %v9106_v46 = vld [vmem:[%s13845_s22] ss:$0 sm:$0xff] }
 0x917   :  { %v8079_v29 = vmax.f32 %v8076_v31, 0.0  ;;  %v8545_v31 = vld [vmem:[%s13841_s23 + $0x120] sm:$0xff] }
 0x918   :  { %v8513_v2 = vld [vmem:[%s13841_s23 + $0x20] sm:$0xff] }
 0x919   :  { %9193 = vmatmul.mubr.msk.f32.vlgmr.msra.gmra.mrb[28].mxu1 %vm8091_vm15, %v8079_v29  ;;  %v9328_v29 = vpack.c.bf16 %v8551_v26, %v8545_v31  ;;  %v8526_v26 = vld [vmem:[%s13841_s23 + $0x88] sm:$0xff] }
 0x91a   :  { %9210 = vmatprep.mubr.msk.f32.mxu1 %vm9861_vm12, %v9862_v11  ;;  %9292 = vmatpush3.bf16.msra.mxu1 %v9291_v34 }
 0x91b   :  { %9293 = vmatprep.subr.bf16.mxu1 %v9860_v41 }
 0x9ec   :  { %v8161_v18 = vpop.f32.mrb[28].mxu1 }
 0x9ed   :  { %v8162_v38 = vadd.f32 %v9098_v57, %v8161_v18  ;;  %v9194_v1 = vpop.f32.mrb[29].mxu1  ;;  %v8557_v57 = vld [vmem:[%s13841_s23 + $0x180] sm:$0xff]  ;;  %v8563_v18 = vld [vmem:[%s13841_s23 + $0x1b0] sm:$0xff] }
 0x9ee   :  { %v9102_v1 = vld [vmem:[%s13842_s18] ss:$0 sm:$0xff] }
 0x9ef   :  { %8166 = vst.msk [vmem:[%s13836_s26] sm:$0xf] %vm8165_vm0, %v8162_v38  ;;  %9204 = vmatmul.mubr.msk.f32.vlgmr.msra.gmra.mrb[26].mxu0 %vm8091_vm15, %v8162_v38  ;;  %v9332_v38 = vpack.c.bf16 %v8563_v18, %v8557_v57 }
 0x9f0   :  { %8681 = vmatprep.mubr.f32.mxu0 %v9862_v11 }
 0xac2   :  { %v8247_v12 = vpop.f32.mrb[26].mxu0 }
 0xac3   :  { %v8248_v25 = vadd.f32 %v9100_v17, %v8247_v12  ;;  %v9205_v55 = vpop.f32.mrb[27].mxu0  ;;  %v9104_v17 = vld [vmem:[%s13844_s20] ss:$0 sm:$0xff] }
 0xac4   :  { %v8530_v55 = vld [vmem:[%s13841_s23 + $0xa8] sm:$0xff] }
 0xac5   :  { %v8251_v16 = vmax.f32 %v8248_v25, 0.0  ;;  %v8524_v25 = vld [vmem:[%s13841_s23 + $0x78] sm:$0xff] }
 0xac7   :  { %9211 = vmatmul.mubr.msk.f32.vlgmr.msra.gmra.mrb[30].mxu1 %vm2975_vm11, %v8251_v16 }
 0xac8   :  { %9295 = vmatpush3.bf16.msra.mxu1 %v9294_v4  ;;  %9229 = vmatprep.mubr.msk.f32.mxu1 %vm9861_vm12, %v9862_v11 }
 0xac9   :  { %9296 = vmatprep.subr.bf16.mxu1 %v9860_v41 }
 0xacc   :  { %9298 = vmatpush3.bf16.msra.mxu1 %v9297_v9  ;;  %v9342_v9 = vpack.c.bf16 %v8530_v55, %v8524_v25  ;;  %v8556_v25 = vld [vmem:[%s13841_s23 + $0x178] sm:$0xff] }
 0xacd   :  { %9299 = vmatprep.subr.bf16.mxu1 %v9860_v41 }
 0xad0   :  { %9301 = vmatpush3.bf16.msra.mxu1 %v9300_v42  ;;  %v8536_v42 = vld [vmem:[%s13841_s23 + $0xd8] sm:$0xff] }
 0xad1   :  { %9302 = vmatprep.subr.bf16.mxu1 %v9860_v41 }
 0xad4   :  { %9304 = vmatpush3.bf16.msra.mxu1 %v9303_v43  ;;  %v9346_v43 = vpack.c.bf16 %v8542_v32, %v8536_v42  ;;  %v8567_v42 = vld [vmem:[%s13841_s23 + $0x1d0] sm:$0xff]  ;;  %v8574_v32 = vld [vmem:[%s13841_s23 + $0x208] sm:$0xff] }
 0xad5   :  { %9305 = vmatprep.subr.bf16.mxu1 %v9860_v41 }
 0xad7   :  { %9230 = vmatmul.mubr.msk.f32.vlgmr.msra.gmra.mrb[32].mxu1 %vm8005_vm14, %v13456_v19  ;;  %v9320_v19 = vpack.c.bf16 %v8527_v51, %v8521_v23  ;;  %v8572_v23 = vld [vmem:[%s13841_s23 + $0x1f8] sm:$0xff]  ;;  %v9336_v51 = vpack.c.bf16 %v8575_v8, %v8569_v36 }
 0xad8   :  { %9244 = vmatprep.mubr.msk.f32.mxu1 %vm9861_vm12, %v9862_v11  ;;  %9307 = vmatpush3.bf16.msra.mxu1 %v9306_v52  ;;  %v8554_v52 = vld [vmem:[%s13841_s23 + $0x168] sm:$0xff] }
 0xad9   :  { %9308 = vmatprep.subr.bf16.mxu1 %v9860_v41 }
 0xadc   :  { %9310 = vmatpush3.bf16.msra.mxu1 %v9309_v50  ;;  %v9350_v50 = vpack.c.bf16 %v8554_v52, %v8548_v7  ;;  %v8579_v7 = vld [vmem:[%s13841_s23 + $0x230] sm:$0xff] }
 0xadd   :  { %9311 = vmatprep.subr.bf16.mxu1 %v9860_v41  ;;  %v8509_v41 = vld [vmem:[%s13841_s23] sm:$0xff]  ;;  %v9384_v52 = vpack.c.bf16 %v8579_v7, %v8573_v40 }
 0xade   :  { %v9316_v15 = vpack.c.bf16 %v8515_v56, %v8509_v41  ;;  %v8565_v56 = vld [vmem:[%s13841_s23 + $0x1c0] sm:$0xff] }
 0xadf   :  { %v9356_v54 = vpack.c.bf16 %v8565_v56, %v8559_v63 }
 0xae0   :  { %9313 = vmatpush3.bf16.msra.mxu1 %v9312_v20  ;;  %9317 = vmatpush1.bf16.msra.mxu0 %v9316_v15  ;;  %v8560_v20 = vld [vmem:[%s13841_s23 + $0x198] sm:$0xff] }
 0xae1   :  { %9339 = vmatprep.subr.bf16.mxu1 %v9338_v10  ;;  %9319 = vmatprep.subr.bf16.mxu0 %v9318_v28  ;;  %v9354_v41 = vpack.c.bf16 %v8566_v33, %v8560_v20  ;;  %v8576_v15 = vld [vmem:[%s13841_s23 + $0x218] sm:$0xff]  ;;  %v8578_v28 = vld [vmem:[%s13841_s23 + $0x228] sm:$0xff] }
 0xae2   :  { %v9334_v10 = vpack.c.bf16 %v8576_v15, %v8570_v27  ;;  %v9358_v62 = vpack.c.bf16 %v8578_v28, %v8572_v23  ;;  %v14452_v33 = vld [vmem:[#allocation3_spill] sm:$0xff] }
 0xae4   :  { %9321 = vmatpush1.bf16.msra.mxu0 %v9320_v19  ;;  %v8571_v19 = vld [vmem:[%s13841_s23 + $0x1f0] sm:$0xff] }
 0xae5   :  { %9323 = vmatprep.subr.bf16.mxu0 %v9322_v14  ;;  %v9360_v14 = vpack.c.bf16 %v8577_v37, %v8571_v19 }
 0xae8   :  { %9325 = vmatpush1.bf16.msra.mxu0 %v9324_v49  ;;  %v9362_v49 = vpack.c.bf16 %v8520_v53, %v8514_v45 }
 0xae9   :  { %9327 = vmatprep.subr.bf16.mxu0 %v9326_v61  ;;  %v8519_v61 = vld [vmem:[%s13841_s23 + $0x50] sm:$0xff] }
 0xaec   :  { %9329 = vmatpush1.bf16.msra.mxu0 %v9328_v29  ;;  %v8532_v29 = vld [vmem:[%s13841_s23 + $0xb8] sm:$0xff] }
 0xaed   :  { %9331 = vmatprep.subr.bf16.mxu0 %v9330_v0  ;;  %v9364_v0 = vpack.c.bf16 %v8519_v61, %v8513_v2  ;;  %v9366_v18 = vpack.c.bf16 %v8532_v29, %v8526_v26  ;;  %v14455_v29 = vld [vmem:[#allocation10_spill] sm:$0xff] }
 0xaf0   :  { %9333 = vmatpush1.bf16.msra.mxu0 %v9332_v38  ;;  %v8525_v38 = vld [vmem:[%s13841_s23 + $0x80] sm:$0xff] }
 0xaf1   :  { %9335 = vmatprep.subr.bf16.mxu0 %v9334_v10 }
 0xaf4   :  { %9337 = vmatpush1.bf16.msra.mxu0 %v9336_v51 }
 0xaf5   :  { %9363 = vmatprep.subr.bf16.mxu0 %v9362_v49 }
 0xb9a   :  { %v8330_v6 = vpop.f32.mrb[30].mxu1 }
 0xb9b   :  { %v8331_v13 = vadd.f32 %v9102_v1, %v8330_v6  ;;  %v9212_v34 = vpop.f32.mrb[31].mxu1  ;;  %v8531_v1 = vld [vmem:[%s13841_s23 + $0xb0] sm:$0xff]  ;;  %v8538_v6 = vld [vmem:[%s13841_s23 + $0xe8] sm:$0xff] }
 0xb9c   :  { %v9368_v34 = vpack.c.bf16 %v8531_v1, %v8525_v38 }
 0xb9d   :  { %8334 = vst.msk [vmem:[%s13843_s27] sm:$0xf] %vm8165_vm0, %v8331_v13  ;;  %v8544_v13 = vld [vmem:[%s13841_s23 + $0x118] sm:$0xff] }
 0xbaa   :  { %v8416_v12 = vpop.f32.mrb[32].mxu1 }
 0xbab   :  { %v8417_v4 = vadd.f32 %v9104_v17, %v8416_v12  ;;  %v9231_v16 = vpop.f32.mrb[33].mxu1  ;;  %v9370_v17 = vpack.c.bf16 %v8544_v13, %v8538_v6  ;;  %v8550_v12 = vld [vmem:[%s13841_s23 + $0x148] sm:$0xff] }
 0xbac   :  { %v9374_v55 = vpack.c.bf16 %v8556_v25, %v8550_v12  ;;  %v8555_v16 = vld [vmem:[%s13841_s23 + $0x170] sm:$0xff] }
 0xbad   :  { %v8420_v22 = vmax.f32 %v8417_v4, 0.0  ;;  %v8549_v4 = vld [vmem:[%s13841_s23 + $0x140] sm:$0xff] }
 0xbaf   :  { %9245 = vmatmul.mubr.msk.f32.vlgmr.msra.gmra.mrb[34].mxu1 %vm8434_vm1, %v8420_v22  ;;  %v8568_v22 = vld [vmem:[%s13841_s23 + $0x1d8] sm:$0xff] }
 0xbb0   :  { %9341 = vmatpush1.bf16.msra.mxu1 %v9340_v58  ;;  %8752 = vmatprep.mubr.f32.mxu1 %v9862_v11  ;;  %v8562_v58 = vld [vmem:[%s13841_s23 + $0x1a8] sm:$0xff] }
 0xbb1   :  { %9343 = vmatprep.subr.bf16.mxu1 %v9342_v9  ;;  %v9376_v9 = vpack.c.bf16 %v8555_v16, %v8549_v4  ;;  %v9378_v30 = vpack.c.bf16 %v8568_v22, %v8562_v58 }
 0xbb4   :  { %9345 = vmatpush1.bf16.msra.mxu1 %v9344_v24  ;;  %v8580_v24 = vld [vmem:[%s13841_s23 + $0x238] sm:$0xff] }
 0xbb5   :  { %9347 = vmatprep.subr.bf16.mxu1 %v9346_v43  ;;  %v9380_v43 = vpack.c.bf16 %v8567_v42, %v8561_v35  ;;  %v9382_v5 = vpack.c.bf16 %v8580_v24, %v8574_v32 }
 0xbb8   :  { %9349 = vmatpush1.bf16.msra.mxu1 %v9348_v44  ;;  %v8581_v44 = vld [vmem:[%s13846_s24] sm:$0x3f] }
 0xbb9   :  { %9351 = vmatprep.subr.bf16.mxu1 %v9350_v50  ;;  %v14450_v50 = vld [vmem:[#allocation9_spill] sm:$0xff]  ;;  %v8594_v20 = vrot.slane %v8581_v44, %v14451_v60 }
 0xbba   :  { %v8586_v47 = vrot.slane %v8581_v44, %v14450_v50 }
 0xbbc   :  { %9353 = vmatpush1.bf16.msra.mxu1 %v9352_v3  ;;  %v8590_v3 = vrot.slane %v8581_v44, %v14452_v33 }
 0xbbd   :  { %9355 = vmatprep.subr.bf16.mxu1 %v9354_v41  ;;  %v14453_v41 = vld [vmem:[#allocation2_spill] sm:$0xff] }
 0xbbe   :  { %v8598_v63 = vrot.slane %v8581_v44, %v14453_v41 }
 0xbc0   :  { %9357 = vmatpush1.bf16.msra.mxu1 %v9356_v54 }
 0xbc1   :  { %9359 = vmatprep.subr.bf16.mxu1 %v9358_v62 }
 0xbc4   :  { %9361 = vmatpush1.bf16.msra.mxu1 %v9360_v14 }
 0xc82   :  { %v8504_v31 = vpop.f32.mrb[34].mxu1 }
 0xc83   :  { %v8505_v21 = vadd.f32 %v9106_v46, %v8504_v31  ;;  %v9246_v48 = vpop.f32.mrb[35].mxu1  ;;  %v14454_v31 = vld [vmem:[#allocation8_spill] sm:$0xff] }
 0xc84   :  { %v8602_v26 = vrot.slane %v8581_v44, %v14454_v31 }
 0xc85   :  { %v8508_v57 = vmax.f32 %v8505_v21, 0.0  ;;  %v8606_v21 = vrot.slane %v8581_v44, %v14455_v29 }
 0xc87   :  { %9108 = vmatmul.mubr.msk.f32.vlgmr.msra.gmra.mrb[28].mxu0 %vm8613_vm2, %v8508_v57  ;;  %9109 = vmatmul.mubr.msk.f32.vlgmr.msra.gmra.mrb[36].mxu1 %vm8613_vm2, %v8508_v57 }
 0xc88   :  { %9365 = vmatpush1.bf16.msra.mxu0 %v9364_v0  ;;  %8823 = vmatprep.mubr.f32.mxu0 %v9862_v11  ;;  %v9372_v11 = vpack.c.bf16 %v8543_v39, %v8537_v59 }
 0xc89   :  { %9367 = vmatprep.subr.bf16.mxu0 %v9366_v18 }
 0xc8c   :  { %9369 = vmatpush1.bf16.msra.mxu0 %v9368_v34 }
 0xc8d   :  { %9371 = vmatprep.subr.bf16.mxu0 %v9370_v17 }
 0xc90   :  { %9373 = vmatpush1.bf16.msra.mxu0 %v9372_v11 }
 0xc91   :  { %9375 = vmatprep.subr.bf16.mxu0 %v9374_v55 }
 0xc94   :  { %9377 = vmatpush1.bf16.msra.mxu0 %v9376_v9 }
 0xc95   :  { %9379 = vmatprep.subr.bf16.mxu0 %v9378_v30 }
 0xc98   :  { %9381 = vmatpush1.bf16.msra.mxu0 %v9380_v43 }
 0xc99   :  { %9383 = vmatprep.subr.bf16.mxu0 %v9382_v5 }
 0xc9c   :  { %9385 = vmatpush1.bf16.msra.mxu0 %v9384_v52 }
 0xc9f   :  { %9110 = vmatmul.mubr.msk.f32.vlgmr.msra.gmra.mrb[30].mxu0 %vm8613_vm2, %v8508_v57 }
 0xd5a   :  { %v8683_v56 = vpop.f32.mrb[28].mxu0  ;;  %v8754_v54 = vpop.f32.mrb[36].mxu1 }
 0xd5b   :  { %v8684_v27 = vadd.f32 %v8683_v56, %v8586_v47  ;;  %v8755_v15 = vadd.f32 %v8754_v54, %v8594_v20  ;;  %v8685_v10 = vpop.f32.mrb[29].mxu0  ;;  %v8756_v36 = vpop.f32.mrb[37].mxu1 }
 0xd5c   :  { %v8686_v8 = vadd.f32 %v8685_v10, %v8590_v3  ;;  %v8757_v23 = vadd.f32 %v8756_v36, %v8598_v63 }
 0xd5d   :  { %v9111_v51 = vmul.f32 -1.442695, %v8684_v27  ;;  %v9113_v28 = vmul.f32 -1.442695, %v8755_v15 }
 0xd5e   :  { %v9112_v19 = vmul.f32 -1.442695, %v8686_v8  ;;  %v9114_v37 = vmul.f32 -1.442695, %v8757_v23 }
 0xd5f   :  { %9826 = vpow2.f32 %v9111_v51 }
 0xd60   :  { %9828 = vpow2.f32 %v9113_v28 }
 0xd61   :  { %9830 = vpow2.f32 %v9112_v19 }
 0xd62   :  { %9832 = vpow2.f32 %v9114_v37 }
 0xd69   :  { %v9827_v62 = vpop.eup %9826 }
 0xd6a   :  { %v9829_v14 = vpop.eup %9828  ;;  %v8848_v45 = vadd.f32 1.0, %v9827_v62 }
 0xd6b   :  { %v9831_v53 = vpop.eup %9830  ;;  %v8850_v49 = vadd.f32 1.0, %v9829_v14 }
 0xd6c   :  { %v9833_v46 = vpop.eup %9832  ;;  %9834 = vrcp.f32 %v8848_v45  ;;  %v8849_v2 = vadd.f32 1.0, %v9831_v53 }
 0xd6d   :  { %9836 = vrcp.f32 %v8850_v49  ;;  %v8851_v61 = vadd.f32 1.0, %v9833_v46 }
 0xd6e   :  { %9838 = vrcp.f32 %v8849_v2 }
 0xd6f   :  { %9840 = vrcp.f32 %v8851_v61 }
 0xd72   :  { %v8825_v48 = vpop.f32.mrb[30].mxu0 }
 0xd73   :  { %v8826_v0 = vadd.f32 %v8825_v48, %v8602_v26  ;;  %v8827_v57 = vpop.f32.mrb[31].mxu0 }
 0xd74   :  { %v8828_v18 = vadd.f32 %v8827_v57, %v8606_v21 }
 0xd75   :  { %v9115_v38 = vmul.f32 -1.442695, %v8826_v0 }
 0xd76   :  { %v9835_v1 = vpop.eup %9834  ;;  %v9116_v6 = vmul.f32 -1.442695, %v8828_v18 }
 0xd77   :  { %v9837_v13 = vpop.eup %9836  ;;  %9842 = vpow2.f32 %v9115_v38 }
 0xd78   :  { %v9839_v34 = vpop.eup %9838  ;;  %9844 = vpow2.f32 %v9116_v6 }
 0xd79   :  { %v9841_v17 = vpop.eup %9840  ;;  %v8872_v59 = vcombine.low %v9835_v1, %v9839_v34 }
 0xd7a   :  { %v8873_v39 = vcombine.low %v9837_v13, %v9841_v17 }
 0xd7b   :  { %8878 = vst [vmem:[%s13847_s28] sm:$0xff] %v8872_v59 }
 0xd7c   :  { %8879 = vst [vmem:[%s13847_s28 + $0x8] sm:$0xff] %v8873_v39 }
 0xd81   :  { %v9843_v12 = vpop.eup %9842 }
 0xd82   :  { %v9845_v25 = vpop.eup %9844  ;;  %v8852_v11 = vadd.f32 1.0, %v9843_v12 }
 0xd83   :  { %v8853_v55 = vadd.f32 1.0, %v9845_v25 }
 0xd84   :  { %9846 = vrcp.f32 %v8852_v11 }
 0xd85   :  { %9848 = vrcp.f32 %v8853_v55 }
 0xd8e   :  { %v9847_v4 = vpop.eup %9846 }
 0xd8f   :  { %v9849_v16 = vpop.eup %9848 }
 0xd90   :  { %v8874_v58 = vcombine.low %v9847_v4, %v9849_v16 }
 0xd92   :  { %8880 = vst [vmem:[%s13847_s28 + $0x10] sm:$0xff] %v8874_v58 }

</bundles_post_ra>
